<compile_context>
chip_gen: v6e
topology: v6e:2x2x1
jax: 0.10.0
libtpu: 0.0.40
codegen_flags: <defaults>
</compile_context>

<pallas_src>
import jax
import jax.numpy as jnp
from jax import lax
from jax.experimental import pallas as pl
from jax.experimental.pallas import tpu as pltpu

EPS = 1e-5
NUM_GROUPS = 4   # GroupNorm(4, embed_dim)
BATCH_TILE = 8   # samples per grid step (batch zero-padded up to a multiple of this)


def _make_kernel(Bt, S, E):
    def kernel(patches_ref, wc_ref, bc_ref, gdn_ref, gupg_ref, beta_ref,
               pool_ref, wagg_ref, bagg_ref, w1_ref, b1_ref, w2_ref, b2_ref, out_ref):
        # Conv2d(3, E, k=3, s=1, replicate pad) as a single im2col matmul over Bt samples.
        # (normalize(x)=2x-1 is already folded into wc/bc host-side.)
        feat2 = jnp.dot(patches_ref[...], wc_ref[...],
                        preferred_element_type=jnp.float32) + bc_ref[...]        # [Bt*S, E]

        # GroupNorm(4, E): one-pass statistics per sample per group.
        feat3 = feat2.reshape(Bt, S, E)        # sublane split; S % 8 == 0 -> layout-trivial
        s1 = jnp.sum(feat3, axis=1)            # [Bt, E]  sum(x)
        s2 = jnp.sum(feat3 * feat3, axis=1)    # [Bt, E]  sum(x^2)   (same sweep as s1)
        # gdn already carries 1/(S*GS): g1 = group mean, g2 = group E[x^2]
        g1 = jnp.dot(s1, gdn_ref[...], preferred_element_type=jnp.float32)        # [Bt, NG]
        g2 = jnp.dot(s2, gdn_ref[...], preferred_element_type=jnp.float32)        # [Bt, NG]
        var_g = jnp.maximum(g2 - g1 * g1, 0.0)
        rstd_g = lax.rsqrt(var_g + EPS)                                            # [Bt, NG]
        # gup_gamma = group->channel indicator * gamma (folded host-side)
        scale_c = jnp.dot(rstd_g, gupg_ref[...],
                          preferred_element_type=jnp.float32)                      # [Bt, E]
        shift_c = beta_ref[...] - jnp.dot(g1 * rstd_g, gupg_ref[...],
                                          preferred_element_type=jnp.float32)      # [Bt, E]
        # fused normalize + affine + ReLU (single elementwise pass over [Bt, S, E])
        act3 = jnp.maximum(feat3 * scale_c[:, None, :] + shift_c[:, None, :], 0.0)

        # AdaptiveAvgPool2d((4,4)) as a batched matmul with a precomputed [16, S] bin matrix.
        poolB = jnp.broadcast_to(pool_ref[...], (Bt, 16, S))
        pooled = jnp.einsum('bps,bse->bpe', poolB, act3,
                            preferred_element_type=jnp.float32)                    # [Bt,16,E]

        # aggregate: Linear(16*E, E) as 16 independent partial matmuls + balanced add tree.
        parts = [jnp.dot(pooled[:, p, :], wagg_ref[p],
                         preferred_element_type=jnp.float32) for p in range(16)]
        while len(parts) > 1:
            parts = [parts[i] + parts[i + 1] for i in range(0, len(parts), 2)]
        agg = parts[0] + bagg_ref[...]                                             # [Bt, E]

        # per-output heads (Linear -> ReLU -> Linear), merged into 2 lane-dense matmuls.
        hidden = jnp.maximum(
            jnp.dot(agg, w1_ref[...], preferred_element_type=jnp.float32) + b1_ref[...],
            0.0)                                                                   # [Bt, nH*E]
        out = jnp.dot(hidden, w2_ref[...],
                      preferred_element_type=jnp.float32) + b2_ref[...]            # [Bt, Cpad]
        out_ref[...] = out.astype(out_ref.dtype)

    return kernel


def image_to_condition(x, params, embed_dim, outputs, *, batch_tile=BATCH_TILE):
    B, Cin, H, W = x.shape
    assert Cin == 3 and H % 16 == 0 and W % 16 == 0
    E = embed_dim
    assert E % NUM_GROUPS == 0
    Hp, Wp = H // 4, W // 4
    S = Hp * Wp
    n_heads = len(outputs)
    Csum = int(sum(outputs))
    Cpad = max(128, ((Csum + 127) // 128) * 128)

    Bt = batch_tile
    B_pad = ((B + Bt - 1) // Bt) * Bt
    nb = B_pad // Bt

    # --- glue: AvgPool2d((4,4)) + replicate-pad im2col (indexing only) ---
    xp = x.reshape(B, Cin, Hp, 4, Wp, 4).mean(axis=(3, 5))                     # [B, 3, Hp, Wp]
    xpad = jnp.pad(xp, ((0, 0), (0, 0), (1, 1), (1, 1)), mode="edge")          # replicate pad
    cols = [xpad[:, :, kh:kh + Hp, kw:kw + Wp] for kh in range(3) for kw in range(3)]
    pat = jnp.stack(cols, axis=2)                                              # [B, 3, 9, Hp, Wp]
    patches = pat.transpose(0, 3, 4, 1, 2).reshape(B, S, Cin * 9)              # [B, S, 27]
    if B_pad != B:
        patches = jnp.pad(patches, ((0, B_pad - B), (0, 0), (0, 0)))
    patches = patches.reshape(B_pad * S, Cin * 9)                              # [B_pad*S, 27]

    # AdaptiveAvgPool2d -> (4,4) as a [16, S] averaging matrix (equal contiguous bins).
    kh, kw = Hp // 4, Wp // 4
    obin = ((jnp.arange(Hp) // kh)[:, None] * 4 +
            (jnp.arange(Wp) // kw)[None, :]).reshape(S)
    pool_mat = (jnp.arange(16)[:, None] == obin[None, :]).astype(jnp.float32) / (kh * kw)

    # GroupNorm channel<->group maps; 1/(S*GS) folded into gdn, gamma folded into gup.
    GS = E // NUM_GROUPS
    grp = jnp.arange(E) // GS
    gdn = (grp[:, None] == jnp.arange(NUM_GROUPS)[None, :]).astype(jnp.float32)  # [E, NG]
    gdn_scaled = gdn / float(S * GS)
    gup_gamma = gdn.T * params["gamma"].reshape(1, E)                             # [NG, E]
    beta = params["beta"].reshape(1, E)

    # PyTorch -> kernel weight layouts; normalize(x)=2x-1 folded into conv weights.
    wc = params["conv_w"].reshape(E, Cin * 9).T                                # [27, E]
    wc2 = 2.0 * wc
    bc2 = params["conv_b"].reshape(1, E) - jnp.sum(wc, axis=0, keepdims=True)
    # PyTorch flattens (E,4,4) as c*16+hw; kernel indexes pooled[b, hw, c].
    wagg = params["agg_w"].reshape(E, E, 16).transpose(2, 1, 0)                # [16, E_in, E_out]
    bagg = params["agg_b"].reshape(1, E)

    # merged heads: hidden = relu(agg @ W1all + b1all); out = hidden @ blockdiag(W2) + b2all
    w1_all = jnp.concatenate([w1.T for (w1, _, _, _) in params["heads"]], axis=1)   # [E, nH*E]
    b1_all = jnp.concatenate([b1 for (_, b1, _, _) in params["heads"]]).reshape(1, n_heads * E)
    w2_blk = jnp.zeros((n_heads * E, Cpad), jnp.float32)
    b2_all = jnp.zeros((1, Cpad), jnp.float32)
    off = 0
    for i, (_, _, w2, b2) in enumerate(params["heads"]):
        c = w2.shape[0]
        w2_blk = w2_blk.at[i * E:(i + 1) * E, off:off + c].set(w2.T)
        b2_all = b2_all.at[0, off:off + c].set(b2)
        off += c

    args = [patches, wc2, bc2, gdn_scaled, gup_gamma, beta, pool_mat, wagg, bagg,
            w1_all, b1_all, w2_blk, b2_all]

    def _const_spec(a):
        nd = a.ndim
        return pl.BlockSpec(a.shape, lambda i, _nd=nd: (0,) * _nd)

    in_specs = [pl.BlockSpec((Bt * S, Cin * 9), lambda i: (i, 0))]
    in_specs += [_const_spec(a) for a in args[1:]]
    out_specs = pl.BlockSpec((Bt, Cpad), lambda i: (i, 0))
    out_shape = jax.ShapeDtypeStruct((B_pad, Cpad), jnp.float32)

    out = pl.pallas_call(
        _make_kernel(Bt, S, E),
        grid=(nb,),
        in_specs=in_specs,
        out_specs=out_specs,
        out_shape=out_shape,
        compiler_params=pltpu.CompilerParams(dimension_semantics=("parallel",)),
    )(*args)

    # split the lane-dense output slab back into per-head outputs; match PyTorch view(B,C,1,1)
    outs = []
    off = 0
    for c in outputs:
        outs.append(out[:B, off:off + c].reshape(B, c, 1, 1))
        off += c
    return outs


# ------------- deterministic parameter init (synthetic; basic_module_init replaced) -------------
def init_params(key, embed_dim, outputs):
    E = embed_dim
    ks = jax.random.split(key, 6 + 4 * len(outputs))

    def nrm(k, shape, scale=0.1):
        return scale * jax.random.normal(k, shape, dtype=jnp.float32)

    params = {
        "conv_w": nrm(ks[0], (E, 3, 3, 3)),
        "conv_b": nrm(ks[1], (E,)),
        "gamma": 1.0 + nrm(ks[2], (E,), 0.05),
        "beta": nrm(ks[3], (E,), 0.05),
        "agg_w": nrm(ks[4], (E, E * 16)),
        "agg_b": nrm(ks[5], (E,)),
    }
    heads = []
    for j, c in enumerate(outputs):
        k1, k2, k3, k4 = ks[6 + 4 * j: 10 + 4 * j]
        heads.append((nrm(k1, (E, E)), nrm(k2, (E,)), nrm(k3, (c, E)), nrm(k4, (c,))))
    params["heads"] = heads
    return params


# ---------------- pure-JAX reference (mirrors the PyTorch forward) ----------------
def reference(x, params, embed_dim, outputs):
    E = embed_dim
    x = x * 2.0 - 1.0
    Bn, C, H, W = x.shape
    x = x.reshape(Bn, C, H // 4, 4, W // 4, 4).mean(axis=(3, 5))
    xp = jnp.pad(x, ((0, 0), (0, 0), (1, 1), (1, 1)), mode="edge")
    y = lax.conv_general_dilated(xp, params["conv_w"], (1, 1), "VALID",
                                 dimension_numbers=("NCHW", "OIHW", "NCHW"))
    y = y + params["conv_b"][None, :, None, None]
    _, _, Hp, Wp = y.shape
    yg = y.reshape(Bn, NUM_GROUPS, E // NUM_GROUPS, Hp, Wp)
    mu = yg.mean(axis=(2, 3, 4), keepdims=True)
    var = ((yg - mu) ** 2).mean(axis=(2, 3, 4), keepdims=True)
    yg = (yg - mu) / jnp.sqrt(var + EPS)
    y = yg.reshape(Bn, E, Hp, Wp) * params["gamma"][None, :, None, None] \
        + params["beta"][None, :, None, None]
    y = jnp.maximum(y, 0.0)
    y = y.reshape(Bn, E, 4, Hp // 4, 4, Wp // 4).mean(axis=(3, 5))
    flat = y.reshape(Bn, E * 16)
    agg = flat @ params["agg_w"].T + params["agg_b"]
    outs = []
    for (w1, b1, w2, b2) in params["heads"]:
        h = jnp.maximum(agg @ w1.T + b1, 0.0)
        o = h @ w2.T + b2
        outs.append(o.reshape(Bn, o.shape[1], 1, 1))
    return outs


if __name__ == "__main__":
    key = jax.random.PRNGKey(0)
    kx, kp = jax.random.split(key)
    embed_dim = 32
    outputs = (8, 16)
    B, H, W = 2, 32, 32

    x = jax.random.uniform(kx, (B, 3, H, W), dtype=jnp.float32)
    params = init_params(kp, embed_dim, outputs)

    outs = image_to_condition(x, params, embed_dim, outputs)
    outs = jax.block_until_ready(outs)

    refs = reference(x, params, embed_dim, outputs)
    for o, r in zip(outs, refs):
        assert o.shape == r.shape, (o.shape, r.shape)
        assert jnp.allclose(o, r, rtol=1e-4, atol=1e-4), float(jnp.max(jnp.abs(o - r)))

    print("KERNEL_OK")
</pallas_src>

<mosaic_0001>
module attributes {stable_mosaic.version = 11 : i64} {
  func.func @kernel(%arg0: i32, %arg1: memref<512x27xf32, #tpu.memory_space<vmem>>, %arg2: memref<27x32xf32, #tpu.memory_space<vmem>>, %arg3: memref<1x32xf32, #tpu.memory_space<vmem>>, %arg4: memref<32x4xf32, #tpu.memory_space<vmem>>, %arg5: memref<4x32xf32, #tpu.memory_space<vmem>>, %arg6: memref<1x32xf32, #tpu.memory_space<vmem>>, %arg7: memref<16x64xf32, #tpu.memory_space<vmem>>, %arg8: memref<16x32x32xf32, #tpu.memory_space<vmem>>, %arg9: memref<1x32xf32, #tpu.memory_space<vmem>>, %arg10: memref<32x64xf32, #tpu.memory_space<vmem>>, %arg11: memref<1x64xf32, #tpu.memory_space<vmem>>, %arg12: memref<64x128xf32, #tpu.memory_space<vmem>>, %arg13: memref<1x128xf32, #tpu.memory_space<vmem>>, %arg14: memref<8x128xf32, #tpu.memory_space<vmem>>) attributes {dimension_semantics = [#tpu.dimension_semantics<parallel>], iteration_bounds = array<i64: 1>, scalar_prefetch = 0 : i64, scratch_operands = 0 : i64, tpu.core_type = #tpu.core_type<tc>, window_params = [{transform_indices = @transform_0, window_bounds = array<i64: 512, 27>}, {pipeline_mode = #tpu.pipeline_mode<synchronous>, transform_indices = @transform_1, window_bounds = array<i64: 27, 32>}, {pipeline_mode = #tpu.pipeline_mode<synchronous>, transform_indices = @transform_2, window_bounds = array<i64: 1, 32>}, {pipeline_mode = #tpu.pipeline_mode<synchronous>, transform_indices = @transform_3, window_bounds = array<i64: 32, 4>}, {pipeline_mode = #tpu.pipeline_mode<synchronous>, transform_indices = @transform_4, window_bounds = array<i64: 4, 32>}, {pipeline_mode = #tpu.pipeline_mode<synchronous>, transform_indices = @transform_5, window_bounds = array<i64: 1, 32>}, {pipeline_mode = #tpu.pipeline_mode<synchronous>, transform_indices = @transform_6, window_bounds = array<i64: 16, 64>}, {pipeline_mode = #tpu.pipeline_mode<synchronous>, transform_indices = @transform_7, window_bounds = array<i64: 16, 32, 32>}, {pipeline_mode = #tpu.pipeline_mode<synchronous>, transform_indices = @transform_8, window_bounds = array<i64: 1, 32>}, {pipeline_mode = #tpu.pipeline_mode<synchronous>, transform_indices = @transform_9, window_bounds = array<i64: 32, 64>}, {pipeline_mode = #tpu.pipeline_mode<synchronous>, transform_indices = @transform_10, window_bounds = array<i64: 1, 64>}, {pipeline_mode = #tpu.pipeline_mode<synchronous>, transform_indices = @transform_11, window_bounds = array<i64: 64, 128>}, {pipeline_mode = #tpu.pipeline_mode<synchronous>, transform_indices = @transform_12, window_bounds = array<i64: 1, 128>}, {transform_indices = @transform_13, window_bounds = array<i64: 8, 128>}]} {
    %c0 = arith.constant 0 : index
    %c0_0 = arith.constant 0 : index
    %0 = vector.load %arg1[%c0, %c0_0] : memref<512x27xf32, #tpu.memory_space<vmem>>, vector<512x27xf32>
    %c0_1 = arith.constant 0 : index
    %c0_2 = arith.constant 0 : index
    %1 = vector.load %arg2[%c0_1, %c0_2] : memref<27x32xf32, #tpu.memory_space<vmem>>, vector<27x32xf32>
    %cst = arith.constant dense<0.000000e+00> : vector<512x32xf32>
    %2 = tpu.matmul %0, %1, %cst {dimension_numbers = #tpu.dot_dimension_numbers<[1], [0], [0], [1], [0, 0, 1, 1], [], []>} : vector<512x27xf32>, vector<27x32xf32>, vector<512x32xf32> -> vector<512x32xf32>
    %c0_3 = arith.constant 0 : index
    %c0_4 = arith.constant 0 : index
    %3 = vector.load %arg3[%c0_3, %c0_4] : memref<1x32xf32, #tpu.memory_space<vmem>>, vector<1x32xf32>
    %4 = vector.broadcast %3 : vector<1x32xf32> to vector<512x32xf32>
    %5 = arith.addf %2, %4 : vector<512x32xf32>
    %6 = vector.shape_cast %5 : vector<512x32xf32> to vector<8x64x32xf32>
    %cst_5 = arith.constant dense<0.000000e+00> : vector<8x32xf32>
    %7 = vector.multi_reduction <add>, %6, %cst_5 [1] : vector<8x64x32xf32> to vector<8x32xf32>
    %8 = arith.mulf %6, %6 : vector<8x64x32xf32>
    %cst_6 = arith.constant dense<0.000000e+00> : vector<8x32xf32>
    %9 = vector.multi_reduction <add>, %8, %cst_6 [1] : vector<8x64x32xf32> to vector<8x32xf32>
    %c0_7 = arith.constant 0 : index
    %c0_8 = arith.constant 0 : index
    %10 = vector.load %arg4[%c0_7, %c0_8] : memref<32x4xf32, #tpu.memory_space<vmem>>, vector<32x4xf32>
    %cst_9 = arith.constant dense<0.000000e+00> : vector<8x4xf32>
    %11 = tpu.matmul %7, %10, %cst_9 {dimension_numbers = #tpu.dot_dimension_numbers<[1], [0], [0], [1], [0, 0, 1, 1], [], []>} : vector<8x32xf32>, vector<32x4xf32>, vector<8x4xf32> -> vector<8x4xf32>
    %c0_10 = arith.constant 0 : index
    %c0_11 = arith.constant 0 : index
    %12 = vector.load %arg4[%c0_10, %c0_11] : memref<32x4xf32, #tpu.memory_space<vmem>>, vector<32x4xf32>
    %cst_12 = arith.constant dense<0.000000e+00> : vector<8x4xf32>
    %13 = tpu.matmul %9, %12, %cst_12 {dimension_numbers = #tpu.dot_dimension_numbers<[1], [0], [0], [1], [0, 0, 1, 1], [], []>} : vector<8x32xf32>, vector<32x4xf32>, vector<8x4xf32> -> vector<8x4xf32>
    %14 = arith.mulf %11, %11 : vector<8x4xf32>
    %15 = arith.subf %13, %14 : vector<8x4xf32>
    %cst_13 = arith.constant 0.000000e+00 : f32
    %16 = vector.broadcast %cst_13 : f32 to vector<8x4xf32>
    %17 = arith.maximumf %15, %16 : vector<8x4xf32>
    %cst_14 = arith.constant 9.99999974E-6 : f32
    %18 = vector.broadcast %cst_14 : f32 to vector<8x4xf32>
    %19 = arith.addf %17, %18 : vector<8x4xf32>
    %20 = math.rsqrt %19 : vector<8x4xf32>
    %c0_15 = arith.constant 0 : index
    %c0_16 = arith.constant 0 : index
    %21 = vector.load %arg5[%c0_15, %c0_16] : memref<4x32xf32, #tpu.memory_space<vmem>>, vector<4x32xf32>
    %cst_17 = arith.constant dense<0.000000e+00> : vector<8x32xf32>
    %22 = tpu.matmul %20, %21, %cst_17 {dimension_numbers = #tpu.dot_dimension_numbers<[1], [0], [0], [1], [0, 0, 1, 1], [], []>} : vector<8x4xf32>, vector<4x32xf32>, vector<8x32xf32> -> vector<8x32xf32>
    %c0_18 = arith.constant 0 : index
    %c0_19 = arith.constant 0 : index
    %23 = vector.load %arg6[%c0_18, %c0_19] : memref<1x32xf32, #tpu.memory_space<vmem>>, vector<1x32xf32>
    %24 = arith.mulf %11, %20 : vector<8x4xf32>
    %c0_20 = arith.constant 0 : index
    %c0_21 = arith.constant 0 : index
    %25 = vector.load %arg5[%c0_20, %c0_21] : memref<4x32xf32, #tpu.memory_space<vmem>>, vector<4x32xf32>
    %cst_22 = arith.constant dense<0.000000e+00> : vector<8x32xf32>
    %26 = tpu.matmul %24, %25, %cst_22 {dimension_numbers = #tpu.dot_dimension_numbers<[1], [0], [0], [1], [0, 0, 1, 1], [], []>} : vector<8x4xf32>, vector<4x32xf32>, vector<8x32xf32> -> vector<8x32xf32>
    %27 = vector.broadcast %23 : vector<1x32xf32> to vector<8x32xf32>
    %28 = arith.subf %27, %26 : vector<8x32xf32>
    %29 = vector.shape_cast %22 : vector<8x32xf32> to vector<8x1x32xf32>
    %30 = vector.broadcast %29 : vector<8x1x32xf32> to vector<8x64x32xf32>
    %31 = arith.mulf %6, %30 : vector<8x64x32xf32>
    %32 = vector.shape_cast %28 : vector<8x32xf32> to vector<8x1x32xf32>
    %33 = vector.broadcast %32 : vector<8x1x32xf32> to vector<8x64x32xf32>
    %34 = arith.addf %31, %33 : vector<8x64x32xf32>
    %cst_23 = arith.constant 0.000000e+00 : f32
    %35 = vector.broadcast %cst_23 : f32 to vector<8x64x32xf32>
    %36 = arith.maximumf %34, %35 : vector<8x64x32xf32>
    %c0_24 = arith.constant 0 : index
    %c0_25 = arith.constant 0 : index
    %37 = vector.load %arg7[%c0_24, %c0_25] : memref<16x64xf32, #tpu.memory_space<vmem>>, vector<16x64xf32>
    %38 = vector.shape_cast %37 : vector<16x64xf32> to vector<1x16x64xf32>
    %39 = vector.broadcast %38 : vector<1x16x64xf32> to vector<8x16x64xf32>
    "tpu.trace_start"() <{level = 10 : i32, message = "bps,bse->bpe"}> : () -> ()
    %cst_26 = arith.constant dense<0.000000e+00> : vector<8x16x32xf32>
    %40 = tpu.matmul %39, %36, %cst_26 {dimension_numbers = #tpu.dot_dimension_numbers<[2], [1], [1], [2], [0, 0, 0, 1, 1, 2], [0], [0]>} : vector<8x16x64xf32>, vector<8x64x32xf32>, vector<8x16x32xf32> -> vector<8x16x32xf32>
    "tpu.trace_stop"() : () -> ()
    %41 = vector.extract_strided_slice %40 {offsets = [0, 0, 0], sizes = [8, 1, 32], strides = [1, 1, 1]} : vector<8x16x32xf32> to vector<8x1x32xf32>
    %42 = vector.shape_cast %41 : vector<8x1x32xf32> to vector<8x32xf32>
    %c0_27 = arith.constant 0 : index
    %c0_28 = arith.constant 0 : index
    %c0_29 = arith.constant 0 : index
    %43 = vector.load %arg8[%c0_27, %c0_28, %c0_29] : memref<16x32x32xf32, #tpu.memory_space<vmem>>, vector<1x32x32xf32>
    %44 = vector.shape_cast %43 : vector<1x32x32xf32> to vector<32x32xf32>
    %cst_30 = arith.constant dense<0.000000e+00> : vector<8x32xf32>
    %45 = tpu.matmul %42, %44, %cst_30 {dimension_numbers = #tpu.dot_dimension_numbers<[1], [0], [0], [1], [0, 0, 1, 1], [], []>} : vector<8x32xf32>, vector<32x32xf32>, vector<8x32xf32> -> vector<8x32xf32>
    %46 = vector.extract_strided_slice %40 {offsets = [0, 1, 0], sizes = [8, 1, 32], strides = [1, 1, 1]} : vector<8x16x32xf32> to vector<8x1x32xf32>
    %47 = vector.shape_cast %46 : vector<8x1x32xf32> to vector<8x32xf32>
    %c1 = arith.constant 1 : index
    %c0_31 = arith.constant 0 : index
    %c0_32 = arith.constant 0 : index
    %48 = vector.load %arg8[%c1, %c0_31, %c0_32] : memref<16x32x32xf32, #tpu.memory_space<vmem>>, vector<1x32x32xf32>
    %49 = vector.shape_cast %48 : vector<1x32x32xf32> to vector<32x32xf32>
    %cst_33 = arith.constant dense<0.000000e+00> : vector<8x32xf32>
    %50 = tpu.matmul %47, %49, %cst_33 {dimension_numbers = #tpu.dot_dimension_numbers<[1], [0], [0], [1], [0, 0, 1, 1], [], []>} : vector<8x32xf32>, vector<32x32xf32>, vector<8x32xf32> -> vector<8x32xf32>
    %51 = vector.extract_strided_slice %40 {offsets = [0, 2, 0], sizes = [8, 1, 32], strides = [1, 1, 1]} : vector<8x16x32xf32> to vector<8x1x32xf32>
    %52 = vector.shape_cast %51 : vector<8x1x32xf32> to vector<8x32xf32>
    %c2 = arith.constant 2 : index
    %c0_34 = arith.constant 0 : index
    %c0_35 = arith.constant 0 : index
    %53 = vector.load %arg8[%c2, %c0_34, %c0_35] : memref<16x32x32xf32, #tpu.memory_space<vmem>>, vector<1x32x32xf32>
    %54 = vector.shape_cast %53 : vector<1x32x32xf32> to vector<32x32xf32>
    %cst_36 = arith.constant dense<0.000000e+00> : vector<8x32xf32>
    %55 = tpu.matmul %52, %54, %cst_36 {dimension_numbers = #tpu.dot_dimension_numbers<[1], [0], [0], [1], [0, 0, 1, 1], [], []>} : vector<8x32xf32>, vector<32x32xf32>, vector<8x32xf32> -> vector<8x32xf32>
    %56 = vector.extract_strided_slice %40 {offsets = [0, 3, 0], sizes = [8, 1, 32], strides = [1, 1, 1]} : vector<8x16x32xf32> to vector<8x1x32xf32>
    %57 = vector.shape_cast %56 : vector<8x1x32xf32> to vector<8x32xf32>
    %c3 = arith.constant 3 : index
    %c0_37 = arith.constant 0 : index
    %c0_38 = arith.constant 0 : index
    %58 = vector.load %arg8[%c3, %c0_37, %c0_38] : memref<16x32x32xf32, #tpu.memory_space<vmem>>, vector<1x32x32xf32>
    %59 = vector.shape_cast %58 : vector<1x32x32xf32> to vector<32x32xf32>
    %cst_39 = arith.constant dense<0.000000e+00> : vector<8x32xf32>
    %60 = tpu.matmul %57, %59, %cst_39 {dimension_numbers = #tpu.dot_dimension_numbers<[1], [0], [0], [1], [0, 0, 1, 1], [], []>} : vector<8x32xf32>, vector<32x32xf32>, vector<8x32xf32> -> vector<8x32xf32>
    %61 = vector.extract_strided_slice %40 {offsets = [0, 4, 0], sizes = [8, 1, 32], strides = [1, 1, 1]} : vector<8x16x32xf32> to vector<8x1x32xf32>
    %62 = vector.shape_cast %61 : vector<8x1x32xf32> to vector<8x32xf32>
    %c4 = arith.constant 4 : index
    %c0_40 = arith.constant 0 : index
    %c0_41 = arith.constant 0 : index
    %63 = vector.load %arg8[%c4, %c0_40, %c0_41] : memref<16x32x32xf32, #tpu.memory_space<vmem>>, vector<1x32x32xf32>
    %64 = vector.shape_cast %63 : vector<1x32x32xf32> to vector<32x32xf32>
    %cst_42 = arith.constant dense<0.000000e+00> : vector<8x32xf32>
    %65 = tpu.matmul %62, %64, %cst_42 {dimension_numbers = #tpu.dot_dimension_numbers<[1], [0], [0], [1], [0, 0, 1, 1], [], []>} : vector<8x32xf32>, vector<32x32xf32>, vector<8x32xf32> -> vector<8x32xf32>
    %66 = vector.extract_strided_slice %40 {offsets = [0, 5, 0], sizes = [8, 1, 32], strides = [1, 1, 1]} : vector<8x16x32xf32> to vector<8x1x32xf32>
    %67 = vector.shape_cast %66 : vector<8x1x32xf32> to vector<8x32xf32>
    %c5 = arith.constant 5 : index
    %c0_43 = arith.constant 0 : index
    %c0_44 = arith.constant 0 : index
    %68 = vector.load %arg8[%c5, %c0_43, %c0_44] : memref<16x32x32xf32, #tpu.memory_space<vmem>>, vector<1x32x32xf32>
    %69 = vector.shape_cast %68 : vector<1x32x32xf32> to vector<32x32xf32>
    %cst_45 = arith.constant dense<0.000000e+00> : vector<8x32xf32>
    %70 = tpu.matmul %67, %69, %cst_45 {dimension_numbers = #tpu.dot_dimension_numbers<[1], [0], [0], [1], [0, 0, 1, 1], [], []>} : vector<8x32xf32>, vector<32x32xf32>, vector<8x32xf32> -> vector<8x32xf32>
    %71 = vector.extract_strided_slice %40 {offsets = [0, 6, 0], sizes = [8, 1, 32], strides = [1, 1, 1]} : vector<8x16x32xf32> to vector<8x1x32xf32>
    %72 = vector.shape_cast %71 : vector<8x1x32xf32> to vector<8x32xf32>
    %c6 = arith.constant 6 : index
    %c0_46 = arith.constant 0 : index
    %c0_47 = arith.constant 0 : index
    %73 = vector.load %arg8[%c6, %c0_46, %c0_47] : memref<16x32x32xf32, #tpu.memory_space<vmem>>, vector<1x32x32xf32>
    %74 = vector.shape_cast %73 : vector<1x32x32xf32> to vector<32x32xf32>
    %cst_48 = arith.constant dense<0.000000e+00> : vector<8x32xf32>
    %75 = tpu.matmul %72, %74, %cst_48 {dimension_numbers = #tpu.dot_dimension_numbers<[1], [0], [0], [1], [0, 0, 1, 1], [], []>} : vector<8x32xf32>, vector<32x32xf32>, vector<8x32xf32> -> vector<8x32xf32>
    %76 = vector.extract_strided_slice %40 {offsets = [0, 7, 0], sizes = [8, 1, 32], strides = [1, 1, 1]} : vector<8x16x32xf32> to vector<8x1x32xf32>
    %77 = vector.shape_cast %76 : vector<8x1x32xf32> to vector<8x32xf32>
    %c7 = arith.constant 7 : index
    %c0_49 = arith.constant 0 : index
    %c0_50 = arith.constant 0 : index
    %78 = vector.load %arg8[%c7, %c0_49, %c0_50] : memref<16x32x32xf32, #tpu.memory_space<vmem>>, vector<1x32x32xf32>
    %79 = vector.shape_cast %78 : vector<1x32x32xf32> to vector<32x32xf32>
    %cst_51 = arith.constant dense<0.000000e+00> : vector<8x32xf32>
    %80 = tpu.matmul %77, %79, %cst_51 {dimension_numbers = #tpu.dot_dimension_numbers<[1], [0], [0], [1], [0, 0, 1, 1], [], []>} : vector<8x32xf32>, vector<32x32xf32>, vector<8x32xf32> -> vector<8x32xf32>
    %81 = vector.extract_strided_slice %40 {offsets = [0, 8, 0], sizes = [8, 1, 32], strides = [1, 1, 1]} : vector<8x16x32xf32> to vector<8x1x32xf32>
    %82 = vector.shape_cast %81 : vector<8x1x32xf32> to vector<8x32xf32>
    %c8 = arith.constant 8 : index
    %c0_52 = arith.constant 0 : index
    %c0_53 = arith.constant 0 : index
    %83 = vector.load %arg8[%c8, %c0_52, %c0_53] : memref<16x32x32xf32, #tpu.memory_space<vmem>>, vector<1x32x32xf32>
    %84 = vector.shape_cast %83 : vector<1x32x32xf32> to vector<32x32xf32>
    %cst_54 = arith.constant dense<0.000000e+00> : vector<8x32xf32>
    %85 = tpu.matmul %82, %84, %cst_54 {dimension_numbers = #tpu.dot_dimension_numbers<[1], [0], [0], [1], [0, 0, 1, 1], [], []>} : vector<8x32xf32>, vector<32x32xf32>, vector<8x32xf32> -> vector<8x32xf32>
    %86 = vector.extract_strided_slice %40 {offsets = [0, 9, 0], sizes = [8, 1, 32], strides = [1, 1, 1]} : vector<8x16x32xf32> to vector<8x1x32xf32>
    %87 = vector.shape_cast %86 : vector<8x1x32xf32> to vector<8x32xf32>
    %c9 = arith.constant 9 : index
    %c0_55 = arith.constant 0 : index
    %c0_56 = arith.constant 0 : index
    %88 = vector.load %arg8[%c9, %c0_55, %c0_56] : memref<16x32x32xf32, #tpu.memory_space<vmem>>, vector<1x32x32xf32>
    %89 = vector.shape_cast %88 : vector<1x32x32xf32> to vector<32x32xf32>
    %cst_57 = arith.constant dense<0.000000e+00> : vector<8x32xf32>
    %90 = tpu.matmul %87, %89, %cst_57 {dimension_numbers = #tpu.dot_dimension_numbers<[1], [0], [0], [1], [0, 0, 1, 1], [], []>} : vector<8x32xf32>, vector<32x32xf32>, vector<8x32xf32> -> vector<8x32xf32>
    %91 = vector.extract_strided_slice %40 {offsets = [0, 10, 0], sizes = [8, 1, 32], strides = [1, 1, 1]} : vector<8x16x32xf32> to vector<8x1x32xf32>
    %92 = vector.shape_cast %91 : vector<8x1x32xf32> to vector<8x32xf32>
    %c10 = arith.constant 10 : index
    %c0_58 = arith.constant 0 : index
    %c0_59 = arith.constant 0 : index
    %93 = vector.load %arg8[%c10, %c0_58, %c0_59] : memref<16x32x32xf32, #tpu.memory_space<vmem>>, vector<1x32x32xf32>
    %94 = vector.shape_cast %93 : vector<1x32x32xf32> to vector<32x32xf32>
    %cst_60 = arith.constant dense<0.000000e+00> : vector<8x32xf32>
    %95 = tpu.matmul %92, %94, %cst_60 {dimension_numbers = #tpu.dot_dimension_numbers<[1], [0], [0], [1], [0, 0, 1, 1], [], []>} : vector<8x32xf32>, vector<32x32xf32>, vector<8x32xf32> -> vector<8x32xf32>
    %96 = vector.extract_strided_slice %40 {offsets = [0, 11, 0], sizes = [8, 1, 32], strides = [1, 1, 1]} : vector<8x16x32xf32> to vector<8x1x32xf32>
    %97 = vector.shape_cast %96 : vector<8x1x32xf32> to vector<8x32xf32>
    %c11 = arith.constant 11 : index
    %c0_61 = arith.constant 0 : index
    %c0_62 = arith.constant 0 : index
    %98 = vector.load %arg8[%c11, %c0_61, %c0_62] : memref<16x32x32xf32, #tpu.memory_space<vmem>>, vector<1x32x32xf32>
    %99 = vector.shape_cast %98 : vector<1x32x32xf32> to vector<32x32xf32>
    %cst_63 = arith.constant dense<0.000000e+00> : vector<8x32xf32>
    %100 = tpu.matmul %97, %99, %cst_63 {dimension_numbers = #tpu.dot_dimension_numbers<[1], [0], [0], [1], [0, 0, 1, 1], [], []>} : vector<8x32xf32>, vector<32x32xf32>, vector<8x32xf32> -> vector<8x32xf32>
    %101 = vector.extract_strided_slice %40 {offsets = [0, 12, 0], sizes = [8, 1, 32], strides = [1, 1, 1]} : vector<8x16x32xf32> to vector<8x1x32xf32>
    %102 = vector.shape_cast %101 : vector<8x1x32xf32> to vector<8x32xf32>
    %c12 = arith.constant 12 : index
    %c0_64 = arith.constant 0 : index
    %c0_65 = arith.constant 0 : index
    %103 = vector.load %arg8[%c12, %c0_64, %c0_65] : memref<16x32x32xf32, #tpu.memory_space<vmem>>, vector<1x32x32xf32>
    %104 = vector.shape_cast %103 : vector<1x32x32xf32> to vector<32x32xf32>
    %cst_66 = arith.constant dense<0.000000e+00> : vector<8x32xf32>
    %105 = tpu.matmul %102, %104, %cst_66 {dimension_numbers = #tpu.dot_dimension_numbers<[1], [0], [0], [1], [0, 0, 1, 1], [], []>} : vector<8x32xf32>, vector<32x32xf32>, vector<8x32xf32> -> vector<8x32xf32>
    %106 = vector.extract_strided_slice %40 {offsets = [0, 13, 0], sizes = [8, 1, 32], strides = [1, 1, 1]} : vector<8x16x32xf32> to vector<8x1x32xf32>
    %107 = vector.shape_cast %106 : vector<8x1x32xf32> to vector<8x32xf32>
    %c13 = arith.constant 13 : index
    %c0_67 = arith.constant 0 : index
    %c0_68 = arith.constant 0 : index
    %108 = vector.load %arg8[%c13, %c0_67, %c0_68] : memref<16x32x32xf32, #tpu.memory_space<vmem>>, vector<1x32x32xf32>
    %109 = vector.shape_cast %108 : vector<1x32x32xf32> to vector<32x32xf32>
    %cst_69 = arith.constant dense<0.000000e+00> : vector<8x32xf32>
    %110 = tpu.matmul %107, %109, %cst_69 {dimension_numbers = #tpu.dot_dimension_numbers<[1], [0], [0], [1], [0, 0, 1, 1], [], []>} : vector<8x32xf32>, vector<32x32xf32>, vector<8x32xf32> -> vector<8x32xf32>
    %111 = vector.extract_strided_slice %40 {offsets = [0, 14, 0], sizes = [8, 1, 32], strides = [1, 1, 1]} : vector<8x16x32xf32> to vector<8x1x32xf32>
    %112 = vector.shape_cast %111 : vector<8x1x32xf32> to vector<8x32xf32>
    %c14 = arith.constant 14 : index
    %c0_70 = arith.constant 0 : index
    %c0_71 = arith.constant 0 : index
    %113 = vector.load %arg8[%c14, %c0_70, %c0_71] : memref<16x32x32xf32, #tpu.memory_space<vmem>>, vector<1x32x32xf32>
    %114 = vector.shape_cast %113 : vector<1x32x32xf32> to vector<32x32xf32>
    %cst_72 = arith.constant dense<0.000000e+00> : vector<8x32xf32>
    %115 = tpu.matmul %112, %114, %cst_72 {dimension_numbers = #tpu.dot_dimension_numbers<[1], [0], [0], [1], [0, 0, 1, 1], [], []>} : vector<8x32xf32>, vector<32x32xf32>, vector<8x32xf32> -> vector<8x32xf32>
    %116 = vector.extract_strided_slice %40 {offsets = [0, 15, 0], sizes = [8, 1, 32], strides = [1, 1, 1]} : vector<8x16x32xf32> to vector<8x1x32xf32>
    %117 = vector.shape_cast %116 : vector<8x1x32xf32> to vector<8x32xf32>
    %c15 = arith.constant 15 : index
    %c0_73 = arith.constant 0 : index
    %c0_74 = arith.constant 0 : index
    %118 = vector.load %arg8[%c15, %c0_73, %c0_74] : memref<16x32x32xf32, #tpu.memory_space<vmem>>, vector<1x32x32xf32>
    %119 = vector.shape_cast %118 : vector<1x32x32xf32> to vector<32x32xf32>
    %cst_75 = arith.constant dense<0.000000e+00> : vector<8x32xf32>
    %120 = tpu.matmul %117, %119, %cst_75 {dimension_numbers = #tpu.dot_dimension_numbers<[1], [0], [0], [1], [0, 0, 1, 1], [], []>} : vector<8x32xf32>, vector<32x32xf32>, vector<8x32xf32> -> vector<8x32xf32>
    %121 = arith.addf %45, %50 : vector<8x32xf32>
    %122 = arith.addf %55, %60 : vector<8x32xf32>
    %123 = arith.addf %65, %70 : vector<8x32xf32>
    %124 = arith.addf %75, %80 : vector<8x32xf32>
    %125 = arith.addf %85, %90 : vector<8x32xf32>
    %126 = arith.addf %95, %100 : vector<8x32xf32>
    %127 = arith.addf %105, %110 : vector<8x32xf32>
    %128 = arith.addf %115, %120 : vector<8x32xf32>
    %129 = arith.addf %121, %122 : vector<8x32xf32>
    %130 = arith.addf %123, %124 : vector<8x32xf32>
    %131 = arith.addf %125, %126 : vector<8x32xf32>
    %132 = arith.addf %127, %128 : vector<8x32xf32>
    %133 = arith.addf %129, %130 : vector<8x32xf32>
    %134 = arith.addf %131, %132 : vector<8x32xf32>
    %135 = arith.addf %133, %134 : vector<8x32xf32>
    %c0_76 = arith.constant 0 : index
    %c0_77 = arith.constant 0 : index
    %136 = vector.load %arg9[%c0_76, %c0_77] : memref<1x32xf32, #tpu.memory_space<vmem>>, vector<1x32xf32>
    %137 = vector.broadcast %136 : vector<1x32xf32> to vector<8x32xf32>
    %138 = arith.addf %135, %137 : vector<8x32xf32>
    %c0_78 = arith.constant 0 : index
    %c0_79 = arith.constant 0 : index
    %139 = vector.load %arg10[%c0_78, %c0_79] : memref<32x64xf32, #tpu.memory_space<vmem>>, vector<32x64xf32>
    %cst_80 = arith.constant dense<0.000000e+00> : vector<8x64xf32>
    %140 = tpu.matmul %138, %139, %cst_80 {dimension_numbers = #tpu.dot_dimension_numbers<[1], [0], [0], [1], [0, 0, 1, 1], [], []>} : vector<8x32xf32>, vector<32x64xf32>, vector<8x64xf32> -> vector<8x64xf32>
    %c0_81 = arith.constant 0 : index
    %c0_82 = arith.constant 0 : index
    %141 = vector.load %arg11[%c0_81, %c0_82] : memref<1x64xf32, #tpu.memory_space<vmem>>, vector<1x64xf32>
    %142 = vector.broadcast %141 : vector<1x64xf32> to vector<8x64xf32>
    %143 = arith.addf %140, %142 : vector<8x64xf32>
    %cst_83 = arith.constant 0.000000e+00 : f32
    %144 = vector.broadcast %cst_83 : f32 to vector<8x64xf32>
    %145 = arith.maximumf %143, %144 : vector<8x64xf32>
    %c0_84 = arith.constant 0 : index
    %c0_85 = arith.constant 0 : index
    %146 = vector.load %arg12[%c0_84, %c0_85] : memref<64x128xf32, #tpu.memory_space<vmem>>, vector<64x128xf32>
    %cst_86 = arith.constant dense<0.000000e+00> : vector<8x128xf32>
    %147 = tpu.matmul %145, %146, %cst_86 {dimension_numbers = #tpu.dot_dimension_numbers<[1], [0], [0], [1], [0, 0, 1, 1], [], []>} : vector<8x64xf32>, vector<64x128xf32>, vector<8x128xf32> -> vector<8x128xf32>
    %c0_87 = arith.constant 0 : index
    %c0_88 = arith.constant 0 : index
    %148 = vector.load %arg13[%c0_87, %c0_88] : memref<1x128xf32, #tpu.memory_space<vmem>>, vector<1x128xf32>
    %149 = vector.broadcast %148 : vector<1x128xf32> to vector<8x128xf32>
    %150 = arith.addf %147, %149 : vector<8x128xf32>
    %c0_89 = arith.constant 0 : index
    %c0_90 = arith.constant 0 : index
    %151 = vector.load %arg14[%c0_89, %c0_90] : memref<8x128xf32, #tpu.memory_space<vmem>>, vector<8x128xf32>
    tpu.vector_store %arg14[%c0_89, %c0_90], %150 {strides = array<i32>} : memref<8x128xf32, #tpu.memory_space<vmem>>, vector<8x128xf32>,
    return
  }
  func.func @transform_0(%arg0: i32) -> (i32, i32) {
    %c0_i32 = arith.constant 0 : i32
    %c0_i32_0 = arith.constant 0 : i32
    return %arg0, %c0_i32 : i32, i32
  }
  func.func @transform_1(%arg0: i32) -> (i32, i32) {
    %c0_i32 = arith.constant 0 : i32
    %c0_i32_0 = arith.constant 0 : i32
    %c0_i32_1 = arith.constant 0 : i32
    return %c0_i32, %c0_i32_0 : i32, i32
  }
  func.func @transform_2(%arg0: i32) -> (i32, i32) {
    %c0_i32 = arith.constant 0 : i32
    %c0_i32_0 = arith.constant 0 : i32
    %c0_i32_1 = arith.constant 0 : i32
    return %c0_i32, %c0_i32_0 : i32, i32
  }
  func.func @transform_3(%arg0: i32) -> (i32, i32) {
    %c0_i32 = arith.constant 0 : i32
    %c0_i32_0 = arith.constant 0 : i32
    %c0_i32_1 = arith.constant 0 : i32
    return %c0_i32, %c0_i32_0 : i32, i32
  }
  func.func @transform_4(%arg0: i32) -> (i32, i32) {
    %c0_i32 = arith.constant 0 : i32
    %c0_i32_0 = arith.constant 0 : i32
    %c0_i32_1 = arith.constant 0 : i32
    return %c0_i32, %c0_i32_0 : i32, i32
  }
  func.func @transform_5(%arg0: i32) -> (i32, i32) {
    %c0_i32 = arith.constant 0 : i32
    %c0_i32_0 = arith.constant 0 : i32
    %c0_i32_1 = arith.constant 0 : i32
    return %c0_i32, %c0_i32_0 : i32, i32
  }
  func.func @transform_6(%arg0: i32) -> (i32, i32) {
    %c0_i32 = arith.constant 0 : i32
    %c0_i32_0 = arith.constant 0 : i32
    %c0_i32_1 = arith.constant 0 : i32
    return %c0_i32, %c0_i32_0 : i32, i32
  }
  func.func @transform_7(%arg0: i32) -> (i32, i32, i32) {
    %c0_i32 = arith.constant 0 : i32
    %c0_i32_0 = arith.constant 0 : i32
    %c0_i32_1 = arith.constant 0 : i32
    %c0_i32_2 = arith.constant 0 : i32
    return %c0_i32, %c0_i32_0, %c0_i32_1 : i32, i32, i32
  }
  func.func @transform_8(%arg0: i32) -> (i32, i32) {
    %c0_i32 = arith.constant 0 : i32
    %c0_i32_0 = arith.constant 0 : i32
    %c0_i32_1 = arith.constant 0 : i32
    return %c0_i32, %c0_i32_0 : i32, i32
  }
  func.func @transform_9(%arg0: i32) -> (i32, i32) {
    %c0_i32 = arith.constant 0 : i32
    %c0_i32_0 = arith.constant 0 : i32
    %c0_i32_1 = arith.constant 0 : i32
    return %c0_i32, %c0_i32_0 : i32, i32
  }
  func.func @transform_10(%arg0: i32) -> (i32, i32) {
    %c0_i32 = arith.constant 0 : i32
    %c0_i32_0 = arith.constant 0 : i32
    %c0_i32_1 = arith.constant 0 : i32
    return %c0_i32, %c0_i32_0 : i32, i32
  }
  func.func @transform_11(%arg0: i32) -> (i32, i32) {
    %c0_i32 = arith.constant 0 : i32
    %c0_i32_0 = arith.constant 0 : i32
    %c0_i32_1 = arith.constant 0 : i32
    return %c0_i32, %c0_i32_0 : i32, i32
  }
  func.func @transform_12(%arg0: i32) -> (i32, i32) {
    %c0_i32 = arith.constant 0 : i32
    %c0_i32_0 = arith.constant 0 : i32
    %c0_i32_1 = arith.constant 0 : i32
    return %c0_i32, %c0_i32_0 : i32, i32
  }
  func.func @transform_13(%arg0: i32) -> (i32, i32) {
    %c0_i32 = arith.constant 0 : i32
    %c0_i32_0 = arith.constant 0 : i32
    return %arg0, %c0_i32 : i32, i32
  }
}

</mosaic_0001>

<bundles_post_ra>
// kernel: tpu_custom_call.1
= control target key start
LH: loop header
LB: loop body
LE: loop exit
PB: predicated region body
PF: predicated region fallthrough
CT: control target
= control target key end

     0   :  { %vm313_vm0 = vcmask 1042432   ;;  %vm120_vm1 = vcmask 220160   ;;  %s7102_s0 = inlined_call_operand.vmem [shape: f32[512,27], index: 0, kind: input, shape index: {}]   ;;  %s7103_s1 = inlined_call_operand.vmem [shape: f32[27,32], index: 1, kind: input, shape index: {}]   ;;  %s7104_s2 = inlined_call_operand.vmem [shape: f32[1,32], index: 2, kind: input, shape index: {}]   ;;  %s7105_s3 = inlined_call_operand.vmem [shape: f32[32,4], index: 3, kind: input, shape index: {}]   ;;  %s7106_s4 = inlined_call_operand.vmem [shape: f32[4,32], index: 4, kind: input, shape index: {}]   ;;  %s7107_s5 = inlined_call_operand.vmem [shape: f32[1,32], index: 5, kind: input, shape index: {}]   ;;  %s7108_s6 = inlined_call_operand.vmem [shape: f32[16,64], index: 6, kind: input, shape index: {}]   ;;  %s7109_s7 = inlined_call_operand.vmem [shape: f32[16,32,32], index: 7, kind: input, shape index: {}]   ;;  %s7110_s8 = inlined_call_operand.vmem [shape: f32[1,32], index: 8, kind: input, shape index: {}]   ;;  %s7111_s9 = inlined_call_operand.vmem [shape: f32[32,64], index: 9, kind: input, shape index: {}]   ;;  %s7112_s10 = inlined_call_operand.vmem [shape: f32[1,64], index: 10, kind: input, shape index: {}]   ;;  %s7113_s11 = inlined_call_operand.vmem [shape: f32[64,128], index: 11, kind: input, shape index: {}]   ;;  %s7114_s12 = inlined_call_operand.vmem [shape: f32[1,128], index: 12, kind: input, shape index: {}]   ;;  %s7115_s13 = inlined_call_operand.hbm [shape: f32[8,128], index: 13, kind: output, shape index: {}]  }
   0x1   :  { %v112_v0 = vld [vmem:[%s7103_s1 + $0x18] sm:$0x7]  ;;  %v111_v1 = vld [vmem:[%s7103_s1 + $0x10] sm:$0xff]  ;;  %v45_v2 = vld [vmem:[%s7102_s0] sm:$0xff] }
   0x2   :  { %4535 = vmatprep.subr.msk.mxu0 %vm313_vm0, %v112_v0  ;;  %v110_v3 = vld [vmem:[%s7103_s1 + $0x8] sm:$0xff]  ;;  %4543 = vmatprep.mubr.msk.f32.mxu0 %vm120_vm1, %v45_v2  ;;  %v109_v4 = vld [vmem:[%s7103_s1] sm:$0xff]  ;;  %v47_v6 = vld [vmem:[%s7102_s0 + $0x10] sm:$0xff] }
   0x3   :  { %4536 = vmatpush3.msk.msra.mxu0 %vm313_vm0, %v112_v0  ;;  %v46_v5 = vld [vmem:[%s7102_s0 + $0x8] sm:$0xff]  ;;  %v48_v7 = vld [vmem:[%s7102_s0 + $0x18] sm:$0xff]  ;;  %v49_v8 = vld [vmem:[%s7102_s0 + $0x20] sm:$0xff] }
   0x4   :  { %4537 = vmatprep.subr.mxu0 %v111_v1  ;;  %v50_v9 = vld [vmem:[%s7102_s0 + $0x28] sm:$0xff]  ;;  %v51_v10 = vld [vmem:[%s7102_s0 + $0x30] sm:$0xff]  ;;  %v52_v11 = vld [vmem:[%s7102_s0 + $0x38] sm:$0xff] }
   0x5   :  { %4538 = vmatpush3.msra.mxu0 %v111_v1  ;;  %v53_v12 = vld [vmem:[%s7102_s0 + $0x40] sm:$0xff]  ;;  %v54_v13 = vld [vmem:[%s7102_s0 + $0x48] sm:$0xff] }
   0x6   :  { %4539 = vmatprep.subr.mxu0 %v110_v3 }
   0x7   :  { %4540 = vmatpush3.msra.mxu0 %v110_v3 }
   0x8   :  { %4541 = vmatprep.subr.mxu0 %v109_v4 }
   0x9   :  { %4542 = vmatpush3.msra.mxu0 %v109_v4 }
   0xa   :  { %4544 = vmatmul.mubr.msk.f32.vlgmr.msra.gmra.mxu0 %vm120_vm1, %v46_v5 }
   0xb   :  { %4546 = vmatprep.mubr.msk.f32.mxu0 %vm120_vm1, %v47_v6 }
   0xe   :  { %4547 = vmatmul.mubr.msk.f32.gmra.mxu0 %vm120_vm1, %v48_v7 }
   0xf   :  { %4549 = vmatprep.mubr.msk.f32.mxu0 %vm120_vm1, %v49_v8 }
  0x12   :  { %4550 = vmatmul.mubr.msk.f32.gmra.mxu0 %vm120_vm1, %v50_v9 }
  0x13   :  { %4552 = vmatprep.mubr.msk.f32.mxu0 %vm120_vm1, %v51_v10 }
  0x16   :  { %4553 = vmatmul.mubr.msk.f32.gmra.mxu0 %vm120_vm1, %v52_v11 }
  0x17   :  { %4555 = vmatprep.mubr.msk.f32.mxu0 %vm120_vm1, %v53_v12 }
  0x18   :  { %18 = vsyncpa [#allocation3], 0  ;;  %v55_v14 = vld [vmem:[%s7102_s0 + $0x50] sm:$0xff]  ;;  %v56_v15 = vld [vmem:[%s7102_s0 + $0x58] sm:$0xff]  ;;  %vm702_vm2 = vcmask 261120   ;;  %vm5062_vm3 = vmmov 0  }
  0x19   :  { %v57_v16 = vld [vmem:[%s7102_s0 + $0x60] sm:$0xff]  ;;  %v58_v17 = vld [vmem:[%s7102_s0 + $0x68] sm:$0xff]  ;;  %v59_v18 = vld [vmem:[%s7102_s0 + $0x70] sm:$0xff]  ;;  %vm1115_vm4 = vcmask 1041409   ;;  %vm1117_vm5 = vcmask 1042434   ;;  %vm1119_vm6 = vcmask 1043459  }
  0x1a   :  { %4556 = vmatmul.mubr.msk.f32.gmra.mxu0 %vm120_vm1, %v54_v13  ;;  %v60_v19 = vld [vmem:[%s7102_s0 + $0x78] sm:$0xff]  ;;  %v61_v20 = vld [vmem:[%s7102_s0 + $0x80] sm:$0xff]  ;;  %v62_v21 = vld [vmem:[%s7102_s0 + $0x88] sm:$0xff]  ;;  %vm1121_vm7 = vcmask 1044484   ;;  %vm1123_vm8 = vcmask 1045509   ;;  %vm1125_vm9 = vcmask 1046534  }
  0x1b   :  { %4558 = vmatprep.mubr.msk.f32.mxu0 %vm120_vm1, %v55_v14  ;;  %v63_v22 = vld [vmem:[%s7102_s0 + $0x90] sm:$0xff]  ;;  %v64_v23 = vld [vmem:[%s7102_s0 + $0x98] sm:$0xff]  ;;  %v65_v24 = vld [vmem:[%s7102_s0 + $0xa0] sm:$0xff]  ;;  %vm1127_vm10 = vcmask 1047559   ;;  %vm1298_vm11 = vcmask 1043456   ;;  %vm1294_vm12 = vcmask 31744  }
  0x1c   :  { %v66_v25 = vld [vmem:[%s7102_s0 + $0xa8] sm:$0xff]  ;;  %v67_v26 = vld [vmem:[%s7102_s0 + $0xb0] sm:$0xff]  ;;  %v68_v27 = vld [vmem:[%s7102_s0 + $0xb8] sm:$0xff]  ;;  %vm1828_vm13 = vcmask 523264   ;;  %s5064_s27 = smov [#allocation2]  }
  0x1d   :  { %v69_v28 = vld [vmem:[%s7102_s0 + $0xc0] sm:$0xff]  ;;  %v70_v29 = vld [vmem:[%s7102_s0 + $0xc8] sm:$0xff]  ;;  %v71_v30 = vld [vmem:[%s7102_s0 + $0xd0] sm:$0xff] }
  0x1e   :  { %4559 = vmatmul.mubr.msk.f32.gmra.mxu0 %vm120_vm1, %v56_v15  ;;  %v72_v31 = vld [vmem:[%s7102_s0 + $0xd8] sm:$0xff]  ;;  %v73_v32 = vld [vmem:[%s7102_s0 + $0xe0] sm:$0xff]  ;;  %v74_v33 = vld [vmem:[%s7102_s0 + $0xe8] sm:$0xff] }
  0x1f   :  { %4561 = vmatprep.mubr.msk.f32.mxu0 %vm120_vm1, %v57_v16  ;;  %v75_v34 = vld [vmem:[%s7102_s0 + $0xf0] sm:$0xff]  ;;  %v76_v35 = vld [vmem:[%s7102_s0 + $0xf8] sm:$0xff]  ;;  %v77_v36 = vld [vmem:[%s7102_s0 + $0x100] sm:$0xff]  ;;  %v7116_v16 = vmov 0.0  }
  0x20   :  { %v78_v37 = vld [vmem:[%s7102_s0 + $0x108] sm:$0xff]  ;;  %v79_v38 = vld [vmem:[%s7102_s0 + $0x110] sm:$0xff]  ;;  %v80_v39 = vld [vmem:[%s7102_s0 + $0x118] sm:$0xff]  ;;  %4639 = vmatprep.subr.mxu1 %v7116_v16  ;;  %4647 = vmatprep.mubr.msk.f32.mxu1 %vm5062_vm3, %v7116_v16 }
  0x21   :  { %v81_v40 = vld [vmem:[%s7102_s0 + $0x120] sm:$0xff]  ;;  %v82_v41 = vld [vmem:[%s7102_s0 + $0x128] sm:$0xff]  ;;  %v83_v42 = vld [vmem:[%s7102_s0 + $0x130] sm:$0xff] }
  0x22   :  { %4562 = vmatmul.mubr.msk.f32.gmra.mxu0 %vm120_vm1, %v58_v17  ;;  %v84_v43 = vld [vmem:[%s7102_s0 + $0x138] sm:$0xff]  ;;  %v85_v44 = vld [vmem:[%s7102_s0 + $0x140] sm:$0xff]  ;;  %v86_v45 = vld [vmem:[%s7102_s0 + $0x148] sm:$0xff] }
  0x23   :  { %4564 = vmatprep.mubr.msk.f32.mxu0 %vm120_vm1, %v59_v18  ;;  %v87_v46 = vld [vmem:[%s7102_s0 + $0x150] sm:$0xff]  ;;  %v88_v47 = vld [vmem:[%s7102_s0 + $0x158] sm:$0xff]  ;;  %v89_v48 = vld [vmem:[%s7102_s0 + $0x160] sm:$0xff] }
  0x24   :  { %v90_v49 = vld [vmem:[%s7102_s0 + $0x168] sm:$0xff]  ;;  %v91_v50 = vld [vmem:[%s7102_s0 + $0x170] sm:$0xff]  ;;  %v92_v51 = vld [vmem:[%s7102_s0 + $0x178] sm:$0xff] }
  0x25   :  { %v93_v52 = vld [vmem:[%s7102_s0 + $0x180] sm:$0xff]  ;;  %v94_v53 = vld [vmem:[%s7102_s0 + $0x188] sm:$0xff]  ;;  %v95_v54 = vld [vmem:[%s7102_s0 + $0x190] sm:$0xff] }
  0x26   :  { %4565 = vmatmul.mubr.msk.f32.gmra.mxu0 %vm120_vm1, %v60_v19  ;;  %v96_v55 = vld [vmem:[%s7102_s0 + $0x198] sm:$0xff]  ;;  %v97_v56 = vld [vmem:[%s7102_s0 + $0x1a0] sm:$0xff]  ;;  %v98_v57 = vld [vmem:[%s7102_s0 + $0x1a8] sm:$0xff] }
  0x27   :  { %4567 = vmatprep.mubr.msk.f32.mxu0 %vm120_vm1, %v61_v20  ;;  %v99_v58 = vld [vmem:[%s7102_s0 + $0x1b0] sm:$0xff]  ;;  %v100_v59 = vld [vmem:[%s7102_s0 + $0x1b8] sm:$0xff]  ;;  %v101_v60 = vld [vmem:[%s7102_s0 + $0x1c0] sm:$0xff] }
  0x28   :  { %v102_v61 = vld [vmem:[%s7102_s0 + $0x1c8] sm:$0xff]  ;;  %v103_v62 = vld [vmem:[%s7102_s0 + $0x1d0] sm:$0xff]  ;;  %v104_v63 = vld [vmem:[%s7102_s0 + $0x1d8] sm:$0xff] }
  0x29   :  { %v105_v0 = vld [vmem:[%s7102_s0 + $0x1e0] sm:$0xff]  ;;  %v106_v1 = vld [vmem:[%s7102_s0 + $0x1e8] sm:$0xff]  ;;  %v107_v2 = vld [vmem:[%s7102_s0 + $0x1f0] sm:$0xff] }
  0x2a   :  { %4568 = vmatmul.mubr.msk.f32.gmra.mxu0 %vm120_vm1, %v62_v21  ;;  %v108_v3 = vld [vmem:[%s7102_s0 + $0x1f8] sm:$0xff]  ;;  %v5406_v7 = vld [vmem:[%s7104_s2] ss:$0 sm:$0xff]  ;;  %v1105_v18 = vld [vmem:[%s7105_s3 + $0x10] sm:$0xff] }
  0x2b   :  { %4570 = vmatprep.mubr.msk.f32.mxu0 %vm120_vm1, %v63_v22  ;;  %v1106_v14 = vld [vmem:[%s7105_s3 + $0x18] sm:$0xff]  ;;  %v1104_v22 = vld [vmem:[%s7105_s3 + $0x8] sm:$0xff] }
  0x2c   :  { %4640 = vmatpush3.msra.mxu1 %v1106_v14 }
  0x2d   :  { %4641 = vmatprep.subr.mxu1 %v7116_v16 }
  0x2e   :  { %4571 = vmatmul.mubr.msk.f32.gmra.mxu0 %vm120_vm1, %v64_v23  ;;  %4642 = vmatpush3.msra.mxu1 %v1105_v18 }
  0x2f   :  { %4573 = vmatprep.mubr.msk.f32.mxu0 %vm120_vm1, %v65_v24  ;;  %4643 = vmatprep.subr.mxu1 %v7116_v16 }
  0x30   :  { %4644 = vmatpush3.msra.mxu1 %v1104_v22 }
  0x31   :  { %4645 = vmatprep.subr.mxu1 %v7116_v16 }
  0x32   :  { %4574 = vmatmul.mubr.msk.f32.gmra.mxu0 %vm120_vm1, %v66_v25 }
  0x33   :  { %4576 = vmatprep.mubr.msk.f32.mxu0 %vm120_vm1, %v67_v26 }
  0x36   :  { %4577 = vmatmul.mubr.msk.f32.gmra.mxu0 %vm120_vm1, %v68_v27 }
  0x37   :  { %4579 = vmatprep.mubr.msk.f32.mxu0 %vm120_vm1, %v69_v28  ;;  %v1103_v28 = vld [vmem:[%s7105_s3] sm:$0xff] }
  0x38   :  { %4646 = vmatpush3.msra.mxu1 %v1103_v28 }
  0x39   :  { %4650 = vmatprep.subr.mxu1 %v7116_v16 }
  0x3a   :  { %4580 = vmatmul.mubr.msk.f32.gmra.mxu0 %vm120_vm1, %v70_v29 }
  0x3b   :  { %4582 = vmatprep.mubr.msk.f32.mxu0 %vm120_vm1, %v71_v30 }
  0x3e   :  { %4583 = vmatmul.mubr.msk.f32.gmra.mxu0 %vm120_vm1, %v72_v31 }
  0x3f   :  { %4585 = vmatprep.mubr.msk.f32.mxu0 %vm120_vm1, %v73_v32 }
  0x42   :  { %4586 = vmatmul.mubr.msk.f32.gmra.mxu0 %vm120_vm1, %v74_v33 }
  0x43   :  { %4588 = vmatprep.mubr.msk.f32.mxu0 %vm120_vm1, %v75_v34 }
  0x46   :  { %4589 = vmatmul.mubr.msk.f32.gmra.mxu0 %vm120_vm1, %v76_v35 }
  0x47   :  { %4591 = vmatprep.mubr.msk.f32.mxu0 %vm120_vm1, %v77_v36 }
  0x4a   :  { %4592 = vmatmul.mubr.msk.f32.gmra.mxu0 %vm120_vm1, %v78_v37 }
  0x4b   :  { %4594 = vmatprep.mubr.msk.f32.mxu0 %vm120_vm1, %v79_v38 }
  0x4e   :  { %4595 = vmatmul.mubr.msk.f32.gmra.mxu0 %vm120_vm1, %v80_v39 }
  0x4f   :  { %4597 = vmatprep.mubr.msk.f32.mxu0 %vm120_vm1, %v81_v40 }
  0x52   :  { %4598 = vmatmul.mubr.msk.f32.gmra.mxu0 %vm120_vm1, %v82_v41 }
  0x53   :  { %4600 = vmatprep.mubr.msk.f32.mxu0 %vm120_vm1, %v83_v42 }
  0x56   :  { %4601 = vmatmul.mubr.msk.f32.gmra.mxu0 %vm120_vm1, %v84_v43 }
  0x57   :  { %4603 = vmatprep.mubr.msk.f32.mxu0 %vm120_vm1, %v85_v44 }
  0x5a   :  { %4604 = vmatmul.mubr.msk.f32.gmra.mxu0 %vm120_vm1, %v86_v45 }
  0x5b   :  { %4606 = vmatprep.mubr.msk.f32.mxu0 %vm120_vm1, %v87_v46 }
  0x5e   :  { %4607 = vmatmul.mubr.msk.f32.gmra.mxu0 %vm120_vm1, %v88_v47 }
  0x5f   :  { %4609 = vmatprep.mubr.msk.f32.mxu0 %vm120_vm1, %v89_v48 }
  0x62   :  { %4610 = vmatmul.mubr.msk.f32.gmra.mxu0 %vm120_vm1, %v90_v49 }
  0x63   :  { %4612 = vmatprep.mubr.msk.f32.mxu0 %vm120_vm1, %v91_v50 }
  0x66   :  { %4613 = vmatmul.mubr.msk.f32.gmra.mxu0 %vm120_vm1, %v92_v51 }
  0x67   :  { %4615 = vmatprep.mubr.msk.f32.mxu0 %vm120_vm1, %v93_v52 }
  0x6a   :  { %4616 = vmatmul.mubr.msk.f32.gmra.mxu0 %vm120_vm1, %v94_v53 }
  0x6b   :  { %4618 = vmatprep.mubr.msk.f32.mxu0 %vm120_vm1, %v95_v54 }
  0x6e   :  { %4619 = vmatmul.mubr.msk.f32.gmra.mxu0 %vm120_vm1, %v96_v55 }
  0x6f   :  { %4621 = vmatprep.mubr.msk.f32.mxu0 %vm120_vm1, %v97_v56 }
  0x72   :  { %4622 = vmatmul.mubr.msk.f32.gmra.mxu0 %vm120_vm1, %v98_v57 }
  0x73   :  { %4624 = vmatprep.mubr.msk.f32.mxu0 %vm120_vm1, %v99_v58 }
  0x76   :  { %4625 = vmatmul.mubr.msk.f32.gmra.mxu0 %vm120_vm1, %v100_v59 }
  0x77   :  { %4627 = vmatprep.mubr.msk.f32.mxu0 %vm120_vm1, %v101_v60 }
  0x7a   :  { %4628 = vmatmul.mubr.msk.f32.gmra.mxu0 %vm120_vm1, %v102_v61 }
  0x7b   :  { %4630 = vmatprep.mubr.msk.f32.mxu0 %vm120_vm1, %v103_v62 }
  0x7e   :  { %4631 = vmatmul.mubr.msk.f32.gmra.mxu0 %vm120_vm1, %v104_v63 }
  0x7f   :  { %4633 = vmatprep.mubr.msk.f32.mxu0 %vm120_vm1, %v105_v0 }
  0x82   :  { %4634 = vmatmul.mubr.msk.f32.gmra.mxu0 %vm120_vm1, %v106_v1 }
  0x83   :  { %4636 = vmatprep.mubr.msk.f32.mxu0 %vm120_vm1, %v107_v2 }
  0x86   :  { %4637 = vmatmul.mubr.msk.f32.gmra.mxu0 %vm120_vm1, %v108_v3 }
  0xca   :  { %v4545_v4 = vpop.f32.mrf.mxu0 }
  0xcb   :  { %v5412_v11 = vadd.f32 %v4545_v4, %v5406_v7 }
  0xcc   :  { %v383_v5 = vpop.f32.mrf.mxu0 }
  0xcd   :  { %v5409_v9 = vadd.f32 %v5406_v7, %v383_v5  ;;  %v704_v19 = vsel %vm702_vm2, %v5412_v11, 0.0  ;;  %v872_v25 = vmul.f32 %v5412_v11, %v5412_v11 }
  0xce   :  { %v4548_v6 = vpop.f32.mrf.mxu0 }
  0xcf   :  { %v703_v15 = vsel %vm702_vm2, %v5409_v9, 0.0  ;;  %v871_v20 = vmul.f32 %v5409_v9, %v5409_v9  ;;  %v5441_v26 = vadd.f32 %v4548_v6, %v5406_v7  ;;  %v936_v34 = vsel %vm702_vm2, %v872_v25, 0.0 }
  0xd0   :  { %v393_v8 = vpop.f32.mrf.mxu0  ;;  %v705_v23 = vadd.f32 %v704_v19, %v703_v15 }
  0xd1   :  { %v5415_v12 = vadd.f32 %v5406_v7, %v393_v8  ;;  %v935_v31 = vsel %vm702_vm2, %v871_v20, 0.0  ;;  %v708_v35 = vsel %vm702_vm2, %v5441_v26, 0.0  ;;  %v874_v40 = vmul.f32 %v5441_v26, %v5441_v26 }
  0xd2   :  { %v4551_v10 = vpop.f32.mrf.mxu0  ;;  %v937_v37 = vadd.f32 %v936_v34, %v935_v31 }
  0xd3   :  { %v706_v21 = vsel %vm702_vm2, %v5415_v12, 0.0  ;;  %v873_v27 = vmul.f32 %v5415_v12, %v5415_v12  ;;  %v5464_v44 = vadd.f32 %v4551_v10, %v5406_v7  ;;  %v940_v48 = vsel %vm702_vm2, %v874_v40, 0.0 }
  0xd4   :  { %v403_v13 = vpop.f32.mrf.mxu0  ;;  %v707_v29 = vadd.f32 %v706_v21, %v705_v23 }
  0xd5   :  { %v5451_v32 = vadd.f32 %v5406_v7, %v403_v13  ;;  %v938_v36 = vsel %vm702_vm2, %v873_v27, 0.0  ;;  %v712_v52 = vsel %vm702_vm2, %v5464_v44, 0.0  ;;  %v876_v57 = vmul.f32 %v5464_v44, %v5464_v44 }
  0xd6   :  { %v4554_v17 = vpop.f32.mrf.mxu0  ;;  %v709_v38 = vadd.f32 %v708_v35, %v707_v29  ;;  %v939_v42 = vadd.f32 %v938_v36, %v937_v37 }
  0xd7   :  { %v710_v41 = vsel %vm702_vm2, %v5451_v32, 0.0  ;;  %v875_v45 = vmul.f32 %v5451_v32, %v5451_v32  ;;  %v5491_v63 = vadd.f32 %v4554_v17, %v5406_v7  ;;  %v944_v4 = vsel %vm702_vm2, %v876_v57, 0.0 }
  0xd8   :  { %v413_v24 = vpop.f32.mrf.mxu0  ;;  %v711_v46 = vadd.f32 %v710_v41, %v709_v38  ;;  %v941_v50 = vadd.f32 %v940_v48, %v939_v42 }
  0xd9   :  { %v5470_v49 = vadd.f32 %v5406_v7, %v413_v24  ;;  %v942_v53 = vsel %vm702_vm2, %v875_v45, 0.0  ;;  %v716_v15 = vsel %vm702_vm2, %v5491_v63, 0.0  ;;  %v878_v24 = vmul.f32 %v5491_v63, %v5491_v63 }
  0xda   :  { %v4557_v30 = vpop.f32.mrf.mxu0  ;;  %v713_v55 = vadd.f32 %v712_v52, %v711_v46  ;;  %v943_v61 = vadd.f32 %v942_v53, %v941_v50 }
  0xdb   :  { %v714_v58 = vsel %vm702_vm2, %v5470_v49, 0.0  ;;  %v5485_v59 = vadd.f32 %v4557_v30, %v5406_v7  ;;  %v877_v0 = vmul.f32 %v5470_v49, %v5470_v49  ;;  %v948_v37 = vsel %vm702_vm2, %v878_v24, 0.0 }
  0xdc   :  { %v423_v33 = vpop.f32.mrf.mxu0  ;;  %v715_v2 = vadd.f32 %v714_v58, %v713_v55  ;;  %v945_v8 = vadd.f32 %v944_v4, %v943_v61 }
  0xdd   :  { %v5476_v54 = vadd.f32 %v5406_v7, %v423_v33  ;;  %7161 = vst [vmem:[#allocation6_spill] sm:$0xff] %v5485_v59  ;;  %v725_v5 = vsel %vm702_vm2, %v5485_v59, 0.0  ;;  %v946_v17 = vsel %vm702_vm2, %v877_v0, 0.0  ;;  %v880_v20 = vmul.f32 %v5485_v59, %v5485_v59 }
  0xde   :  { %v4560_v39 = vpop.f32.mrf.mxu0  ;;  %v717_v19 = vadd.f32 %v716_v15, %v715_v2  ;;  %v947_v27 = vadd.f32 %v946_v17, %v945_v8 }
  0xdf   :  { %7160 = vst [vmem:[#allocation5_spill] sm:$0xff] %v5476_v54  ;;  %v724_v1 = vsel %vm702_vm2, %v5476_v54, 0.0  ;;  %v879_v13 = vmul.f32 %v5476_v54, %v5476_v54  ;;  %v5508_v18 = vadd.f32 %v4560_v39, %v5406_v7  ;;  %v957_v33 = vsel %vm702_vm2, %v880_v20, 0.0 }
  0xe0   :  { %v433_v43 = vpop.f32.mrf.mxu0  ;;  %v726_v10 = vadd.f32 %v725_v5, %v724_v1  ;;  %v718_v31 = vrot.slane %v717_v19, 4  ;;  %v949_v40 = vadd.f32 %v948_v37, %v947_v27 }
  0xe1   :  { %v5488_v60 = vadd.f32 %v5406_v7, %v433_v43  ;;  %v956_v28 = vsel %vm702_vm2, %v879_v13, 0.0  ;;  %v729_v30 = vsel %vm702_vm2, %v5508_v18, 0.0  ;;  %v882_v41 = vmul.f32 %v5508_v18, %v5508_v18 }
  0xe2   :  { %v4563_v47 = vpop.f32.mrf.mxu0  ;;  %v958_v38 = vadd.f32 %v957_v33, %v956_v28  ;;  %v719_v48 = vadd.f32 %v718_v31, %v717_v19 }
  0xe3   :  { %v727_v6 = vsel %vm702_vm2, %v5488_v60, 0.0  ;;  %v881_v22 = vmul.f32 %v5488_v60, %v5488_v60  ;;  %v5532_v45 = vadd.f32 %v4563_v47, %v5406_v7  ;;  %v950_v47 = vrot.slane %v949_v40, 4 }
  0xe4   :  { %v443_v51 = vpop.f32.mrf.mxu0  ;;  %v728_v21 = vadd.f32 %v727_v6, %v726_v10  ;;  %v961_v58 = vsel %vm702_vm2, %v882_v41, 0.0  ;;  %v720_v4 = vrot.slane %v719_v48, 2 }
  0xe5   :  { %v5517_v25 = vadd.f32 %v5406_v7, %v443_v51  ;;  %v959_v34 = vsel %vm702_vm2, %v881_v22, 0.0  ;;  %v733_v0 = vsel %vm702_vm2, %v5532_v45, 0.0  ;;  %v884_v15 = vmul.f32 %v5532_v45, %v5532_v45 }
  0xe6   :  { %v5478_v56 = vpop.f32.mrf.mxu0  ;;  %v730_v35 = vadd.f32 %v729_v30, %v728_v21  ;;  %v960_v43 = vadd.f32 %v959_v34, %v958_v38  ;;  %v721_v34 = vadd.f32 %v720_v4, %v719_v48 }
  0xe7   :  { %v731_v39 = vsel %vm702_vm2, %v5517_v25, 0.0  ;;  %v883_v51 = vmul.f32 %v5517_v25, %v5517_v25  ;;  %v5568_v17 = vadd.f32 %v5478_v56, %v5406_v7  ;;  %v965_v37 = vsel %vm702_vm2, %v884_v15, 0.0 }
  0xe8   :  { %v453_v62 = vpop.f32.mrf.mxu0  ;;  %v732_v50 = vadd.f32 %v731_v39, %v730_v35  ;;  %v962_v1 = vadd.f32 %v961_v58, %v960_v43 }
  0xe9   :  { %v5542_v53 = vadd.f32 %v5406_v7, %v453_v62  ;;  %v963_v62 = vsel %vm702_vm2, %v883_v51, 0.0  ;;  %v886_v4 = vmul.f32 %v5568_v17, %v5568_v17 }
  0xea   :  { %v4569_v3 = vpop.f32.mrf.mxu0  ;;  %v734_v5 = vadd.f32 %v733_v0, %v732_v50  ;;  %v964_v21 = vadd.f32 %v963_v62, %v962_v1  ;;  %v722_v1 = vrot.slane %v721_v34, 1 }
  0xeb   :  { %v5545_v55 = vadd.f32 %v4569_v3, %v5406_v7  ;;  %v735_v6 = vsel %vm702_vm2, %v5542_v53, 0.0 }
  0xec   :  { %v463_v14 = vpop.f32.mrf.mxu0  ;;  %v736_v28 = vadd.f32 %v735_v6, %v734_v5  ;;  %v966_v39 = vadd.f32 %v965_v37, %v964_v21 }
  0xed   :  { %v5535_v46 = vadd.f32 %v5406_v7, %v463_v14  ;;  %7163 = vst [vmem:[#allocation8_spill] sm:$0xff] %v5545_v55  ;;  %v746_v8 = vsel %vm702_vm2, %v5545_v55, 0.0  ;;  %v951_v14 = vadd.f32 %v950_v47, %v949_v40  ;;  %v888_v22 = vmul.f32 %v5545_v55, %v5545_v55 }
  0xee   :  { %v4572_v23 = vpop.f32.mrf.mxu0 }
  0xef   :  { %7162 = vst [vmem:[#allocation7_spill] sm:$0xff] %v5535_v46  ;;  %v745_v2 = vsel %vm702_vm2, %v5535_v46, 0.0  ;;  %v887_v10 = vmul.f32 %v5535_v46, %v5535_v46  ;;  %v5573_v24 = vadd.f32 %v4572_v23, %v5406_v7  ;;  %v952_v35 = vrot.slane %v951_v14, 2 }
  0xf0   :  { %v473_v29 = vpop.f32.mrf.mxu0  ;;  %v747_v19 = vadd.f32 %v746_v8, %v745_v2  ;;  %v737_v23 = vsel %vm702_vm2, %v5568_v17, 0.0  ;;  %v978_v40 = vsel %vm702_vm2, %v888_v22, 0.0 }
  0xf1   :  { %v5548_v57 = vadd.f32 %v5406_v7, %v473_v29  ;;  %7165 = vst [vmem:[#allocation10_spill] sm:$0xff] %v5573_v24  ;;  %v885_v29 = vmul.f32 %v5542_v53, %v5542_v53  ;;  %v977_v56 = vsel %vm702_vm2, %v887_v10, 0.0  ;;  %v750_v41 = vsel %vm702_vm2, %v5573_v24, 0.0 }
  0xf2   :  { %v5524_v36 = vpop.f32.mrf.mxu0  ;;  %v738_v50 = vadd.f32 %v737_v23, %v736_v28  ;;  %v979_v51 = vadd.f32 %v978_v40, %v977_v56  ;;  %v890_v58 = vmul.f32 %v5573_v24, %v5573_v24  ;;  %v5597_v2 = vadd.f32 %v952_v35, %v951_v14 }
  0xf3   :  { %7164 = vst [vmem:[#allocation9_spill] sm:$0xff] %v5548_v57  ;;  %v748_v13 = vsel %vm702_vm2, %v5548_v57, 0.0  ;;  %v889_v27 = vmul.f32 %v5548_v57, %v5548_v57  ;;  %v5603_v8 = vadd.f32 %v5524_v36, %v5406_v7  ;;  %v5622_v28 = vadd.f32 %v722_v1, %v721_v34 }
  0xf4   :  { %v483_v42 = vpop.f32.mrf.mxu0  ;;  %v749_v30 = vadd.f32 %v748_v13, %v747_v19  ;;  %v739_v15 = vrot.slane %v738_v50, 4  ;;  %v982_v21 = vsel %vm702_vm2, %v890_v58, 0.0 }
  0xf5   :  { %v5581_v33 = vadd.f32 %v5406_v7, %v483_v42  ;;  %v980_v43 = vsel %vm702_vm2, %v889_v27, 0.0  ;;  %v967_v42 = vsel %vm702_vm2, %v885_v29, 0.0  ;;  %7167 = vst [vmem:[#allocation12_spill] sm:$0xff] %v5603_v8  ;;  %v969_v29 = vsel %vm702_vm2, %v886_v4, 0.0 }
  0xf6   :  { %v5539_v52 = vpop.f32.mrf.mxu0  ;;  %v751_v48 = vadd.f32 %v750_v41, %v749_v30  ;;  %v981_v62 = vadd.f32 %v980_v43, %v979_v51  ;;  %v968_v6 = vadd.f32 %v967_v42, %v966_v39  ;;  %v5635_v23 = vadd.f32 %v739_v15, %v738_v50 }
  0xf7   :  { %7166 = vst [vmem:[#allocation11_spill] sm:$0xff] %v5581_v33  ;;  %v752_v0 = vsel %vm702_vm2, %v5581_v33, 0.0  ;;  %v891_v10 = vmul.f32 %v5581_v33, %v5581_v33  ;;  %v892_v34 = vmul.f32 %v5603_v8, %v5603_v8 }
  0xf8   :  { %v493_v61 = vpop.f32.mrf.mxu0  ;;  %v753_v19 = vadd.f32 %v752_v0, %v751_v48  ;;  %v983_v30 = vadd.f32 %v982_v21, %v981_v62  ;;  %v5628_v35 = vadd.f32 %v969_v29, %v968_v6 }
  0xf9   :  { %v5614_v22 = vadd.f32 %v5406_v7, %v493_v61  ;;  %v754_v61 = vsel %vm702_vm2, %v5603_v8, 0.0  ;;  %v986_v15 = vsel %vm702_vm2, %v892_v34, 0.0 }
  0xfa   :  { %v4581_v3 = vpop.f32.mrf.mxu0  ;;  %v755_v39 = vadd.f32 %v754_v61, %v753_v19  ;;  %v971_v1 = vrot.slane %v5628_v35, 4 }
  0xfb   :  { %7169 = vst [vmem:[#allocation14_spill] sm:$0xff] %v5614_v22  ;;  %v5617_v27 = vadd.f32 %v4581_v3, %v5406_v7  ;;  %v984_v3 = vsel %vm702_vm2, %v891_v10, 0.0  ;;  %v756_v41 = vsel %vm702_vm2, %v5614_v22, 0.0  ;;  %v893_v48 = vmul.f32 %v5614_v22, %v5614_v22 }
  0xfc   :  { %v503_v20 = vpop.f32.mrf.mxu0  ;;  %v985_v51 = vadd.f32 %v984_v3, %v983_v30  ;;  %v757_v19 = vadd.f32 %v756_v41, %v755_v39 }
  0xfd   :  { %v5608_v13 = vadd.f32 %v5406_v7, %v503_v20  ;;  %7170 = vst [vmem:[#allocation15_spill] sm:$0xff] %v5617_v27  ;;  %v767_v43 = vsel %vm702_vm2, %v5617_v27, 0.0  ;;  %v988_v34 = vsel %vm702_vm2, %v893_v48, 0.0 }
  0xfe   :  { %v4584_v31 = vpop.f32.mrf.mxu0 }
  0xff   :  { %7168 = vst [vmem:[#allocation13_spill] sm:$0xff] %v5608_v13  ;;  %v766_v37 = vsel %vm702_vm2, %v5608_v13, 0.0  ;;  %v895_v42 = vmul.f32 %v5608_v13, %v5608_v13  ;;  %v5657_v4 = vadd.f32 %v4584_v31, %v5406_v7 }
 0x100   :  { %v513_v38 = vpop.f32.mrf.mxu0  ;;  %v768_v58 = vadd.f32 %v767_v43, %v766_v37  ;;  %v987_v43 = vadd.f32 %v986_v15, %v985_v51 }
 0x101   :  { %v5620_v36 = vadd.f32 %v5406_v7, %v513_v38  ;;  %v5641_v38 = vadd.f32 %v5539_v52, %v5406_v7  ;;  %v896_v52 = vmul.f32 %v5617_v27, %v5617_v27  ;;  %7173 = vst [vmem:[#allocation18_spill] sm:$0xff] %v5657_v4  ;;  %v998_v61 = vsel %vm702_vm2, %v895_v42, 0.0 }
 0x102   :  { %v5591_v47 = vpop.f32.mrf.mxu0  ;;  %v898_v51 = vmul.f32 %v5657_v4, %v5657_v4  ;;  %v989_v20 = vadd.f32 %v988_v34, %v987_v43 }
 0x103   :  { %7171 = vst [vmem:[#allocation16_spill] sm:$0xff] %v5620_v36  ;;  %7172 = vst [vmem:[#allocation17_spill] sm:$0xff] %v5641_v38  ;;  %v769_v50 = vsel %vm702_vm2, %v5620_v36, 0.0  ;;  %v897_v62 = vmul.f32 %v5620_v36, %v5620_v36  ;;  %v758_v30 = vsel %vm702_vm2, %v5641_v38, 0.0  ;;  %v894_v37 = vmul.f32 %v5641_v38, %v5641_v38 }
 0x104   :  { %v523_v5 = vpop.f32.mrf.mxu0  ;;  %v770_v21 = vadd.f32 %v769_v50, %v768_v58  ;;  %v999_v39 = vsel %vm702_vm2, %v896_v52, 0.0  ;;  %v771_v50 = vsel %vm702_vm2, %v5657_v4, 0.0  ;;  %v759_v58 = vadd.f32 %v758_v30, %v757_v19 }
 0x105   :  { %v5670_v31 = vadd.f32 %v5406_v7, %v523_v5  ;;  %v1001_v42 = vsel %vm702_vm2, %v897_v62, 0.0  ;;  %v5699_v30 = vadd.f32 %v5591_v47, %v5406_v7  ;;  %v990_v43 = vsel %vm702_vm2, %v894_v37, 0.0 }
 0x106   :  { %v5610_v14 = vpop.f32.mrf.mxu0  ;;  %v772_v48 = vadd.f32 %v771_v50, %v770_v21  ;;  %v760_v34 = vrot.slane %v759_v58, 4  ;;  %v5721_v36 = vadd.f32 %v971_v1, %v5628_v35  ;;  %v991_v4 = vadd.f32 %v990_v43, %v989_v20 }
 0x107   :  { %7175 = vst [vmem:[#allocation20_spill] sm:$0xff] %v5670_v31  ;;  %v773_v52 = vsel %vm702_vm2, %v5670_v31, 0.0  ;;  %7178 = vst [vmem:[#allocation23_spill] sm:$0xff] %v5699_v30  ;;  %v775_v37 = vsel %vm702_vm2, %v5699_v30, 0.0  ;;  %v900_v20 = vmul.f32 %v5699_v30, %v5699_v30 }
 0x108   :  { %v5626_v56 = vpop.f32.mrf.mxu0 }
 0x10a   :  { %v4593_v40 = vpop.f32.mrf.mxu0 }
 0x10b   :  { %v5673_v3 = vadd.f32 %v4593_v40, %v5406_v7 }
 0x10c   :  { %v543_v0 = vpop.f32.mrf.mxu0 }
 0x10d   :  { %v5662_v6 = vadd.f32 %v5406_v7, %v543_v0  ;;  %7176 = vst [vmem:[#allocation21_spill] sm:$0xff] %v5673_v3  ;;  %v1000_v0 = vadd.f32 %v999_v39, %v998_v61  ;;  %v788_v16 = vsel %vm702_vm2, %v5673_v3, 0.0  ;;  %v899_v39 = vmul.f32 %v5670_v31, %v5670_v31 }
 0x10e   :  { %v4596_v29 = vpop.f32.mrf.mxu0  ;;  %v904_v50 = vmul.f32 %v5673_v3, %v5673_v3 }
 0x10f   :  { %7174 = vst [vmem:[#allocation19_spill] sm:$0xff] %v5662_v6  ;;  %v787_v5 = vsel %vm702_vm2, %v5662_v6, 0.0  ;;  %v903_v62 = vmul.f32 %v5662_v6, %v5662_v6  ;;  %v1002_v19 = vadd.f32 %v1001_v42, %v1000_v0  ;;  %v5706_v10 = vadd.f32 %v4596_v29, %v5406_v7 }
 0x110   :  { %v553_v41 = vpop.f32.mrf.mxu0  ;;  %v789_v21 = vadd.f32 %v788_v16, %v787_v5  ;;  %v774_v42 = vadd.f32 %v773_v52, %v772_v48  ;;  %v1003_v16 = vsel %vm702_vm2, %v898_v51, 0.0  ;;  %v5714_v5 = vadd.f32 %v5406_v7, %v5626_v56 }
 0x111   :  { %v5685_v40 = vadd.f32 %v5406_v7, %v553_v41  ;;  %7179 = vst [vmem:[#allocation24_spill] sm:$0xff] %v5706_v10  ;;  %v1019_v27 = vsel %vm702_vm2, %v903_v62, 0.0  ;;  %v1004_v48 = vadd.f32 %v1003_v16, %v1002_v19  ;;  %v1005_v51 = vsel %vm702_vm2, %v899_v39, 0.0 }
 0x112   :  { %v4599_v15 = vpop.f32.mrf.mxu0  ;;  %7180 = vst [vmem:[#allocation25_spill] sm:$0xff] %v5714_v5  ;;  %v792_v56 = vsel %vm702_vm2, %v5706_v10, 0.0  ;;  %v777_v19 = vsel %vm702_vm2, %v5714_v5, 0.0  ;;  %v906_v39 = vmul.f32 %v5706_v10, %v5706_v10 }
 0x113   :  { %7177 = vst [vmem:[#allocation22_spill] sm:$0xff] %v5685_v40  ;;  %v790_v41 = vsel %vm702_vm2, %v5685_v40, 0.0  ;;  %v905_v13 = vmul.f32 %v5685_v40, %v5685_v40  ;;  %v1006_v43 = vadd.f32 %v1005_v51, %v1004_v48  ;;  %v992_v51 = vrot.slane %v991_v4, 4 }
 0x114   :  { %v563_v61 = vpop.f32.mrf.mxu0  ;;  %v791_v47 = vadd.f32 %v790_v41, %v789_v21  ;;  %v1020_v41 = vsel %vm702_vm2, %v904_v50, 0.0  ;;  %v761_v21 = vadd.f32 %v760_v34, %v759_v58 }
 0x115   :  { %v5718_v29 = vadd.f32 %v5406_v7, %v563_v61  ;;  %v1022_v62 = vsel %vm702_vm2, %v905_v13, 0.0  ;;  %v776_v61 = vadd.f32 %v775_v37, %v774_v42  ;;  %v1021_v31 = vadd.f32 %v1020_v41, %v1019_v27 }
 0x116   :  { %v4602_v0 = vpop.f32.mrf.mxu0  ;;  %v793_v35 = vadd.f32 %v792_v56, %v791_v47  ;;  %v5740_v13 = vadd.f32 %v5610_v14, %v5406_v7  ;;  %v901_v27 = vmul.f32 %v5714_v5, %v5714_v5  ;;  %v7183_v42 = vrot.slane %v5635_v23, 2 }
 0x117   :  { %7181 = vst [vmem:[#allocation26_spill] sm:$0xff] %v5718_v29  ;;  %v794_v50 = vsel %vm702_vm2, %v5718_v29, 0.0  ;;  %v1023_v58 = vadd.f32 %v1022_v62, %v1021_v31  ;;  %v5751_v37 = vadd.f32 %v4599_v15, %v5406_v7  ;;  %v907_v48 = vmul.f32 %v5718_v29, %v5718_v29 }
 0x118   :  { %v573_v52 = vpop.f32.mrf.mxu0  ;;  %7182 = vst [vmem:[#allocation27_spill] sm:$0xff] %v5740_v13  ;;  %v5747_v47 = vadd.f32 %v7183_v42, %v5635_v23  ;;  %v762_v14 = vrot.slane %v761_v21, 2  ;;  %v778_v41 = vadd.f32 %v777_v19, %v776_v61  ;;  %v795_v56 = vadd.f32 %v794_v50, %v793_v35 }
 0x119   :  { %7184 = vst [vmem:[#allocation28_spill] sm:$0xff] %v5751_v37  ;;  %v1007_v31 = vsel %vm702_vm2, %v900_v20, 0.0  ;;  %v1024_v62 = vsel %vm702_vm2, %v906_v39, 0.0  ;;  %v5758_v23 = vadd.f32 %v5406_v7, %v573_v52  ;;  %v779_v15 = vsel %vm702_vm2, %v5740_v13, 0.0 }
 0x11a   :  { %v4605_v1 = vpop.f32.mrf.mxu0  ;;  %v1008_v16 = vadd.f32 %v1007_v31, %v1006_v43  ;;  %v1009_v5 = vsel %vm702_vm2, %v901_v27, 0.0  ;;  %v1025_v46 = vadd.f32 %v1024_v62, %v1023_v58  ;;  %v796_v35 = vsel %vm702_vm2, %v5751_v37, 0.0 }
 0x11b   :  { %7185 = vst [vmem:[#allocation29_spill] sm:$0xff] %v5758_v23  ;;  %v1026_v20 = vsel %vm702_vm2, %v907_v48, 0.0  ;;  %v5770_v19 = vadd.f32 %v4605_v1, %v5406_v7  ;;  %v902_v50 = vmul.f32 %v5740_v13, %v5740_v13  ;;  %v780_v43 = vadd.f32 %v779_v15, %v778_v41 }
 0x11c   :  { %v583_v34 = vpop.f32.mrf.mxu0  ;;  %v797_v27 = vadd.f32 %v796_v35, %v795_v56  ;;  %v908_v31 = vmul.f32 %v5751_v37, %v5751_v37  ;;  %v798_v1 = vsel %vm702_vm2, %v5758_v23, 0.0  ;;  %v5786_v62 = vadd.f32 %v762_v14, %v761_v21 }
 0x11d   :  { %v5761_v42 = vadd.f32 %v5406_v7, %v583_v34  ;;  %7187 = vst [vmem:[#allocation31_spill] sm:$0xff] %v5770_v19  ;;  %v5778_v34 = vadd.f32 %v992_v51, %v991_v4  ;;  %v1027_v39 = vadd.f32 %v1026_v20, %v1025_v46  ;;  %v5789_v13 = vadd.f32 %v4602_v0, %v5406_v7 }
 0x11e   :  { %v4608_v30 = vpop.f32.mrf.mxu0  ;;  %v909_v4 = vmul.f32 %v5758_v23, %v5758_v23  ;;  %v809_v51 = vsel %vm702_vm2, %v5770_v19, 0.0  ;;  %v1011_v21 = vsel %vm702_vm2, %v902_v50, 0.0  ;;  %v799_v46 = vadd.f32 %v798_v1, %v797_v27 }
 0x11f   :  { %7186 = vst [vmem:[#allocation30_spill] sm:$0xff] %v5761_v42  ;;  %v808_v48 = vsel %vm702_vm2, %v5761_v42, 0.0  ;;  %7189 = vst [vmem:[#allocation33_spill] sm:$0xff] %v5789_v13  ;;  %v911_v56 = vmul.f32 %v5761_v42, %v5761_v42  ;;  %v1028_v14 = vsel %vm702_vm2, %v908_v31, 0.0  ;;  %v912_v35 = vmul.f32 %v5770_v19, %v5770_v19 }
 0x120   :  { %v593_v61 = vpop.f32.mrf.mxu0  ;;  %v5806_v20 = vadd.f32 %v4608_v30, %v5406_v7  ;;  %v800_v50 = vsel %vm702_vm2, %v5789_v13, 0.0  ;;  %v1029_v27 = vadd.f32 %v1028_v14, %v1027_v39  ;;  %v910_v31 = vmul.f32 %v5789_v13, %v5789_v13 }
 0x121   :  { %v5773_v52 = vadd.f32 %v5406_v7, %v593_v61  ;;  %v1010_v61 = vadd.f32 %v1009_v5, %v1008_v16  ;;  %v781_v5 = vrot.slane %v780_v43, 4  ;;  %v810_v16 = vadd.f32 %v809_v51, %v808_v48 }
 0x122   :  { %v4611_v58 = vpop.f32.mrf.mxu0  ;;  %7190 = vst [vmem:[#allocation34_spill] sm:$0xff] %v5806_v20  ;;  %v1030_v51 = vsel %vm702_vm2, %v909_v4, 0.0  ;;  %v1040_v19 = vsel %vm702_vm2, %v911_v56, 0.0  ;;  %v813_v4 = vsel %vm702_vm2, %v5806_v20, 0.0 }
 0x123   :  { %7188 = vst [vmem:[#allocation32_spill] sm:$0xff] %v5773_v52  ;;  %v811_v15 = vsel %vm702_vm2, %v5773_v52, 0.0  ;;  %v913_v42 = vmul.f32 %v5773_v52, %v5773_v52  ;;  %v5810_v55 = vadd.f32 %v1011_v21, %v1010_v61  ;;  %v5822_v61 = vadd.f32 %v781_v5, %v780_v43 }
 0x124   :  { %v603_v41 = vpop.f32.mrf.mxu0  ;;  %v812_v1 = vadd.f32 %v811_v15, %v810_v16  ;;  %v5824_v21 = vadd.f32 %v800_v50, %v799_v46  ;;  %v5827_v39 = vadd.f32 %v4611_v58, %v5406_v7  ;;  %v1041_v16 = vsel %vm702_vm2, %v912_v35, 0.0 }
 0x125   :  { %v5819_v30 = vadd.f32 %v5406_v7, %v603_v41  ;;  %v1043_v56 = vsel %vm702_vm2, %v913_v42, 0.0  ;;  %v1031_v14 = vadd.f32 %v1030_v51, %v1029_v27  ;;  %v1042_v52 = vadd.f32 %v1041_v16, %v1040_v19 }
 0x126   :  { %v5800_v0 = vpop.f32.mrf.mxu0  ;;  %7192 = vst [vmem:[#allocation36_spill] sm:$0xff] %v5827_v39  ;;  %v914_v43 = vmul.f32 %v5806_v20, %v5806_v20  ;;  %v814_v5 = vadd.f32 %v813_v4, %v812_v1  ;;  %v1032_v50 = vsel %vm702_vm2, %v910_v31, 0.0  ;;  %v916_v19 = vmul.f32 %v5827_v39, %v5827_v39 }
 0x127   :  { %7191 = vst [vmem:[#allocation35_spill] sm:$0xff] %v5819_v30  ;;  %v815_v35 = vsel %vm702_vm2, %v5819_v30, 0.0  ;;  %v915_v27 = vmul.f32 %v5819_v30, %v5819_v30 }
 0x128   :  { %v613_v48 = vpop.f32.mrf.mxu0  ;;  %v816_v58 = vadd.f32 %v815_v35, %v814_v5 }
 0x129   :  { %v5865_v20 = vadd.f32 %v5406_v7, %v613_v48 }
 0x12a   :  { %v4617_v15 = vpop.f32.mrf.mxu0 }
 0x12b   :  { %v5834_v41 = vadd.f32 %v4617_v15, %v5406_v7  ;;  %v1044_v15 = vadd.f32 %v1043_v56, %v1042_v52  ;;  %v5859_v52 = vadd.f32 %v1032_v50, %v1031_v14  ;;  %v1045_v56 = vsel %vm702_vm2, %v914_v43, 0.0  ;;  %7193 = vst [vmem:[#allocation37_spill] sm:$0xff] %v5865_v20 }
 0x12c   :  { %v623_v46 = vpop.f32.mrf.mxu0  ;;  %v1049_v14 = vsel %vm702_vm2, %v916_v19, 0.0  ;;  %v1047_v43 = vsel %vm702_vm2, %v915_v27, 0.0 }
 0x12d   :  { %v5843_v6 = vadd.f32 %v5406_v7, %v623_v46  ;;  %v920_v51 = vmul.f32 %v5834_v41, %v5834_v41  ;;  %v817_v46 = vsel %vm702_vm2, %v5827_v39, 0.0  ;;  %v830_v30 = vsel %vm702_vm2, %v5834_v41, 0.0 }
 0x12e   :  { %v4620_v1 = vpop.f32.mrf.mxu0  ;;  %v1046_v50 = vadd.f32 %v1045_v56, %v1044_v15 }
 0x12f   :  { %v829_v31 = vsel %vm702_vm2, %v5843_v6, 0.0  ;;  %v919_v16 = vmul.f32 %v5843_v6, %v5843_v6  ;;  %v5857_v4 = vadd.f32 %v4620_v1, %v5406_v7  ;;  %v1062_v5 = vsel %vm702_vm2, %v920_v51, 0.0 }
 0x130   :  { %v633_v42 = vpop.f32.mrf.mxu0  ;;  %v831_v3 = vadd.f32 %v830_v30, %v829_v31  ;;  %v819_v30 = vsel %vm702_vm2, %v5865_v20, 0.0  ;;  %v1048_v56 = vadd.f32 %v1047_v43, %v1046_v50 }
 0x131   :  { %v1061_v57 = vsel %vm702_vm2, %v919_v16, 0.0  ;;  %v5871_v1 = vadd.f32 %v5406_v7, %v633_v42  ;;  %v922_v48 = vmul.f32 %v5857_v4, %v5857_v4  ;;  %v818_v42 = vadd.f32 %v817_v46, %v816_v58 }
 0x132   :  { %v4623_v39 = vpop.f32.mrf.mxu0  ;;  %v1063_v40 = vadd.f32 %v1062_v5, %v1061_v57  ;;  %v834_v27 = vsel %vm702_vm2, %v5857_v4, 0.0  ;;  %v5895_v57 = vadd.f32 %v5800_v0, %v5406_v7  ;;  %v917_v46 = vmul.f32 %v5865_v20, %v5865_v20 }
 0x133   :  { %v832_v35 = vsel %vm702_vm2, %v5871_v1, 0.0  ;;  %v921_v16 = vmul.f32 %v5871_v1, %v5871_v1  ;;  %v5883_v15 = vadd.f32 %v4623_v39, %v5406_v7  ;;  %v1066_v5 = vsel %vm702_vm2, %v922_v48, 0.0 }
 0x134   :  { %v833_v10 = vadd.f32 %v832_v35, %v831_v3  ;;  %v643_v19 = vpop.f32.mrf.mxu0  ;;  %7194 = vst [vmem:[#allocation38_spill] sm:$0xff] %v5895_v57 }
 0x135   :  { %v1064_v51 = vsel %vm702_vm2, %v921_v16, 0.0  ;;  %v5891_v31 = vadd.f32 %v5406_v7, %v643_v19  ;;  %v820_v19 = vadd.f32 %v819_v30, %v818_v42  ;;  %v924_v50 = vmul.f32 %v5883_v15, %v5883_v15 }
 0x136   :  { %v1065_v3 = vadd.f32 %v1064_v51, %v1063_v40  ;;  %v835_v39 = vadd.f32 %v834_v27, %v833_v10  ;;  %v4626_v58 = vpop.f32.mrf.mxu0  ;;  %v838_v10 = vsel %vm702_vm2, %v5883_v15, 0.0  ;;  %v821_v42 = vsel %vm702_vm2, %v5895_v57, 0.0 }
 0x137   :  { %v836_v35 = vsel %vm702_vm2, %v5891_v31, 0.0  ;;  %v923_v16 = vmul.f32 %v5891_v31, %v5891_v31  ;;  %v5910_v48 = vadd.f32 %v4626_v58, %v5406_v7  ;;  %v1050_v30 = vadd.f32 %v1049_v14, %v1048_v56 }
 0x138   :  { %v837_v0 = vadd.f32 %v836_v35, %v835_v39  ;;  %v1067_v43 = vadd.f32 %v1066_v5, %v1065_v3  ;;  %v653_v40 = vpop.f32.mrf.mxu0  ;;  %v1051_v3 = vsel %vm702_vm2, %v917_v46, 0.0  ;;  %v1070_v14 = vsel %vm702_vm2, %v924_v50, 0.0 }
 0x139   :  { %v1068_v27 = vsel %vm702_vm2, %v923_v16, 0.0  ;;  %v5913_v51 = vadd.f32 %v5406_v7, %v653_v40  ;;  %v918_v16 = vmul.f32 %v5895_v57, %v5895_v57  ;;  %v822_v40 = vadd.f32 %v821_v42, %v820_v19 }
 0x13a   :  { %v1069_v20 = vadd.f32 %v1068_v27, %v1067_v43  ;;  %v839_v29 = vadd.f32 %v838_v10, %v837_v0  ;;  %v4629_v39 = vpop.f32.mrf.mxu0  ;;  %v842_v46 = vsel %vm702_vm2, %v5910_v48, 0.0  ;;  %v1052_v57 = vadd.f32 %v1051_v3, %v1050_v30 }
 0x13b   :  { %v840_v5 = vsel %vm702_vm2, %v5913_v51, 0.0  ;;  %v925_v35 = vmul.f32 %v5913_v51, %v5913_v51  ;;  %v5923_v58 = vadd.f32 %v4629_v39, %v5406_v7  ;;  %v7197_v39 = vrot.slane %v5824_v21, 4 }
 0x13c   :  { %v841_v56 = vadd.f32 %v840_v5, %v839_v29  ;;  %v663_v0 = vpop.f32.mrf.mxu0  ;;  %v1071_v10 = vadd.f32 %v1070_v14, %v1069_v20  ;;  %v1053_v30 = vsel %vm702_vm2, %v918_v16, 0.0  ;;  %v823_v3 = vrot.slane %v822_v40, 4 }
 0x13d   :  { %7195 = vst [vmem:[#allocation39_spill] sm:$0xff] %v5923_v58  ;;  %v5932_v27 = vadd.f32 %v5406_v7, %v663_v0  ;;  %v5937_v24 = vadd.f32 %v7197_v39, %v5824_v21  ;;  %v1072_v50 = vsel %vm702_vm2, %v925_v35, 0.0  ;;  %v928_v42 = vmul.f32 %v5923_v58, %v5923_v58 }
 0x13e   :  { %v843_v19 = vadd.f32 %v842_v46, %v841_v56  ;;  %v4632_v29 = vpop.f32.mrf.mxu0  ;;  %v1034_v21 = vrot.slane %v5859_v52, 4  ;;  %v926_v35 = vmul.f32 %v5910_v48, %v5910_v48  ;;  %v1073_v0 = vadd.f32 %v1072_v50, %v1071_v10 }
 0x13f   :  { %7196 = vst [vmem:[#allocation40_spill] sm:$0xff] %v5932_v27  ;;  %v850_v5 = vsel %vm702_vm2, %v5932_v27, 0.0  ;;  %v927_v20 = vmul.f32 %v5932_v27, %v5932_v27  ;;  %v5947_v14 = vadd.f32 %v4632_v29, %v5406_v7  ;;  %v851_v46 = vsel %vm702_vm2, %v5923_v58, 0.0 }
 0x140   :  { %v673_v56 = vpop.f32.mrf.mxu0  ;;  %v1054_v29 = vadd.f32 %v1053_v30, %v1052_v57  ;;  %v844_v27 = vrot.slane %v843_v19, 4  ;;  %v852_v37 = vadd.f32 %v851_v46, %v850_v5  ;;  %v1083_v23 = vsel %vm702_vm2, %v928_v42, 0.0 }
 0x141   :  { %7198 = vst [vmem:[#allocation41_spill] sm:$0xff] %v5947_v14  ;;  %v1082_v39 = vsel %vm702_vm2, %v927_v20, 0.0  ;;  %v5957_v43 = vadd.f32 %v5406_v7, %v673_v56  ;;  %v930_v16 = vmul.f32 %v5947_v14, %v5947_v14  ;;  %v824_v56 = vadd.f32 %v823_v3, %v822_v40 }
 0x142   :  { %v4635_v33 = vpop.f32.mrf.mxu0  ;;  %v1074_v57 = vsel %vm702_vm2, %v926_v35, 0.0  ;;  %v1084_v30 = vadd.f32 %v1083_v23, %v1082_v39  ;;  %v855_v8 = vsel %vm702_vm2, %v5947_v14, 0.0  ;;  %v845_v22 = vadd.f32 %v844_v27, %v843_v19 }
 0x143   :  { %7199 = vst [vmem:[#allocation42_spill] sm:$0xff] %v5957_v43  ;;  %v853_v10 = vsel %vm702_vm2, %v5957_v43, 0.0  ;;  %v929_v50 = vmul.f32 %v5957_v43, %v5957_v43  ;;  %v5967_v20 = vadd.f32 %v4635_v33, %v5406_v7  ;;  %v1075_v58 = vadd.f32 %v1074_v57, %v1073_v0 }
 0x144   :  { %v854_v5 = vadd.f32 %v853_v10, %v852_v37  ;;  %v683_v46 = vpop.f32.mrf.mxu0  ;;  %v1087_v43 = vsel %vm702_vm2, %v930_v16, 0.0  ;;  %v804_v0 = vrot.slane %v5937_v24, 2  ;;  %v1055_v27 = vrot.slane %v1054_v29, 4 }
 0x145   :  { %7200 = vst [vmem:[#allocation43_spill] sm:$0xff] %v5967_v20  ;;  %v1085_v42 = vsel %vm702_vm2, %v929_v50, 0.0  ;;  %v5974_v13 = vadd.f32 %v5406_v7, %v683_v46  ;;  %v932_v23 = vmul.f32 %v5967_v20, %v5967_v20  ;;  %v859_v10 = vsel %vm702_vm2, %v5967_v20, 0.0 }
 0x146   :  { %v1086_v33 = vadd.f32 %v1085_v42, %v1084_v30  ;;  %v856_v38 = vadd.f32 %v855_v8, %v854_v5  ;;  %v4638_v40 = vpop.f32.mrf.mxu0  ;;  %v825_v8 = vrot.slane %v824_v56, 2  ;;  %v846_v30 = vrot.slane %v845_v22, 2 }
 0x147   :  { %7201 = vst [vmem:[#allocation44_spill] sm:$0xff] %v5974_v13  ;;  %v857_v37 = vsel %vm702_vm2, %v5974_v13, 0.0  ;;  %v931_v3 = vmul.f32 %v5974_v13, %v5974_v13  ;;  %v5984_v35 = vadd.f32 %v4638_v40, %v5406_v7  ;;  %v1076_v5 = vrot.slane %v1075_v58, 4 }
 0x148   :  { %v858_v19 = vadd.f32 %v857_v37, %v856_v38  ;;  %v1088_v39 = vadd.f32 %v1087_v43, %v1086_v33  ;;  %v693_v16 = vpop.f32.mrf.mxu0  ;;  %v1091_v40 = vsel %vm702_vm2, %v932_v23, 0.0  ;;  %v805_v23 = vadd.f32 %v804_v0, %v5937_v24 }
 0x149   :  { %7202 = vst [vmem:[#allocation45_spill] sm:$0xff] %v5984_v35  ;;  %v1089_v50 = vsel %vm702_vm2, %v931_v3, 0.0  ;;  %v5991_v57 = vadd.f32 %v5406_v7, %v693_v16  ;;  %v934_v38 = vmul.f32 %v5984_v35, %v5984_v35  ;;  %v7204_v7 = vrot.slane %v5822_v61, 2 }
 0x14a   :  { %v1090_v46 = vadd.f32 %v1089_v50, %v1088_v39  ;;  %v860_v42 = vadd.f32 %v859_v10, %v858_v19  ;;  %v7205_v3 = vrot.slane %v5810_v55, 4  ;;  %v1035_v10 = vadd.f32 %v1034_v21, %v5859_v52 }
 0x14b   :  { %7203 = vst [vmem:[#allocation46_spill] sm:$0xff] %v5991_v57  ;;  %v861_v43 = vsel %vm702_vm2, %v5991_v57, 0.0  ;;  %v933_v33 = vmul.f32 %v5991_v57, %v5991_v57  ;;  %v784_v37 = vadd.f32 %v7204_v7, %v5822_v61  ;;  %v863_v50 = vsel %vm702_vm2, %v5984_v35, 0.0 }
 0x14c   :  { %v1014_v19 = vadd.f32 %v7205_v3, %v5810_v55  ;;  %v862_v39 = vadd.f32 %v861_v43, %v860_v42  ;;  %v1092_v16 = vadd.f32 %v1091_v40, %v1090_v46  ;;  %v826_v13 = vadd.f32 %v825_v8, %v824_v56 }
 0x14d   :  { %v1093_v14 = vsel %vm702_vm2, %v933_v33, 0.0  ;;  %v1056_v20 = vadd.f32 %v1055_v27, %v1054_v29  ;;  %v764_v55 = vrot.slane %v5786_v62, 1  ;;  %v847_v42 = vadd.f32 %v846_v30, %v845_v22 }
 0x14e   :  { %v864_v61 = vadd.f32 %v863_v50, %v862_v39  ;;  %v1094_v7 = vadd.f32 %v1093_v14, %v1092_v16  ;;  %v1077_v46 = vadd.f32 %v1076_v5, %v1075_v58  ;;  %v1095_v40 = vsel %vm702_vm2, %v934_v38, 0.0 }
 0x14f   :  { %v785_v24 = vrot.slane %v784_v37, 1  ;;  %v1015_v52 = vrot.slane %v1014_v19, 2  ;;  %v7206_v43 = vrot.slane %v5747_v47, 1  ;;  %v7207_v14 = vrot.slane %v5721_v36, 2 }
 0x150   :  { %v865_v21 = vrot.slane %v864_v61, 4  ;;  %v1096_v0 = vadd.f32 %v1095_v40, %v1094_v7  ;;  %v806_v27 = vrot.slane %v805_v23, 1  ;;  %v1036_v8 = vrot.slane %v1035_v10, 2 }
 0x151   :  { %v744_v56 = vadd.f32 %v7206_v43, %v5747_v47  ;;  %v974_v29 = vadd.f32 %v7207_v14, %v5721_v36  ;;  %v827_v22 = vrot.slane %v826_v13, 1  ;;  %v1057_v58 = vrot.slane %v1056_v20, 2 }
 0x152   :  { %v866_v30 = vadd.f32 %v865_v21, %v864_v61  ;;  %v1097_v5 = vrot.slane %v1096_v0, 4  ;;  %v765_v38 = vadd.f32 %v764_v55, %v5786_v62  ;;  %v7208_v33 = vrot.slane %v5778_v34, 2 }
 0x153   :  { %v1078_v39 = vrot.slane %v1077_v46, 2  ;;  %v848_v16 = vrot.slane %v847_v42, 1  ;;  %v786_v50 = vadd.f32 %v785_v24, %v784_v37  ;;  %v1016_v47 = vadd.f32 %v1015_v52, %v1014_v19 }
 0x154   :  { %v995_v3 = vadd.f32 %v7208_v33, %v5778_v34  ;;  %v1098_v7 = vadd.f32 %v1097_v5, %v1096_v0  ;;  %v867_v40 = vrot.slane %v866_v30, 2  ;;  %v975_v43 = vrot.slane %v974_v29, 1 }
 0x155   :  { %v807_v36 = vadd.f32 %v806_v27, %v805_v23  ;;  %v1037_v14 = vadd.f32 %v1036_v8, %v1035_v10  ;;  %v1116_v57 = vsel %vm1115_vm4, %v744_v56, %v5622_v28  ;;  %v1058_v61 = vadd.f32 %v1057_v58, %v1056_v20 }
 0x156   :  { %v1099_v21 = vrot.slane %v1098_v7, 2  ;;  %v828_v35 = vadd.f32 %v827_v22, %v826_v13  ;;  %v868_v62 = vadd.f32 %v867_v40, %v866_v30  ;;  %v996_v55 = vrot.slane %v995_v3, 1 }
 0x157   :  { %v1079_v54 = vadd.f32 %v1078_v39, %v1077_v46  ;;  %v849_v59 = vadd.f32 %v848_v16, %v847_v42  ;;  %v1118_v34 = vsel %vm1117_vm5, %v765_v38, %v1116_v57  ;;  %v1017_v33 = vrot.slane %v1016_v47, 1  ;;  %v5036_v38 = vld [vmem:[%s7105_s3 + $0x10] sm:$0xff] }
 0x158   :  { %v869_v37 = vrot.slane %v868_v62, 1  ;;  %v1120_v19 = vsel %vm1119_vm6, %v786_v50, %v1118_v34  ;;  %v1100_v24 = vadd.f32 %v1099_v21, %v1098_v7  ;;  %v1038_v52 = vrot.slane %v1037_v14, 1  ;;  %v5037_v50 = vld [vmem:[%s7105_s3 + $0x8] sm:$0xff]  ;;  %v5038_v7 = vld [vmem:[%s7105_s3] sm:$0xff] }
 0x159   :  { %v1122_v23 = vsel %vm1121_vm7, %v807_v36, %v1120_v19  ;;  %v976_v10 = vadd.f32 %v975_v43, %v974_v29  ;;  %v1059_v28 = vrot.slane %v1058_v61, 1  ;;  %v997_v0 = vadd.f32 %v996_v55, %v995_v3  ;;  %v5035_v29 = vld [vmem:[%s7105_s3 + $0x18] sm:$0xff]  ;;  %v1293_v43 = vld [vmem:[%s7106_s4] sm:$0xf] }
 0x15a   :  { %v870_v20 = vadd.f32 %v869_v37, %v868_v62  ;;  %v1124_v13 = vsel %vm1123_vm8, %v828_v35, %v1122_v23  ;;  %v1080_v42 = vrot.slane %v1079_v54, 1  ;;  %v7209_v57 = vrot.slane %v5597_v2, 1 }
 0x15b   :  { %v1126_v46 = vsel %vm1125_vm9, %v849_v59, %v1124_v13  ;;  %v1018_v27 = vadd.f32 %v1017_v33, %v1016_v47  ;;  %v1101_v22 = vrot.slane %v1100_v24, 1  ;;  %v1039_v58 = vadd.f32 %v1038_v52, %v1037_v14 }
 0x15c   :  { %v955_v56 = vadd.f32 %v7209_v57, %v5597_v2  ;;  %v1128_v8 = vsel %vm1127_vm10, %v870_v20, %v1126_v46  ;;  %v7210_v35 = vmov 0.0   ;;  %v1060_v59 = vadd.f32 %v1059_v28, %v1058_v61 }
 0x15d   :  { %4648 = vmatmul.mubr.msk.f32.vlgmr.msra.gmra.mxu1 %vm702_vm2, %v1128_v8  ;;  %v1081_v2 = vadd.f32 %v1080_v42, %v1079_v54  ;;  %v1102_v3 = vadd.f32 %v1101_v22, %v1100_v24  ;;  %v6072_v24 = vld [vmem:[%s7108_s6] sm:$0xff]  ;;  %v5063_v52 = vmov 1966171168  }
 0x15e   :  { %4651 = vmatpush3.msra.mxu1 %v5035_v29  ;;  %4658 = vmatprep.mubr.msk.f32.mxu1 %vm5062_vm3, %v7210_v35  ;;  %v1209_v30 = vsel %vm1115_vm4, %v976_v10, %v955_v56  ;;  %v1457_v23 = vunpack.c.l.s4 %v5063_v52  ;;  %v1459_v10 = vlaneseq }
 0x15f   :  { %4652 = vmatprep.subr.mxu1 %v7210_v35  ;;  %v1210_v5 = vsel %vm1117_vm5, %v997_v0, %v1209_v30  ;;  %4801 = vmatprep.mubr.msk.f32.mxu0 %vm1828_vm13, %v6072_v24 }
 0x160   :  { %4653 = vmatpush3.msra.mxu1 %v5036_v38  ;;  %v1211_v39 = vsel %vm1119_vm6, %v1018_v27, %v1210_v5  ;;  %v1458_v28 = vunpack.c.0.s8 %v1457_v23  ;;  %v1460_v20 = vshrl.u32 %v1459_v10, 7  ;;  %v4181_v27 = vld [vmem:[%s7107_s5] ss:$0 sm:$0xff] }
 0x161   :  { %4654 = vmatprep.subr.mxu1 %v7210_v35  ;;  %v1212_v16 = vsel %vm1121_vm7, %v1039_v58, %v1211_v39 }
 0x162   :  { %4655 = vmatpush3.msra.mxu1 %v5037_v50  ;;  %v1213_v54 = vsel %vm1123_vm8, %v1060_v59, %v1212_v16  ;;  %v1461_v13 = vsub.s32 %v1458_v28, %v1460_v20  ;;  %v6083_v59 = vsub.s32 0, %v1460_v20 }
 0x163   :  { %4656 = vmatprep.subr.mxu1 %v7210_v35  ;;  %v1214_v47 = vsel %vm1125_vm9, %v1081_v2, %v1213_v54 }
 0x164   :  { %4657 = vmatpush3.msra.mxu1 %v5038_v7  ;;  %v1215_v40 = vsel %vm1127_vm10, %v1102_v3, %v1214_v47 }
 0x165   :  { %4659 = vmatmul.mubr.msk.f32.vlgmr.msra.gmra.mxu1 %vm702_vm2, %v1215_v40  ;;  %4661 = vmatprep.subr.mxu1 %v7210_v35 }
 0x166   :  { %4663 = vmatprep.mubr.msk.f32.mxu1 %vm5062_vm3, %v7210_v35  ;;  %4662 = vmatpush3.msk.msra.mxu1 %vm1298_vm11, %v1293_v43 }
 0x167   :  { %4666 = vmatprep.subr.mxu1 %v7210_v35 }
 0x21d   :  { %v1197_v36 = vpop.f32.mrf.mxu1 }
 0x21e   :  { %v1288_v61 = vmul.f32 %v1197_v36, %v1197_v36 }
 0x21f   :  { %v4649_v14 = vpop.f32.mrf.mxu1 }
 0x225   :  { %v1284_v21 = vpop.f32.mrf.mxu1 }
 0x226   :  { %v1289_v62 = vsub.f32 %v1284_v21, %v1288_v61 }
 0x227   :  { %v4660_v55 = vpop.f32.mrf.mxu1 }
 0x228   :  { %v1290_v34 = vmax.f32 %v1289_v62, 0.0 }
 0x22a   :  { %v1291_v33 = vadd.f32 1e-05, %v1290_v34 }
 0x22c   :  { %5033 = vrsqrt.f32 %v1291_v33 }
 0x239   :  { %v5034_v37 = vpop.eup %5033 }
 0x23a   :  { %4664 = vmatmul.mubr.msk.f32.vlgmr.msra.gmra.mxu1 %vm1294_vm12, %v5034_v37  ;;  %v1373_v19 = vmul.f32 %v5034_v37, %v1197_v36 }
 0x23b   :  { %4667 = vmatpush3.msk.msra.mxu1 %vm1298_vm11, %v1293_v43  ;;  %4668 = vmatprep.mubr.msk.f32.mxu1 %vm5062_vm3, %v7210_v35 }
 0x23e   :  { %4669 = vmatmul.mubr.msk.f32.vlgmr.msra.gmra.mxu1 %vm1294_vm12, %v1373_v19 }
 0x23f   :  { %4687 = vmatprep.mubr.msk.f32.mxu1 %vm1828_vm13, %v6072_v24 }
 0x2fa   :  { %v1368_v0 = vpop.f32.mrf.mxu1 }
 0x2fb   :  { %v1455_v46 = vcombine.high %v1368_v0, %v1368_v0  ;;  %v1462_v42 = vrot.slane %v1368_v0, %v1461_v13 }
 0x2fc   :  { %v4665_v57 = vpop.f32.mrf.mxu1 }
 0x2fd   :  { %v1469_v56 = vrot.slane %v1455_v46, %v1461_v13  ;;  %v6081_v58 = vrot.slane %v1462_v42, %v1461_v13  ;;  %v1470_v21 = vcombine.high %v1462_v42, %v1462_v42 }
 0x2fe   :  { %v1443_v8 = vpop.f32.mrf.mxu1 }
 0x2ff   :  { %v1471_v22 = vcombine.high %v1469_v56, %v1469_v56  ;;  %v1485_v29 = vrot.slane %v1469_v56, %v1461_v13  ;;  %v1453_v30 = vsub.f32 %v4181_v27, %v1443_v8  ;;  %v6090_v54 = vrot.slane %v6081_v58, %v6083_v59 }
 0x300   :  { %v4670_v2 = vpop.f32.mrf.mxu1  ;;  %v6131_v56 = vrot.slane %v1470_v21, %v1461_v13 }
 0x301   :  { %v1499_v5 = vrot.slane %v1471_v22, %v1461_v13  ;;  %v1501_v38 = vcombine.high %v1485_v29, %v1485_v29  ;;  %v6086_v3 = vrot.slane %v1485_v29, %v6083_v59  ;;  %v1609_v39 = vcombine.high %v1453_v30, %v1453_v30 }
 0x302   :  { %v1616_v16 = vrot.slane %v1453_v30, %v1461_v13  ;;  %v1551_v55 = vmul.f32 %v6090_v54, %v5491_v63  ;;  %v1550_v34 = vmul.f32 %v6090_v54, %v5470_v49  ;;  %v1549_v52 = vmul.f32 %v6090_v54, %v5464_v44 }
 0x303   :  { %v1503_v50 = vcombine.high %v1499_v5, %v1499_v5  ;;  %v6093_v47 = vrot.slane %v1499_v5, %v6083_v59  ;;  %v1623_v7 = vrot.slane %v1609_v39, %v1461_v13  ;;  %v6098_v43 = vrot.slane %v1501_v38, %v6083_v59 }
 0x304   :  { %v6095_v40 = vrot.slane %v1616_v16, %v1461_v13  ;;  %v1624_v33 = vcombine.high %v1616_v16, %v1616_v16  ;;  %v1548_v57 = vmul.f32 %v6090_v54, %v5451_v32 }
 0x305   :  { %v6101_v36 = vrot.slane %v1503_v50, %v6083_v59  ;;  %v1625_v14 = vcombine.high %v1623_v7, %v1623_v7  ;;  %v1639_v61 = vrot.slane %v1623_v7, %v1461_v13  ;;  %v1599_v20 = vmul.f32 %v6098_v43, %v5910_v48 }
 0x306   :  { %v6105_v62 = vrot.slane %v6095_v40, %v6083_v59  ;;  %v1598_v44 = vmul.f32 %v6098_v43, %v5913_v51  ;;  %v1547_v51 = vmul.f32 %v6090_v54, %v5441_v26  ;;  %v1597_v30 = vmul.f32 %v6098_v43, %v5883_v15 }
 0x307   :  { %v1653_v37 = vrot.slane %v1625_v14, %v1461_v13  ;;  %v1655_v19 = vcombine.high %v1639_v61, %v1639_v61  ;;  %v6114_v23 = vrot.slane %v1639_v61, %v6083_v59  ;;  %v6143_v32 = vrot.slane %v1624_v33, %v1461_v13 }
 0x308   :  { %v1705_v10 = vadd.f32 %v6105_v62, %v1551_v55  ;;  %v1704_v28 = vadd.f32 %v6105_v62, %v1550_v34  ;;  %v1703_v42 = vadd.f32 %v6105_v62, %v1549_v52  ;;  %v1702_v29 = vadd.f32 %v6105_v62, %v1548_v57 }
 0x309   :  { %v1657_v63 = vcombine.high %v1653_v37, %v1653_v37  ;;  %v6121_v0 = vrot.slane %v1653_v37, %v6083_v59  ;;  %v6124_v49 = vrot.slane %v1655_v19, %v6083_v59  ;;  %v1596_v5 = vmul.f32 %v6098_v43, %v5891_v31 }
 0x30a   :  { %v1769_v46 = vmax.f32 %v1705_v10, 0.0  ;;  %v1768_v22 = vmax.f32 %v1704_v28, 0.0  ;;  %v1767_v38 = vmax.f32 %v1703_v42, 0.0  ;;  %v1701_v39 = vadd.f32 %v6105_v62, %v1547_v51 }
 0x30b   :  { %v6134_v48 = vrot.slane %v1657_v63, %v6083_v59  ;;  %v1753_v27 = vadd.f32 %v6124_v49, %v1599_v20  ;;  %v1752_v8 = vadd.f32 %v6124_v49, %v1598_v44  ;;  %v1751_v16 = vadd.f32 %v6124_v49, %v1597_v30 }
 0x30c   :  { %4671 = vmatprep.subr.mxu1 %v1769_v46  ;;  %v1546_v50 = vmul.f32 %v6090_v54, %v5415_v12  ;;  %v1750_v15 = vadd.f32 %v6124_v49, %v1596_v5  ;;  %v1595_v13 = vmul.f32 %v6098_v43, %v5857_v4  ;;  %v6156_v31 = vrot.slane %v6131_v56, %v6083_v59 }
 0x30d   :  { %4672 = vmatpush3.msra.mxu1 %v1769_v46  ;;  %v1817_v2 = vmax.f32 %v1753_v27, 0.0  ;;  %v1816_v26 = vmax.f32 %v1752_v8, 0.0  ;;  %v1766_v7 = vmax.f32 %v1702_v29, 0.0  ;;  %v1545_v12 = vmul.f32 %v6090_v54, %v5412_v11 }
 0x30e   :  { %4673 = vmatprep.subr.mxu1 %v1768_v22  ;;  %v1700_v14 = vadd.f32 %v6105_v62, %v1546_v50  ;;  %v1815_v61 = vmax.f32 %v1751_v16, 0.0  ;;  %v1749_v21 = vadd.f32 %v6124_v49, %v1595_v13  ;;  %v1594_v4 = vmul.f32 %v6098_v43, %v5871_v1 }
 0x30f   :  { %4674 = vmatpush3.msra.mxu1 %v1768_v22  ;;  %4785 = vmatprep.subr.mxu0 %v1817_v2  ;;  %v6166_v55 = vrot.slane %v6143_v32, %v6083_v59  ;;  %v1765_v34 = vmax.f32 %v1701_v39, 0.0  ;;  %v1699_v33 = vadd.f32 %v6105_v62, %v1545_v12  ;;  %v1544_v11 = vmul.f32 %v6090_v54, %v5409_v9 }
 0x310   :  { %4675 = vmatprep.subr.mxu1 %v1767_v38  ;;  %4786 = vmatpush3.msra.mxu0 %v1817_v2  ;;  %v1814_v37 = vmax.f32 %v1750_v15, 0.0  ;;  %v1748_v19 = vadd.f32 %v6124_v49, %v1594_v4  ;;  %v1593_v1 = vmul.f32 %v6098_v43, %v5834_v41  ;;  %v1764_v52 = vmax.f32 %v1700_v14, 0.0  ;;  %v7212_v15 = vld [vmem:[#allocation5_spill] sm:$0xff] }
 0x311   :  { %4676 = vmatpush3.msra.mxu1 %v1767_v38  ;;  %4787 = vmatprep.subr.mxu0 %v1816_v26  ;;  %v1698_v10 = vadd.f32 %v6105_v62, %v1544_v11  ;;  %v1559_v28 = vmul.f32 %v6156_v31, %v5568_v17  ;;  %v1813_v20 = vmax.f32 %v1749_v21, 0.0  ;;  %v1763_v54 = vmax.f32 %v1699_v33, 0.0  ;;  %v7211_v38 = vld [vmem:[#allocation6_spill] sm:$0xff] }
 0x312   :  { %4677 = vmatprep.subr.mxu1 %v1766_v7  ;;  %4788 = vmatpush3.msra.mxu0 %v1816_v26  ;;  %v1747_v9 = vadd.f32 %v6124_v49, %v1593_v1  ;;  %v1558_v41 = vmul.f32 %v6156_v31, %v5542_v53  ;;  %v1592_v44 = vmul.f32 %v6098_v43, %v5843_v6  ;;  %v1812_v62 = vmax.f32 %v1748_v19, 0.0  ;;  %v6190_v53 = vld [vmem:[%s7108_s6 + $0x8] sm:$0xff]  ;;  %v7216_v19 = vld [vmem:[#allocation12_spill] sm:$0xff] }
 0x313   :  { %4678 = vmatpush3.msra.mxu1 %v1766_v7  ;;  %4789 = vmatprep.subr.mxu0 %v1815_v61  ;;  %v1713_v63 = vadd.f32 %v6166_v55, %v1559_v28  ;;  %v1762_v17 = vmax.f32 %v1698_v10, 0.0  ;;  %v1557_v57 = vmul.f32 %v6156_v31, %v5532_v45  ;;  %v1500_v6 = vcombine.high %v6081_v58, %v6081_v58  ;;  %v7213_v7 = vld [vmem:[#allocation17_spill] sm:$0xff] }
 0x314   :  { %4679 = vmatprep.subr.mxu1 %v1765_v34  ;;  %4790 = vmatpush3.msra.mxu0 %v1815_v61  ;;  %v1712_v46 = vadd.f32 %v6166_v55, %v1558_v41  ;;  %v1746_v42 = vadd.f32 %v6124_v49, %v1592_v44  ;;  %v1811_v27 = vmax.f32 %v1747_v9, 0.0  ;;  %v1556_v49 = vmul.f32 %v6156_v31, %v5517_v25 }
 0x315   :  { %4680 = vmatpush3.msra.mxu1 %v1765_v34  ;;  %4791 = vmatprep.subr.mxu0 %v1814_v37  ;;  %v1777_v43 = vmax.f32 %v1713_v63, 0.0  ;;  %v1711_v8 = vadd.f32 %v6166_v55, %v1557_v57  ;;  %v1654_v45 = vcombine.high %v6095_v40, %v6095_v40  ;;  %v1555_v51 = vmul.f32 %v6156_v31, %v5508_v18  ;;  %v7215_v34 = vld [vmem:[#allocation33_spill] sm:$0xff]  ;;  %v7220_v63 = vld [vmem:[#allocation10_spill] sm:$0xff] }
 0x316   :  { %4681 = vmatprep.subr.mxu1 %v1764_v52  ;;  %4792 = vmatpush3.msra.mxu0 %v1814_v37  ;;  %v1776_v22 = vmax.f32 %v1712_v46, 0.0  ;;  %v1810_v29 = vmax.f32 %v1746_v42, 0.0  ;;  %v1710_v58 = vadd.f32 %v6166_v55, %v1556_v49  ;;  %v6205_v25 = vrot.slane %v1500_v6, %v6083_v59  ;;  %v7222_v46 = vld [vmem:[#allocation24_spill] sm:$0xff] }
 0x317   :  { %4682 = vmatpush3.msra.mxu1 %v1764_v52  ;;  %4793 = vmatprep.subr.mxu0 %v1813_v20  ;;  %v1775_v40 = vmax.f32 %v1711_v8, 0.0  ;;  %v1709_v30 = vadd.f32 %v6166_v55, %v1555_v51  ;;  %v1554_v2 = vmul.f32 %v6156_v31, %v5488_v60  ;;  %v1502_v5 = vcombine.high %v6131_v56, %v6131_v56  ;;  %v7217_v52 = vld [vmem:[#allocation29_spill] sm:$0xff] }
 0x318   :  { %4683 = vmatprep.subr.mxu1 %v1763_v54  ;;  %4794 = vmatpush3.msra.mxu0 %v1813_v20  ;;  %v1553_v18 = vmul.f32 %v6156_v31, %v7211_v38  ;;  %v6215_v39 = vrot.slane %v1654_v45, %v6083_v59  ;;  %v1774_v16 = vmax.f32 %v1710_v58, 0.0  ;;  %v1656_v60 = vcombine.high %v6143_v32, %v6143_v32  ;;  %v7214_v32 = vld [vmem:[#allocation14_spill] sm:$0xff]  ;;  %v7225_v51 = vld [vmem:[#allocation9_spill] sm:$0xff] }
 0x319   :  { %4684 = vmatpush3.msra.mxu1 %v1763_v54  ;;  %4795 = vmatprep.subr.mxu0 %v1812_v62  ;;  %v1708_v50 = vadd.f32 %v6166_v55, %v1554_v2  ;;  %v1773_v26 = vmax.f32 %v1709_v30, 0.0  ;;  %v1552_v13 = vmul.f32 %v6156_v31, %v7212_v15  ;;  %v1567_v14 = vmul.f32 %v6205_v25, %v7213_v7  ;;  %v7219_v54 = vld [vmem:[#allocation28_spill] sm:$0xff]  ;;  %v7226_v2 = vld [vmem:[#allocation19_spill] sm:$0xff]  ;;  %v7227_v38 = vld [vmem:[#allocation38_spill] sm:$0xff] }
 0x31a   :  { %4685 = vmatprep.subr.mxu1 %v1762_v17  ;;  %4796 = vmatpush3.msra.mxu0 %v1812_v62  ;;  %v1707_v56 = vadd.f32 %v6166_v55, %v1553_v18  ;;  %v6231_v12 = vrot.slane %v1502_v5, %v6083_v59  ;;  %v1566_v61 = vmul.f32 %v6205_v25, %v7214_v32  ;;  %v7221_v62 = vld [vmem:[#allocation26_spill] sm:$0xff]  ;;  %v7229_v7 = vld [vmem:[#allocation36_spill] sm:$0xff] }
 0x31b   :  { %4686 = vmatpush3.msra.mxu1 %v1762_v17  ;;  %4797 = vmatprep.subr.mxu0 %v1811_v27  ;;  %v1772_v21 = vmax.f32 %v1708_v50, 0.0  ;;  %v1706_v4 = vadd.f32 %v6166_v55, %v1552_v13  ;;  %v1721_v31 = vadd.f32 %v6215_v39, %v1567_v14  ;;  %v1583_v33 = vmul.f32 %v6086_v3, %v7215_v34  ;;  %v7218_v55 = vld [vmem:[#allocation11_spill] sm:$0xff]  ;;  %v7232_v34 = vld [vmem:[#allocation8_spill] sm:$0xff] }
 0x31c   :  { %4690 = vmatprep.subr.mxu1 %v1777_v43  ;;  %4688 = vmatmul.mubr.msk.f32.vlgmr.msra.gmra.mxu1 %vm1828_vm13, %v6190_v53  ;;  %v6242_v11 = vrot.slane %v1656_v60, %v6083_v59  ;;  %v1771_v37 = vmax.f32 %v1707_v56, 0.0  ;;  %v1565_v1 = vmul.f32 %v6205_v25, %v7216_v19  ;;  %v1582_v10 = vmul.f32 %v6086_v3, %v7217_v52  ;;  %v7228_v56 = vld [vmem:[#allocation37_spill] sm:$0xff]  ;;  %v7233_v19 = vld [vmem:[#allocation32_spill] sm:$0xff] }
 0x31d   :  { %4691 = vmatpush3.msra.mxu1 %v1777_v43  ;;  %4798 = vmatpush3.msra.mxu0 %v1811_v27  ;;  %v1720_v28 = vadd.f32 %v6215_v39, %v1566_v61  ;;  %v1564_v20 = vmul.f32 %v6205_v25, %v7218_v55  ;;  %v6252_v9 = vadd.f32 %v6114_v23, %v1583_v33  ;;  %v1770_v57 = vmax.f32 %v1706_v4, 0.0  ;;  %v7223_v43 = vld [vmem:[#allocation22_spill] sm:$0xff]  ;;  %v7230_v61 = vld [vmem:[#allocation35_spill] sm:$0xff] }
 0x31e   :  { %4692 = vmatprep.subr.mxu1 %v1776_v22  ;;  %4799 = vmatprep.subr.mxu0 %v1810_v29  ;;  %v1581_v59 = vmul.f32 %v6086_v3, %v7219_v54  ;;  %v1563_v41 = vmul.f32 %v6205_v25, %v7220_v63  ;;  %v6259_v44 = vadd.f32 %v6114_v23, %v1582_v10  ;;  %v1785_v27 = vmax.f32 %v1721_v31, 0.0  ;;  %v7231_v4 = vld [vmem:[#allocation34_spill] sm:$0xff]  ;;  %v7234_v55 = vld [vmem:[#allocation31_spill] sm:$0xff] }
 0x31f   :  { %4693 = vmatpush3.msra.mxu1 %v1776_v22  ;;  %4800 = vmatpush3.msra.mxu0 %v1810_v29  ;;  %v1580_v17 = vmul.f32 %v6086_v3, %v7221_v62  ;;  %v1579_v42 = vmul.f32 %v6086_v3, %v7222_v46  ;;  %v1578_v8 = vmul.f32 %v6086_v3, %v7223_v43  ;;  %v7224_v29 = vld [vmem:[#allocation21_spill] sm:$0xff]  ;;  %v1784_v15 = vmax.f32 %v1720_v28, 0.0  ;;  %v7235_v63 = vld [vmem:[#allocation30_spill] sm:$0xff] }
 0x320   :  { %4694 = vmatprep.subr.mxu1 %v1775_v40  ;;  %4706 = vmatprep.mubr.msk.f32.mxu1 %vm1828_vm13, %v6072_v24  ;;  %v6266_v6 = vadd.f32 %v6114_v23, %v1581_v59  ;;  %v1719_v49 = vadd.f32 %v6215_v39, %v1565_v1  ;;  %v1577_v58 = vmul.f32 %v6086_v3, %v7224_v29  ;;  %v7236_v62 = vld [vmem:[#allocation45_spill] sm:$0xff]  ;;  %v7238_v43 = vld [vmem:[#allocation46_spill] sm:$0xff] }
 0x321   :  { %4695 = vmatpush3.msra.mxu1 %v1775_v40  ;;  %4802 = vmatmul.mubr.msk.f32.vlgmr.msra.gmra.mxu0 %vm1828_vm13, %v6190_v53  ;;  %v6272_v45 = vadd.f32 %v6114_v23, %v1580_v17  ;;  %v6275_v22 = vadd.f32 %v6114_v23, %v1579_v42  ;;  %v1562_v40 = vmul.f32 %v6205_v25, %v7225_v51  ;;  %v7237_v42 = vld [vmem:[#allocation7_spill] sm:$0xff] }
 0x322   :  { %4696 = vmatprep.subr.mxu1 %v1774_v16  ;;  %4823 = vmatprep.subr.mxu0 %v7210_v35  ;;  %v6282_v30 = vadd.f32 %v6114_v23, %v1578_v8  ;;  %v1576_v5 = vmul.f32 %v6086_v3, %v7226_v2  ;;  %v1591_v18 = vmul.f32 %v6093_v47, %v7227_v38  ;;  %v1783_v31 = vmax.f32 %v1719_v49, 0.0 }
 0x323   :  { %4697 = vmatpush3.msra.mxu1 %v1774_v16  ;;  %4831 = vmatprep.mubr.msk.f32.mxu0 %vm5062_vm3, %v7210_v35  ;;  %v1718_v16 = vadd.f32 %v6215_v39, %v1564_v20  ;;  %v1717_v50 = vadd.f32 %v6215_v39, %v1563_v41  ;;  %v6291_v60 = vadd.f32 %v6114_v23, %v1577_v58  ;;  %v7239_v58 = vld [vmem:[#allocation43_spill] sm:$0xff] }
 0x324   :  { %4698 = vmatprep.subr.mxu1 %v1773_v26  ;;  %v6298_v3 = vadd.f32 %v6114_v23, %v1576_v5  ;;  %v6301_v13 = vadd.f32 %v6121_v0, %v1591_v18  ;;  %v1589_v14 = vmul.f32 %v6093_v47, %v7229_v7  ;;  %v1587_v23 = vmul.f32 %v6093_v47, %v7231_v4  ;;  %v7241_v5 = vld [vmem:[#allocation44_spill] sm:$0xff]  ;;  %v7242_v18 = vld [vmem:[#allocation41_spill] sm:$0xff]  ;;  %v7245_v4 = vld [vmem:[#allocation39_spill] sm:$0xff] }
 0x325   :  { %4699 = vmatpush3.msra.mxu1 %v1773_v26  ;;  %v1590_v26 = vmul.f32 %v6093_v47, %v7228_v56  ;;  %v1561_v33 = vmul.f32 %v6205_v25, %v7232_v34  ;;  %v1586_v1 = vmul.f32 %v6093_v47, %v7233_v19  ;;  %v1716_v52 = vadd.f32 %v6215_v39, %v1562_v40  ;;  %v7244_v7 = vld [vmem:[#allocation25_spill] sm:$0xff] }
 0x326   :  { %4700 = vmatprep.subr.mxu1 %v1772_v21  ;;  %v6326_v28 = vadd.f32 %v6121_v0, %v1587_v23  ;;  %v1585_v20 = vmul.f32 %v6093_v47, %v7234_v55  ;;  %v1782_v54 = vmax.f32 %v1718_v16, 0.0  ;;  %v1584_v41 = vmul.f32 %v6093_v47, %v7235_v63 }
 0x327   :  { %4701 = vmatpush3.msra.mxu1 %v1772_v21  ;;  %v6308_v32 = vadd.f32 %v6121_v0, %v1590_v26  ;;  %v1588_v21 = vmul.f32 %v6093_v47, %v7230_v61  ;;  %v6331_v59 = vadd.f32 %v6121_v0, %v1586_v1  ;;  %v1607_v17 = vmul.f32 %v6101_v36, %v7236_v62  ;;  %v7243_v26 = vld [vmem:[#allocation42_spill] sm:$0xff] }
 0x328   :  { %4702 = vmatprep.subr.mxu1 %v1771_v37  ;;  %v1781_v46 = vmax.f32 %v1717_v50, 0.0  ;;  %v1606_v8 = vmul.f32 %v6101_v36, %v7238_v43  ;;  %v1715_v49 = vadd.f32 %v6215_v39, %v1561_v33  ;;  %v6346_v29 = vadd.f32 %v6121_v0, %v1584_v41  ;;  %v7246_v33 = vld [vmem:[#allocation40_spill] sm:$0xff] }
 0x329   :  { %4703 = vmatpush3.msra.mxu1 %v1771_v37  ;;  %v6317_v37 = vadd.f32 %v6121_v0, %v1589_v14  ;;  %v6323_v10 = vadd.f32 %v6121_v0, %v1588_v21  ;;  %v6349_v47 = vadd.f32 %v6134_v48, %v1607_v17  ;;  %v1605_v51 = vmul.f32 %v6101_v36, %v7239_v58 }
 0x32a   :  { %4704 = vmatprep.subr.mxu1 %v1770_v57  ;;  %v6356_v2 = vadd.f32 %v6134_v48, %v1606_v8  ;;  %v1604_v38 = vmul.f32 %v6101_v36, %v7241_v5  ;;  %v1780_v16 = vmax.f32 %v1716_v52, 0.0  ;;  %v1574_v14 = vmul.f32 %v6231_v12, %v7244_v7 }
 0x32b   :  { %4705 = vmatpush3.msra.mxu1 %v1770_v57  ;;  %v1560_v57 = vmul.f32 %v6205_v25, %v7237_v42  ;;  %v7240_v25 = vld [vmem:[#allocation27_spill] sm:$0xff]  ;;  %v6364_v56 = vadd.f32 %v6134_v48, %v1605_v51  ;;  %v1601_v23 = vmul.f32 %v6101_v36, %v7245_v4  ;;  %v1600_v19 = vmul.f32 %v6101_v36, %v7246_v33  ;;  %v4207_v33 = vld [vmem:[%s7109_s7 + $0x60] sm:$0xff] }
 0x32c   :  { %4709 = vmatprep.subr.mxu1 %v1785_v27  ;;  %4707 = vmatmul.mubr.msk.f32.vlgmr.msra.gmra.mxu1 %vm1828_vm13, %v6190_v53  ;;  %v1575_v40 = vmul.f32 %v6231_v12, %v7240_v25  ;;  %v6371_v61 = vadd.f32 %v6134_v48, %v1604_v38  ;;  %v1728_v55 = vadd.f32 %v6242_v11, %v1574_v14  ;;  %v1801_v14 = vmax.f32 %v6252_v9, 0.0 }
 0x32d   :  { %4710 = vmatpush3.msra.mxu1 %v1785_v27  ;;  %4725 = vmatprep.mubr.msk.f32.mxu1 %vm1828_vm13, %v6072_v24  ;;  %v6340_v27 = vadd.f32 %v6121_v0, %v1585_v20  ;;  %v1603_v0 = vmul.f32 %v6101_v36, %v7242_v18  ;;  %v1714_v50 = vadd.f32 %v6215_v39, %v1560_v57  ;;  %v1779_v39 = vmax.f32 %v1715_v49, 0.0  ;;  %v7247_v20 = vld [vmem:[#allocation23_spill] sm:$0xff]  ;;  %v7249_v57 = vld [vmem:[#allocation18_spill] sm:$0xff]  ;;  %v7250_v49 = vld [vmem:[#allocation16_spill] sm:$0xff] }
 0x32e   :  { %4711 = vmatprep.subr.mxu1 %v1784_v15  ;;  %v6385_v1 = vadd.f32 %v6134_v48, %v1601_v23  ;;  %v6391_v63 = vadd.f32 %v6134_v48, %v1600_v19  ;;  %v1570_v58 = vmul.f32 %v6231_v12, %v7250_v49  ;;  %v1798_v4 = vmax.f32 %v6272_v45, 0.0 }
 0x32f   :  { %4712 = vmatpush3.msra.mxu1 %v1784_v15  ;;  %v1602_v15 = vmul.f32 %v6101_v36, %v7243_v26  ;;  %v6374_v21 = vadd.f32 %v6134_v48, %v1603_v0  ;;  %v1778_v52 = vmax.f32 %v1714_v50, 0.0  ;;  %v7248_v36 = vld [vmem:[#allocation20_spill] sm:$0xff]  ;;  %v7252_v0 = vld [vmem:[#allocation13_spill] sm:$0xff]  ;;  %v1797_v9 = vmax.f32 %v6275_v22, 0.0 }
 0x330   :  { %4713 = vmatprep.subr.mxu1 %v1783_v31  ;;  %v1572_v17 = vmul.f32 %v6231_v12, %v7248_v36  ;;  %v1724_v25 = vadd.f32 %v6242_v11, %v1570_v58  ;;  %v1796_v23 = vmax.f32 %v6282_v30, 0.0  ;;  %v1809_v45 = vmax.f32 %v6301_v13, 0.0 }
 0x331   :  { %4714 = vmatpush3.msra.mxu1 %v1783_v31  ;;  %v1729_v31 = vadd.f32 %v6242_v11, %v1575_v40  ;;  %v6380_v34 = vadd.f32 %v6134_v48, %v1602_v15  ;;  %v1571_v48 = vmul.f32 %v6231_v12, %v7249_v57  ;;  %v7251_v40 = vld [vmem:[#allocation15_spill] sm:$0xff]  ;;  %v1808_v22 = vmax.f32 %v6308_v32, 0.0 }
 0x332   :  { %4715 = vmatprep.subr.mxu1 %v1782_v54  ;;  %v1726_v42 = vadd.f32 %v6242_v11, %v1572_v17  ;;  %v1569_v5 = vmul.f32 %v6231_v12, %v7251_v40  ;;  %v1788_v50 = vmax.f32 %v1724_v25, 0.0  ;;  %v1807_v30 = vmax.f32 %v6317_v37, 0.0 }
 0x333   :  { %4716 = vmatpush3.msra.mxu1 %v1782_v54  ;;  %v1573_v54 = vmul.f32 %v6231_v12, %v7247_v20  ;;  %v1793_v41 = vmax.f32 %v1729_v31, 0.0  ;;  %v1725_v8 = vadd.f32 %v6242_v11, %v1571_v48  ;;  %v1804_v13 = vmax.f32 %v6331_v59, 0.0  ;;  %v4208_v31 = vld [vmem:[%s7109_s7 + $0x68] sm:$0xff] }
 0x334   :  { %4717 = vmatprep.subr.mxu1 %v1781_v46  ;;  %v1790_v51 = vmax.f32 %v1726_v42, 0.0  ;;  %v1723_v18 = vadd.f32 %v6242_v11, %v1569_v5  ;;  %v1803_v32 = vmax.f32 %v6340_v27, 0.0  ;;  %v1802_v37 = vmax.f32 %v6346_v29, 0.0 }
 0x335   :  { %4718 = vmatpush3.msra.mxu1 %v1781_v46  ;;  %v1727_v62 = vadd.f32 %v6242_v11, %v1573_v54  ;;  %v1792_v46 = vmax.f32 %v1728_v55, 0.0  ;;  %v1789_v38 = vmax.f32 %v1725_v8, 0.0  ;;  %v1823_v59 = vmax.f32 %v6364_v56, 0.0  ;;  %v4201_v56 = vld [vmem:[%s7109_s7 + $0x38] sm:$0xff] }
 0x336   :  { %4719 = vmatprep.subr.mxu1 %v1780_v16  ;;  %v1787_v15 = vmax.f32 %v1723_v18, 0.0  ;;  %v1822_v27 = vmax.f32 %v6371_v61, 0.0  ;;  %v1821_v29 = vmax.f32 %v6374_v21, 0.0  ;;  %v4210_v61 = vld [vmem:[%s7109_s7 + $0x78] sm:$0xff]  ;;  %4824 = vmatpush3.msra.mxu0 %v4201_v56  ;;  %v4209_v21 = vld [vmem:[%s7109_s7 + $0x70] sm:$0xff] }
 0x337   :  { %4720 = vmatpush3.msra.mxu1 %v1780_v16  ;;  %v1791_v43 = vmax.f32 %v1727_v62, 0.0  ;;  %v1568_v16 = vmul.f32 %v6231_v12, %v7252_v0  ;;  %v1800_v12 = vmax.f32 %v6259_v44, 0.0  ;;  %v1795_v44 = vmax.f32 %v6291_v60, 0.0  ;;  %4825 = vmatprep.subr.mxu0 %v7210_v35 }
 0x338   :  { %4721 = vmatprep.subr.mxu1 %v1779_v39  ;;  %v1806_v60 = vmax.f32 %v6323_v10, 0.0  ;;  %v1825_v10 = vmax.f32 %v6349_v47, 0.0  ;;  %v1820_v47 = vmax.f32 %v6380_v34, 0.0  ;;  %v4198_v34 = vld [vmem:[%s7109_s7 + $0x20] sm:$0xff] }
 0x339   :  { %4722 = vmatpush3.msra.mxu1 %v1779_v39  ;;  %v1722_v26 = vadd.f32 %v6242_v11, %v1568_v16  ;;  %v1799_v11 = vmax.f32 %v6266_v6, 0.0  ;;  %v1794_v6 = vmax.f32 %v6298_v3, 0.0  ;;  %v1805_v3 = vmax.f32 %v6326_v28, 0.0  ;;  %v4199_v39 = vld [vmem:[%s7109_s7 + $0x28] sm:$0xff] }
 0x33a   :  { %4723 = vmatprep.subr.mxu1 %v1778_v52  ;;  %v1824_v28 = vmax.f32 %v6356_v2, 0.0  ;;  %v1819_v2 = vmax.f32 %v6385_v1, 0.0 }
 0x33b   :  { %4724 = vmatpush3.msra.mxu1 %v1778_v52  ;;  %v1786_v7 = vmax.f32 %v1722_v26, 0.0 }
 0x33c   :  { %4726 = vmatmul.mubr.msk.f32.vlgmr.msra.gmra.mxu1 %vm1828_vm13, %v6190_v53  ;;  %4728 = vmatprep.subr.mxu1 %v1793_v41 }
 0x33d   :  { %4729 = vmatpush3.msra.mxu1 %v1793_v41  ;;  %4744 = vmatprep.mubr.msk.f32.mxu1 %vm1828_vm13, %v6072_v24 }
 0x33e   :  { %4730 = vmatprep.subr.mxu1 %v1792_v46 }
 0x33f   :  { %4731 = vmatpush3.msra.mxu1 %v1792_v46 }
 0x340   :  { %4732 = vmatprep.subr.mxu1 %v1791_v43 }
 0x341   :  { %4733 = vmatpush3.msra.mxu1 %v1791_v43 }
 0x342   :  { %4734 = vmatprep.subr.mxu1 %v1790_v51 }
 0x343   :  { %4735 = vmatpush3.msra.mxu1 %v1790_v51 }
 0x344   :  { %4736 = vmatprep.subr.mxu1 %v1789_v38 }
 0x345   :  { %4737 = vmatpush3.msra.mxu1 %v1789_v38 }
 0x346   :  { %4738 = vmatprep.subr.mxu1 %v1788_v50 }
 0x347   :  { %4739 = vmatpush3.msra.mxu1 %v1788_v50 }
 0x348   :  { %4740 = vmatprep.subr.mxu1 %v1787_v15 }
 0x349   :  { %4741 = vmatpush3.msra.mxu1 %v1787_v15 }
 0x34a   :  { %4742 = vmatprep.subr.mxu1 %v1786_v7 }
 0x34b   :  { %4743 = vmatpush3.msra.mxu1 %v1786_v7 }
 0x34c   :  { %4745 = vmatmul.mubr.msk.f32.vlgmr.msra.gmra.mxu1 %vm1828_vm13, %v6190_v53  ;;  %4747 = vmatprep.subr.mxu1 %v1801_v14 }
 0x34d   :  { %4748 = vmatpush3.msra.mxu1 %v1801_v14  ;;  %4763 = vmatprep.mubr.msk.f32.mxu1 %vm1828_vm13, %v6072_v24 }
 0x34e   :  { %4749 = vmatprep.subr.mxu1 %v1800_v12 }
 0x34f   :  { %4750 = vmatpush3.msra.mxu1 %v1800_v12 }
 0x350   :  { %4751 = vmatprep.subr.mxu1 %v1799_v11 }
 0x351   :  { %4752 = vmatpush3.msra.mxu1 %v1799_v11 }
 0x352   :  { %4753 = vmatprep.subr.mxu1 %v1798_v4 }
 0x353   :  { %4754 = vmatpush3.msra.mxu1 %v1798_v4 }
 0x354   :  { %4755 = vmatprep.subr.mxu1 %v1797_v9 }
 0x355   :  { %4756 = vmatpush3.msra.mxu1 %v1797_v9 }
 0x356   :  { %4757 = vmatprep.subr.mxu1 %v1796_v23 }
 0x357   :  { %4758 = vmatpush3.msra.mxu1 %v1796_v23 }
 0x358   :  { %4759 = vmatprep.subr.mxu1 %v1795_v44 }
 0x359   :  { %4760 = vmatpush3.msra.mxu1 %v1795_v44 }
 0x35a   :  { %4761 = vmatprep.subr.mxu1 %v1794_v6 }
 0x35b   :  { %4762 = vmatpush3.msra.mxu1 %v1794_v6 }
 0x35c   :  { %4764 = vmatmul.mubr.msk.f32.vlgmr.msra.gmra.mxu1 %vm1828_vm13, %v6190_v53  ;;  %4766 = vmatprep.subr.mxu1 %v1809_v45 }
 0x35d   :  { %4767 = vmatpush3.msra.mxu1 %v1809_v45  ;;  %4782 = vmatprep.mubr.msk.f32.mxu1 %vm1828_vm13, %v6072_v24 }
 0x35e   :  { %4768 = vmatprep.subr.mxu1 %v1808_v22 }
 0x35f   :  { %4769 = vmatpush3.msra.mxu1 %v1808_v22 }
 0x360   :  { %4770 = vmatprep.subr.mxu1 %v1807_v30 }
 0x361   :  { %4771 = vmatpush3.msra.mxu1 %v1807_v30 }
 0x362   :  { %4772 = vmatprep.subr.mxu1 %v1806_v60 }
 0x363   :  { %4773 = vmatpush3.msra.mxu1 %v1806_v60 }
 0x364   :  { %4774 = vmatprep.subr.mxu1 %v1805_v3 }
 0x365   :  { %4775 = vmatpush3.msra.mxu1 %v1805_v3 }
 0x366   :  { %4776 = vmatprep.subr.mxu1 %v1804_v13 }
 0x367   :  { %4777 = vmatpush3.msra.mxu1 %v1804_v13 }
 0x368   :  { %4778 = vmatprep.subr.mxu1 %v1803_v32 }
 0x369   :  { %4779 = vmatpush3.msra.mxu1 %v1803_v32 }
 0x36a   :  { %4780 = vmatprep.subr.mxu1 %v1802_v37 }
 0x36b   :  { %4781 = vmatpush3.msra.mxu1 %v1802_v37 }
 0x36c   :  { %4783 = vmatmul.mubr.msk.f32.vlgmr.msra.gmra.mxu1 %vm1828_vm13, %v6190_v53  ;;  %4804 = vmatprep.subr.mxu1 %v1825_v10 }
 0x36d   :  { %4805 = vmatpush3.msra.mxu1 %v1825_v10  ;;  %4820 = vmatprep.mubr.msk.f32.mxu1 %vm1828_vm13, %v6072_v24  ;;  %v1818_v24 = vmax.f32 %v6391_v63, 0.0 }
 0x36e   :  { %4806 = vmatprep.subr.mxu1 %v1824_v28 }
 0x36f   :  { %4807 = vmatpush3.msra.mxu1 %v1824_v28 }
 0x370   :  { %4808 = vmatprep.subr.mxu1 %v1823_v59 }
 0x371   :  { %4809 = vmatpush3.msra.mxu1 %v1823_v59 }
 0x372   :  { %4810 = vmatprep.subr.mxu1 %v1822_v27 }
 0x373   :  { %4811 = vmatpush3.msra.mxu1 %v1822_v27 }
 0x374   :  { %4812 = vmatprep.subr.mxu1 %v1821_v29 }
 0x375   :  { %4813 = vmatpush3.msra.mxu1 %v1821_v29 }
 0x376   :  { %4814 = vmatprep.subr.mxu1 %v1820_v47 }
 0x377   :  { %4815 = vmatpush3.msra.mxu1 %v1820_v47 }
 0x378   :  { %4816 = vmatprep.subr.mxu1 %v1819_v2 }
 0x379   :  { %4817 = vmatpush3.msra.mxu1 %v1819_v2 }
 0x37a   :  { %4818 = vmatprep.subr.mxu1 %v1818_v24 }
 0x37b   :  { %4819 = vmatpush3.msra.mxu1 %v1818_v24 }
 0x37c   :  { %4821 = vmatmul.mubr.msk.f32.vlgmr.msra.gmra.mxu1 %vm1828_vm13, %v6190_v53  ;;  %4834 = vmatprep.subr.mxu1 %v7210_v35  ;;  %v4200_v53 = vld [vmem:[%s7109_s7 + $0x30] sm:$0xff] }
 0x37d   :  { %4842 = vmatprep.mubr.msk.f32.mxu1 %vm5062_vm3, %v7210_v35  ;;  %4835 = vmatpush3.msra.mxu1 %v4210_v61 }
 0x37e   :  { %4836 = vmatprep.subr.mxu1 %v7210_v35  ;;  %4826 = vmatpush3.msra.mxu0 %v4200_v53 }
 0x37f   :  { %4837 = vmatpush3.msra.mxu1 %v4209_v21  ;;  %4827 = vmatprep.subr.mxu0 %v7210_v35 }
 0x380   :  { %4838 = vmatprep.subr.mxu1 %v7210_v35  ;;  %4828 = vmatpush3.msra.mxu0 %v4199_v39 }
 0x381   :  { %4839 = vmatpush3.msra.mxu1 %v4208_v31  ;;  %4829 = vmatprep.subr.mxu0 %v7210_v35 }
 0x382   :  { %4840 = vmatprep.subr.mxu1 %v7210_v35  ;;  %4830 = vmatpush3.msra.mxu0 %v4198_v34 }
 0x383   :  { %4841 = vmatpush3.msra.mxu1 %v4207_v33  ;;  %4845 = vmatprep.subr.mxu0 %v7210_v35 }
 0x384   :  { %4856 = vmatprep.subr.mxu1 %v7210_v35 }
 0x3dc   :  { %v6486_v19 = vpop.f32.mrf.mxu1 }
 0x3dd   :  { %v3648_v41 = vrot.slane %v6486_v19, 2  ;;  %v3734_v62 = vrot.slane %v6486_v19, 4  ;;  %v3820_v36 = vrot.slane %v6486_v19, 6 }
 0x3de   :  { %v6488_v1 = vpop.f32.mrf.mxu1 }
 0x3df   :  { %v2452_v10 = vrot.slane %v6488_v1, 1  ;;  %v2548_v29 = vrot.slane %v6488_v1, 3 }
 0x3e1   :  { %v6557_v47 = vpop.f32.mrf.mxu0 }
 0x3ec   :  { %v6490_v52 = vpop.f32.mrf.mxu1 }
 0x3ed   :  { %v3562_v55 = vrot.slane %v6490_v52, 7  ;;  %v3649_v20 = vrot.slane %v6490_v52, 1  ;;  %v3735_v54 = vrot.slane %v6490_v52, 3  ;;  %v3821_v63 = vrot.slane %v6490_v52, 5 }
 0x3ee   :  { %v6504_v48 = vpop.f32.mrf.mxu1 }
 0x3ef   :  { %v3563_v17 = vsel %vm1115_vm4, %v3562_v55, %v6486_v19  ;;  %v3650_v46 = vsel %vm1115_vm4, %v3649_v20, %v3648_v41  ;;  %v3736_v42 = vsel %vm1115_vm4, %v3735_v54, %v3734_v62  ;;  %v3822_v57 = vsel %vm1115_vm4, %v3821_v63, %v3820_v36  ;;  %v6573_v63 = vpop.f32.mrf.mxu0 }
 0x3f0   :  { %v2549_v37 = vrot.slane %v6504_v48, 2  ;;  %v2453_v56 = vsel %vm1115_vm4, %v6504_v48, %v2452_v10  ;;  %v2645_v33 = vrot.slane %v6504_v48, 4  ;;  %v2644_v54 = vrot.slane %v6488_v1, 5 }
 0x3f2   :  { %v2550_v39 = vsel %vm1115_vm4, %v2549_v37, %v2548_v29 }
 0x3fc   :  { %v6506_v43 = vpop.f32.mrf.mxu1 }
 0x3fd   :  { %v3651_v8 = vsel %vm1117_vm5, %v6506_v43, %v3650_v46  ;;  %v3564_v49 = vrot.slane %v6506_v43, 6  ;;  %v3737_v58 = vrot.slane %v6506_v43, 2  ;;  %v3823_v51 = vrot.slane %v6506_v43, 4 }
 0x3fe   :  { %v6516_v38 = vpop.f32.mrf.mxu1  ;;  %v2462_v46 = vrot.slane %v6573_v63, 3 }
 0x3ff   :  { %v3565_v25 = vsel %vm1117_vm5, %v3564_v49, %v3563_v17  ;;  %v3738_v40 = vsel %vm1117_vm5, %v3737_v58, %v3736_v42  ;;  %v3824_v5 = vsel %vm1117_vm5, %v3823_v51, %v3822_v57  ;;  %v2454_v28 = vrot.slane %v6516_v38, 7 }
 0x400   :  { %v2551_v59 = vrot.slane %v6516_v38, 1  ;;  %v2558_v57 = vrot.slane %v6573_v63, 5  ;;  %v3744_v51 = vrot.slane %v6557_v47, 6 }
 0x401   :  { %v2455_v55 = vsel %vm1117_vm5, %v2454_v28, %v2453_v56  ;;  %v4218_v28 = vld [vmem:[%s7109_s7 + $0xb0] sm:$0xff] }
 0x402   :  { %v2552_v20 = vsel %vm1117_vm5, %v2551_v59, %v2550_v39  ;;  %v4227_v59 = vld [vmem:[%s7109_s7 + $0xf0] sm:$0xff]  ;;  %v4217_v39 = vld [vmem:[%s7109_s7 + $0xa8] sm:$0xff] }
 0x40c   :  { %v6518_v18 = vpop.f32.mrf.mxu1 }
 0x40d   :  { %v3566_v0 = vrot.slane %v6518_v18, 5  ;;  %v3652_v16 = vrot.slane %v6518_v18, 7  ;;  %v3739_v50 = vrot.slane %v6518_v18, 1  ;;  %v3825_v26 = vrot.slane %v6518_v18, 3 }
 0x40e   :  { %v6528_v11 = vpop.f32.mrf.mxu1 }
 0x40f   :  { %v3567_v15 = vsel %vm1119_vm6, %v3566_v0, %v3565_v25  ;;  %v3653_v7 = vsel %vm1119_vm6, %v3652_v16, %v3651_v8  ;;  %v3740_v14 = vsel %vm1119_vm6, %v3739_v50, %v3738_v40  ;;  %v3826_v12 = vsel %vm1119_vm6, %v3825_v26, %v3824_v5 }
 0x410   :  { %v2456_v2 = vrot.slane %v6528_v11, 6  ;;  %v2553_v62 = vsel %vm1119_vm6, %v6528_v11, %v2552_v20  ;;  %v2740_v8 = vrot.slane %v6488_v1, 7  ;;  %v2741_v25 = vrot.slane %v6504_v48, 6 }
 0x411   :  { %v2647_v40 = vrot.slane %v6516_v38, 3  ;;  %v2743_v5 = vrot.slane %v6516_v38, 5  ;;  %v2646_v16 = vsel %vm1115_vm4, %v2645_v33, %v2644_v54  ;;  %v2654_v20 = vrot.slane %v6573_v63, 7 }
 0x412   :  { %v2457_v41 = vsel %vm1119_vm6, %v2456_v2, %v2455_v55  ;;  %v2742_v2 = vsel %vm1115_vm4, %v2741_v25, %v2740_v8  ;;  %v2844_v8 = vrot.slane %v6486_v19, 1 }
 0x413   :  { %v2648_v29 = vsel %vm1117_vm5, %v2647_v40, %v2646_v16 }
 0x41c   :  { %v6530_v4 = vpop.f32.mrf.mxu1 }
 0x41d   :  { %v3741_v9 = vsel %vm1121_vm7, %v6530_v4, %v3740_v14  ;;  %v3568_v23 = vrot.slane %v6530_v4, 4  ;;  %v3654_v44 = vrot.slane %v6530_v4, 6  ;;  %v3827_v6 = vrot.slane %v6530_v4, 2 }
 0x41e   :  { %v6544_v60 = vpop.f32.mrf.mxu1 }
 0x41f   :  { %v6538_v45 = vsel %vm1121_vm7, %v3568_v23, %v3567_v15  ;;  %v6541_v22 = vsel %vm1121_vm7, %v3654_v44, %v3653_v7  ;;  %v3828_v30 = vsel %vm1121_vm7, %v3827_v6, %v3826_v12  ;;  %v2458_v61 = vrot.slane %v6544_v60, 5  ;;  %v4228_v23 = vld [vmem:[%s7109_s7 + $0xf8] sm:$0xff] }
 0x420   :  { %v2554_v53 = vrot.slane %v6544_v60, 7  ;;  %v2649_v15 = vrot.slane %v6528_v11, 2  ;;  %v2745_v44 = vrot.slane %v6528_v11, 4  ;;  %v2651_v37 = vrot.slane %v6544_v60, 1 }
 0x421   :  { %v2459_v17 = vsel %vm1121_vm7, %v2458_v61, %v2457_v41  ;;  %v2747_v10 = vrot.slane %v6544_v60, 3  ;;  %v2744_v61 = vsel %vm1117_vm5, %v2743_v5, %v2742_v2  ;;  %v2751_v41 = vrot.slane %v6573_v63, 1 }
 0x422   :  { %v2555_v42 = vsel %vm1121_vm7, %v2554_v53, %v2553_v62  ;;  %v2746_v33 = vsel %vm1119_vm6, %v2745_v44, %v2744_v61  ;;  %v4216_v62 = vld [vmem:[%s7109_s7 + $0xa0] sm:$0xff]  ;;  %v2940_v5 = vrot.slane %v6486_v19, 3  ;;  %v2845_v44 = vsel %vm1115_vm4, %v6490_v52, %v2844_v8 }
 0x423   :  { %v2748_v54 = vsel %vm1121_vm7, %v2747_v10, %v2746_v33 }
 0x42c   :  { %v6546_v3 = vpop.f32.mrf.mxu1 }
 0x42d   :  { %v3742_v13 = vrot.slane %v6546_v3, 7  ;;  %v3829_v24 = vrot.slane %v6546_v3, 1 }
 0x42e   :  { %v6554_v27 = vpop.f32.mrf.mxu1 }
 0x42f   :  { %v3743_v32 = vsel %vm1123_vm8, %v3742_v13, %v3741_v9  ;;  %v2460_v21 = vrot.slane %v6554_v27, 4  ;;  %v2556_v31 = vrot.slane %v6554_v27, 6  ;;  %v3830_v34 = vsel %vm1123_vm8, %v3829_v24, %v3828_v30  ;;  %v4219_v9 = vld [vmem:[%s7109_s7 + $0xb8] sm:$0xff] }
 0x430   :  { %v2749_v24 = vrot.slane %v6554_v27, 2  ;;  %v3745_v56 = vsel %vm1125_vm9, %v3744_v51, %v3743_v32  ;;  %v4226_v32 = vld [vmem:[%s7109_s7 + $0xe8] sm:$0xff]  ;;  %v2943_v51 = vrot.slane %v6506_v43, 1 }
 0x431   :  { %v2461_v49 = vsel %vm1123_vm8, %v2460_v21, %v2459_v17  ;;  %v2557_v58 = vsel %vm1123_vm8, %v2556_v31, %v2555_v42  ;;  %v3831_v21 = vsel %vm1125_vm9, %v6557_v47, %v3830_v34  ;;  %v2650_v31 = vsel %vm1119_vm6, %v2649_v15, %v2648_v29  ;;  %v4246_v15 = vld [vmem:[%s7109_s7 + $0x178] sm:$0xff] }
 0x432   :  { %v2463_v14 = vsel %vm1125_vm9, %v2462_v46, %v2461_v49  ;;  %v2559_v12 = vsel %vm1125_vm9, %v2558_v57, %v2557_v58  ;;  %v2652_v34 = vsel %vm1121_vm7, %v2651_v37, %v2650_v31  ;;  %v2750_v42 = vsel %vm1123_vm8, %v2749_v24, %v2748_v54  ;;  %v4225_v57 = vld [vmem:[%s7109_s7 + $0xe0] sm:$0xff] }
 0x433   :  { %v2653_v17 = vsel %vm1123_vm8, %v6554_v27, %v2652_v34  ;;  %v2941_v49 = vrot.slane %v6490_v52, 2  ;;  %v2846_v58 = vrot.slane %v6506_v43, 7  ;;  %v2752_v40 = vsel %vm1125_vm9, %v2751_v41, %v2750_v42 }
 0x434   :  { %v2655_v25 = vsel %vm1125_vm9, %v2654_v20, %v2653_v17  ;;  %v4243_v20 = vld [vmem:[%s7109_s7 + $0x160] sm:$0xff]  ;;  %v3036_v54 = vrot.slane %v6486_v19, 5  ;;  %v3132_v41 = vrot.slane %v6486_v19, 7  ;;  %v3133_v17 = vrot.slane %v6490_v52, 6 }
 0x435   :  { %v2847_v37 = vsel %vm1117_vm5, %v2846_v58, %v2845_v44  ;;  %v3135_v42 = vrot.slane %v6506_v43, 5  ;;  %v3041_v58 = vrot.slane %v6518_v18, 2  ;;  %v3046_v44 = vrot.slane %v6557_v47, 7 }
 0x43c   :  { %v6578_v36 = vpop.f32.mrf.mxu1 }
 0x43d   :  { %v3746_v7 = vrot.slane %v6578_v36, 5  ;;  %v3832_v6 = vrot.slane %v6578_v36, 7  ;;  %v2856_v31 = vrot.slane %v6578_v36, 2  ;;  %v2952_v34 = vrot.slane %v6578_v36, 4 }
 0x43e   :  { %v6591_v0 = vpop.f32.mrf.mxu1 }
 0x43f   :  { %v2464_v50 = vrot.slane %v6591_v0, 2  ;;  %v2560_v26 = vrot.slane %v6591_v0, 4  ;;  %v6626_v53 = vsel %vm1127_vm10, %v3746_v7, %v3745_v56  ;;  %v6641_v55 = vsel %vm1127_vm10, %v3832_v6, %v3831_v21 }
 0x440   :  { %v2656_v46 = vrot.slane %v6591_v0, 6  ;;  %v2848_v7 = vrot.slane %v6518_v18, 6  ;;  %v2852_v6 = vrot.slane %v6546_v3, 4  ;;  %v2854_v56 = vrot.slane %v6557_v47, 3 }
 0x441   :  { %v2465_v30 = vsel %vm1127_vm10, %v2464_v50, %v2463_v14  ;;  %v2561_v13 = vsel %vm1127_vm10, %v2560_v26, %v2559_v12  ;;  %v2753_v50 = vsel %vm1127_vm10, %v6591_v0, %v2752_v40  ;;  %v4237_v26 = vld [vmem:[%s7109_s7 + $0x138] sm:$0xff]  ;;  %v2850_v14 = vrot.slane %v6530_v4, 5 }
 0x442   :  { %4832 = vmatmul.mubr.msk.f32.vlgmr.msra.gmra.mxu0 %vm702_vm2, %v2465_v30  ;;  %4843 = vmatmul.mubr.msk.f32.vlgmr.msra.gmra.mxu1 %vm702_vm2, %v2561_v13  ;;  %v2657_v16 = vsel %vm1127_vm10, %v2656_v46, %v2655_v25  ;;  %v2946_v12 = vrot.slane %v6530_v4, 7  ;;  %v2942_v30 = vsel %vm1115_vm4, %v2941_v49, %v2940_v5  ;;  %v2948_v13 = vrot.slane %v6546_v3, 6  ;;  %v4264_v49 = vld [vmem:[%s7109_s7 + $0x1f8] sm:$0xff]  ;;  %v4254_v5 = vld [vmem:[%s7109_s7 + $0x1b0] sm:$0xff] }
 0x443   :  { %4846 = vmatpush3.msra.mxu0 %v4219_v9  ;;  %4857 = vmatpush3.msra.mxu1 %v4228_v23  ;;  %v4236_v9 = vld [vmem:[%s7109_s7 + $0x130] sm:$0xff]  ;;  %v2944_v10 = vsel %vm1117_vm5, %v2943_v51, %v2942_v30  ;;  %v2849_v29 = vsel %vm1119_vm6, %v2848_v7, %v2847_v37  ;;  %v2950_v21 = vrot.slane %v6557_v47, 5  ;;  %v3039_v46 = vrot.slane %v6506_v43, 3  ;;  %v4255_v43 = vld [vmem:[%s7109_s7 + $0x1b8] sm:$0xff]  ;;  %v4253_v7 = vld [vmem:[%s7109_s7 + $0x1a8] sm:$0xff] }
 0x444   :  { %4847 = vmatprep.subr.mxu0 %v7210_v35  ;;  %4858 = vmatprep.subr.mxu1 %v7210_v35  ;;  %v4245_v23 = vld [vmem:[%s7109_s7 + $0x170] sm:$0xff]  ;;  %v2945_v2 = vsel %vm1119_vm6, %v6518_v18, %v2944_v10  ;;  %v2851_v24 = vsel %vm1121_vm7, %v2850_v14, %v2849_v29  ;;  %v3137_v51 = vrot.slane %v6518_v18, 4  ;;  %v3043_v25 = vrot.slane %v6530_v4, 1  ;;  %v4262_v14 = vld [vmem:[%s7109_s7 + $0x1e8] sm:$0xff] }
 0x445   :  { %4848 = vmatpush3.msra.mxu0 %v4218_v28  ;;  %4859 = vmatpush3.msra.mxu1 %v4227_v59  ;;  %v4235_v28 = vld [vmem:[%s7109_s7 + $0x128] sm:$0xff]  ;;  %v2947_v61 = vsel %vm1121_vm7, %v2946_v12, %v2945_v2  ;;  %v3139_v40 = vrot.slane %v6530_v4, 3  ;;  %v4263_v18 = vld [vmem:[%s7109_s7 + $0x1f0] sm:$0xff]  ;;  %v3143_v30 = vrot.slane %v6557_v47, 1  ;;  %v3048_v10 = vrot.slane %v6578_v36, 6 }
 0x446   :  { %4849 = vmatprep.subr.mxu0 %v7210_v35  ;;  %4860 = vmatprep.subr.mxu1 %v7210_v35  ;;  %v4244_v59 = vld [vmem:[%s7109_s7 + $0x168] sm:$0xff]  ;;  %v2949_v33 = vsel %vm1123_vm8, %v2948_v13, %v2947_v61  ;;  %v4252_v13 = vld [vmem:[%s7109_s7 + $0x1a0] sm:$0xff]  ;;  %v3218_v29 = vrot.slane %v6504_v48, 7  ;;  %v3305_v2 = vrot.slane %v6504_v48, 1 }
 0x447   :  { %4850 = vmatpush3.msra.mxu0 %v4217_v39  ;;  %4861 = vmatpush3.msra.mxu1 %v4226_v32  ;;  %v4234_v39 = vld [vmem:[%s7109_s7 + $0x120] sm:$0xff]  ;;  %v2853_v32 = vsel %vm1123_vm8, %v2852_v6, %v2851_v24  ;;  %v2951_v19 = vsel %vm1125_vm9, %v2950_v21, %v2949_v33  ;;  %v3304_v24 = vrot.slane %v6488_v1, 2  ;;  %v4206_v33 = vld [vmem:[%s7109_s7 + $0x58] sm:$0xff] }
 0x448   :  { %4851 = vmatprep.subr.mxu0 %v7210_v35  ;;  %4862 = vmatprep.subr.mxu1 %v7210_v35  ;;  %v2953_v8 = vsel %vm1127_vm10, %v2952_v34, %v2951_v19  ;;  %v3222_v34 = vrot.slane %v6528_v11, 5  ;;  %v3312_v19 = vrot.slane %v6554_v27, 5 }
 0x449   :  { %4852 = vmatpush3.msra.mxu0 %v4216_v62  ;;  %4853 = vmatprep.mubr.msk.f32.mxu0 %vm5062_vm3, %v7210_v35  ;;  %v3037_v62 = vrot.slane %v6490_v52, 4 }
 0x44a   :  { %4863 = vmatpush3.msra.mxu1 %v4225_v57  ;;  %4864 = vmatprep.mubr.msk.f32.mxu1 %vm5062_vm3, %v7210_v35  ;;  %v2855_v57 = vsel %vm1125_vm9, %v2854_v56, %v2853_v32  ;;  %v3220_v56 = vrot.slane %v6516_v38, 6 }
 0x44b   :  { %4854 = vmatmul.mubr.msk.f32.vlgmr.msra.gmra.mxu0 %vm702_vm2, %v2657_v16  ;;  %4865 = vmatmul.mubr.msk.f32.vlgmr.msra.gmra.mxu1 %vm702_vm2, %v2753_v50  ;;  %v2857_v52 = vsel %vm1127_vm10, %v2856_v31, %v2855_v57  ;;  %v3038_v16 = vsel %vm1115_vm4, %v3037_v62, %v3036_v54  ;;  %v3134_v50 = vsel %vm1115_vm4, %v3133_v17, %v3132_v41  ;;  %v2438_v31 = vld [vmem:[%s7109_s7 + $0x18] sm:$0xff]  ;;  %v3224_v54 = vrot.slane %v6544_v60, 4  ;;  %v2437_v62 = vld [vmem:[%s7109_s7 + $0x10] sm:$0xff] }
 0x44c   :  { %4867 = vmatprep.subr.mxu0 %v7210_v35  ;;  %4878 = vmatprep.subr.mxu1 %v7210_v35  ;;  %v3040_v4 = vsel %vm1117_vm5, %v3039_v46, %v3038_v16  ;;  %v3310_v41 = vrot.slane %v6544_v60, 6  ;;  %v4205_v17 = vld [vmem:[%s7109_s7 + $0x50] sm:$0xff]  ;;  %v3219_v46 = vsel %vm1115_vm4, %v3218_v29, %v6488_v1  ;;  %v3306_v57 = vsel %vm1115_vm4, %v3305_v2, %v3304_v24  ;;  %v2435_v16 = vld [vmem:[%s7109_s7] sm:$0xff] }
 0x44d   :  { %4868 = vmatpush3.msra.mxu0 %v4237_v26  ;;  %4879 = vmatpush3.msra.mxu1 %v4246_v15  ;;  %v3141_v26 = vrot.slane %v6546_v3, 2  ;;  %v3136_v15 = vsel %vm1117_vm5, %v3135_v42, %v3134_v50  ;;  %v3042_v12 = vsel %vm1119_vm6, %v3041_v58, %v3040_v4  ;;  %v3226_v42 = vrot.slane %v6554_v27, 3  ;;  %v4214_v29 = vld [vmem:[%s7109_s7 + $0x90] sm:$0xff] }
 0x44e   :  { %4869 = vmatprep.subr.mxu0 %v7210_v35  ;;  %4880 = vmatprep.subr.mxu1 %v7210_v35  ;;  %v4223_v2 = vld [vmem:[%s7109_s7 + $0xd0] sm:$0xff]  ;;  %v3398_v24 = vrot.slane %v6554_v27, 7 }
 0x44f   :  { %4870 = vmatpush3.msra.mxu0 %v4236_v9  ;;  %4881 = vmatpush3.msra.mxu1 %v4245_v23  ;;  %v3138_v9 = vsel %vm1119_vm6, %v3137_v51, %v3136_v15  ;;  %v3044_v23 = vsel %vm1121_vm7, %v3043_v25, %v3042_v12  ;;  %v3316_v15 = vrot.slane %v6591_v0, 3  ;;  %v3476_v12 = vrot.slane %v6488_v1, 6 }
 0x450   :  { %4871 = vmatprep.subr.mxu0 %v7210_v35  ;;  %4882 = vmatprep.subr.mxu1 %v7210_v35  ;;  %v3140_v6 = vsel %vm1121_vm7, %v3139_v40, %v3138_v9  ;;  %v3045_v37 = vsel %vm1123_vm8, %v6546_v3, %v3044_v23  ;;  %v3228_v40 = vrot.slane %v6573_v63, 2  ;;  %v3391_v9 = vrot.slane %v6504_v48, 3 }
 0x451   :  { %4872 = vmatpush3.msra.mxu0 %v4235_v28  ;;  %4883 = vmatpush3.msra.mxu1 %v4244_v59  ;;  %v3142_v28 = vsel %vm1123_vm8, %v3141_v26, %v3140_v6  ;;  %v4261_v59 = vld [vmem:[%s7109_s7 + $0x1e0] sm:$0xff]  ;;  %v3047_v61 = vsel %vm1125_vm9, %v3046_v44, %v3045_v37  ;;  %v3230_v26 = vrot.slane %v6591_v0, 1  ;;  %v3477_v23 = vrot.slane %v6504_v48, 5  ;;  %v4224_v37 = vld [vmem:[%s7109_s7 + $0xd8] sm:$0xff] }
 0x452   :  { %4873 = vmatprep.subr.mxu0 %v7210_v35  ;;  %4884 = vmatprep.subr.mxu1 %v7210_v35  ;;  %v3144_v21 = vsel %vm1125_vm9, %v3143_v30, %v3142_v28  ;;  %v3393_v44 = vrot.slane %v6516_v38, 2  ;;  %v3479_v6 = vrot.slane %v6516_v38, 4  ;;  %v3481_v28 = vrot.slane %v6528_v11, 3 }
 0x453   :  { %4874 = vmatpush3.msra.mxu0 %v4234_v39  ;;  %4875 = vmatprep.mubr.msk.f32.mxu0 %vm5062_vm3, %v7210_v35  ;;  %v3049_v39 = vsel %vm1127_vm10, %v3048_v10, %v3047_v61  ;;  %v3145_v32 = vsel %vm1127_vm10, %v6578_v36, %v3144_v21  ;;  %v3395_v10 = vrot.slane %v6528_v11, 1  ;;  %v3485_v61 = vrot.slane %v6554_v27, 1 }
 0x454   :  { %4885 = vmatpush3.msra.mxu1 %v4243_v20  ;;  %4886 = vmatprep.mubr.msk.f32.mxu1 %vm5062_vm3, %v7210_v35  ;;  %v3308_v20 = vrot.slane %v6528_v11, 7 }
 0x455   :  { %4876 = vmatmul.mubr.msk.f32.vlgmr.msra.gmra.mxu0 %vm702_vm2, %v2857_v52  ;;  %4887 = vmatmul.mubr.msk.f32.vlgmr.msra.gmra.mxu1 %vm702_vm2, %v2953_v8  ;;  %v3221_v52 = vsel %vm1117_vm5, %v3220_v56, %v3219_v46  ;;  %v3307_v8 = vsel %vm1117_vm5, %v6516_v38, %v3306_v57  ;;  %v4215_v38 = vld [vmem:[%s7109_s7 + $0x98] sm:$0xff]  ;;  %v3478_v56 = vsel %vm1115_vm4, %v3477_v23, %v3476_v12  ;;  %v4250_v12 = vld [vmem:[%s7109_s7 + $0x190] sm:$0xff]  ;;  %v4249_v23 = vld [vmem:[%s7109_s7 + $0x188] sm:$0xff] }
 0x456   :  { %4889 = vmatprep.subr.mxu0 %v7210_v35  ;;  %4900 = vmatprep.subr.mxu1 %v7210_v35  ;;  %v3223_v58 = vsel %vm1119_vm6, %v3222_v34, %v3221_v52  ;;  %v3309_v51 = vsel %vm1119_vm6, %v3308_v20, %v3307_v8  ;;  %v3400_v20 = vrot.slane %v6573_v63, 6  ;;  %v4233_v8 = vld [vmem:[%s7109_s7 + $0x118] sm:$0xff] }
 0x457   :  { %4890 = vmatpush3.msra.mxu0 %v4255_v43  ;;  %4901 = vmatpush3.msra.mxu1 %v4264_v49  ;;  %v2436_v43 = vld [vmem:[%s7109_s7 + $0x8] sm:$0xff]  ;;  %v3225_v25 = vsel %vm1121_vm7, %v3224_v54, %v3223_v58  ;;  %v3570_v58 = vrot.slane %v6546_v3, 3 }
 0x458   :  { %4891 = vmatprep.subr.mxu0 %v7210_v35  ;;  %4902 = vmatprep.subr.mxu1 %v7210_v35  ;;  %v4204_v49 = vld [vmem:[%s7109_s7 + $0x48] sm:$0xff]  ;;  %v3227_v50 = vsel %vm1123_vm8, %v3226_v42, %v3225_v25  ;;  %v4221_v42 = vld [vmem:[%s7109_s7 + $0xc0] sm:$0xff] }
 0x459   :  { %4892 = vmatpush3.msra.mxu0 %v4254_v5  ;;  %4903 = vmatpush3.msra.mxu1 %v4263_v18  ;;  %v3311_v5 = vsel %vm1121_vm7, %v3310_v41, %v3309_v51  ;;  %v3314_v18 = vrot.slane %v6573_v63, 4  ;;  %v3229_v30 = vsel %vm1125_vm9, %v3228_v40, %v3227_v50  ;;  %v4212_v41 = vld [vmem:[%s7109_s7 + $0x80] sm:$0xff]  ;;  %v3656_v51 = vrot.slane %v6546_v3, 5  ;;  %v4231_v25 = vld [vmem:[%s7109_s7 + $0x108] sm:$0xff] }
 0x45a   :  { %4893 = vmatprep.subr.mxu0 %v7210_v35  ;;  %4904 = vmatprep.subr.mxu1 %v7210_v35  ;;  %v3313_v4 = vsel %vm1123_vm8, %v3312_v19, %v3311_v5  ;;  %v3231_v48 = vsel %vm1127_vm10, %v3230_v26, %v3229_v30  ;;  %v4240_v40 = vld [vmem:[%s7109_s7 + $0x148] sm:$0xff]  ;;  %v3572_v5 = vrot.slane %v6557_v47, 2  ;;  %v3658_v3 = vrot.slane %v6557_v47, 4  ;;  %v4239_v47 = vld [vmem:[%s7109_s7 + $0x140] sm:$0xff] }
 0x45b   :  { %4894 = vmatpush3.msra.mxu0 %v4253_v7  ;;  %4905 = vmatpush3.msra.mxu1 %v4262_v14  ;;  %v4203_v7 = vld [vmem:[%s7109_s7 + $0x40] sm:$0xff]  ;;  %v3390_v14 = vrot.slane %v6488_v1, 4  ;;  %v3315_v1 = vsel %vm1125_vm9, %v3314_v18, %v3313_v4  ;;  %v3574_v50 = vrot.slane %v6578_v36, 1  ;;  %v3657_v26 = vsel %vm1123_vm8, %v3656_v51, %v6541_v22 }
 0x45c   :  { %4895 = vmatprep.subr.mxu0 %v7210_v35  ;;  %4906 = vmatprep.subr.mxu1 %v7210_v35  ;;  %v4230_v18 = vld [vmem:[%s7109_s7 + $0x100] sm:$0xff]  ;;  %v3660_v4 = vrot.slane %v6578_v36, 3  ;;  %v3659_v22 = vsel %vm1125_vm9, %v3658_v3, %v3657_v26 }
 0x45d   :  { %4896 = vmatpush3.msra.mxu0 %v4252_v13  ;;  %4897 = vmatprep.mubr.msk.f32.mxu0 %vm5062_vm3, %v7210_v35  ;;  %v3317_v13 = vsel %vm1127_vm10, %v3316_v15, %v3315_v1  ;;  %v3392_v11 = vsel %vm1115_vm4, %v3391_v9, %v3390_v14  ;;  %v4260_v14 = vld [vmem:[%s7109_s7 + $0x1d8] sm:$0xff]  ;;  %v4259_v9 = vld [vmem:[%s7109_s7 + $0x1d0] sm:$0xff]  ;;  %v4257_v30 = vld [vmem:[%s7109_s7 + $0x1c0] sm:$0xff] }
 0x45e   :  { %4907 = vmatpush3.msra.mxu1 %v4261_v59  ;;  %4908 = vmatprep.mubr.msk.f32.mxu1 %vm5062_vm3, %v7210_v35  ;;  %v3483_v59 = vrot.slane %v6544_v60, 2  ;;  %v3394_v21 = vsel %vm1117_vm5, %v3393_v44, %v3392_v11  ;;  %v3661_v15 = vsel %vm1127_vm10, %v3660_v4, %v3659_v22  ;;  %v4258_v44 = vld [vmem:[%s7109_s7 + $0x1c8] sm:$0xff]  ;;  %v3924_v1 = vld [vmem:[%s7111_s9 + $0x18] sm:$0xff] }
 0x45f   :  { %4898 = vmatmul.mubr.msk.f32.vlgmr.msra.gmra.mxu0 %vm702_vm2, %v3049_v39  ;;  %4909 = vmatmul.mubr.msk.f32.vlgmr.msra.gmra.mxu1 %vm702_vm2, %v3145_v32  ;;  %v3480_v39 = vsel %vm1117_vm5, %v3479_v6, %v3478_v56  ;;  %v4213_v32 = vld [vmem:[%s7109_s7 + $0x88] sm:$0xff]  ;;  %v3396_v27 = vsel %vm1119_vm6, %v3395_v10, %v3394_v21  ;;  %v4248_v6 = vld [vmem:[%s7109_s7 + $0x180] sm:$0xff] }
 0x460   :  { %4911 = vmatprep.subr.mxu0 %v7210_v35  ;;  %4922 = vmatprep.subr.mxu1 %v7210_v35  ;;  %v3397_v34 = vsel %vm1121_vm7, %v6544_v60, %v3396_v27  ;;  %v3488_v60 = vrot.slane %v6591_v0, 7  ;;  %v4010_v10 = vld [vmem:[%s7113_s11 + $0x20] sm:$0xff] }
 0x461   :  { %4912 = vmatpush3.msra.mxu0 %v2438_v31  ;;  %4923 = vmatpush3.msra.mxu1 %v4206_v33  ;;  %v4222_v31 = vld [vmem:[%s7109_s7 + $0xc8] sm:$0xff]  ;;  %v3482_v33 = vsel %vm1119_vm6, %v3481_v28, %v3480_v39  ;;  %v4009_v28 = vld [vmem:[%s7113_s11 + $0x18] sm:$0xff] }
 0x462   :  { %4913 = vmatprep.subr.mxu0 %v7210_v35  ;;  %4924 = vmatprep.subr.mxu1 %v7210_v35  ;;  %v3484_v54 = vsel %vm1121_vm7, %v3483_v59, %v3482_v33 }
 0x463   :  { %4914 = vmatpush3.msra.mxu0 %v2437_v62  ;;  %4925 = vmatpush3.msra.mxu1 %v4205_v17  ;;  %v3399_v62 = vsel %vm1123_vm8, %v3398_v24, %v3397_v34  ;;  %v3402_v17 = vrot.slane %v6591_v0, 5  ;;  %v3486_v46 = vsel %vm1123_vm8, %v3485_v61, %v3484_v54 }
 0x464   :  { %4915 = vmatprep.subr.mxu0 %v7210_v35  ;;  %4926 = vmatprep.subr.mxu1 %v7210_v35  ;;  %v3401_v57 = vsel %vm1125_vm9, %v3400_v20, %v3399_v62  ;;  %v3487_v19 = vsel %vm1125_vm9, %v6573_v63, %v3486_v46  ;;  %v4232_v63 = vld [vmem:[%s7109_s7 + $0x110] sm:$0xff] }
 0x465   :  { %4916 = vmatpush3.msra.mxu0 %v2436_v43  ;;  %4927 = vmatpush3.msra.mxu1 %v4204_v49  ;;  %v3403_v0 = vsel %vm1127_vm10, %v3402_v17, %v3401_v57  ;;  %v3489_v52 = vsel %vm1127_vm10, %v3488_v60, %v3487_v19  ;;  %v4242_v43 = vld [vmem:[%s7109_s7 + $0x158] sm:$0xff]  ;;  %v4241_v49 = vld [vmem:[%s7109_s7 + $0x150] sm:$0xff] }
 0x466   :  { %4917 = vmatprep.subr.mxu0 %v7210_v35  ;;  %4928 = vmatprep.subr.mxu1 %v7210_v35 }
 0x467   :  { %4918 = vmatpush3.msra.mxu0 %v2435_v16  ;;  %4919 = vmatprep.mubr.msk.f32.mxu0 %vm5062_vm3, %v7210_v35  ;;  %v3571_v16 = vsel %vm1123_vm8, %v3570_v58, %v6538_v45 }
 0x468   :  { %4929 = vmatpush3.msra.mxu1 %v4203_v7  ;;  %4930 = vmatprep.mubr.msk.f32.mxu1 %vm5062_vm3, %v7210_v35  ;;  %v3573_v45 = vsel %vm1125_vm9, %v3572_v5, %v3571_v16  ;;  %v4251_v7 = vld [vmem:[%s7109_s7 + $0x198] sm:$0xff] }
 0x469   :  { %4920 = vmatmul.mubr.msk.f32.vlgmr.msra.gmra.mxu0 %vm702_vm2, %v3231_v48  ;;  %4931 = vmatmul.mubr.msk.f32.vlgmr.msra.gmra.mxu1 %vm702_vm2, %v3317_v13  ;;  %v3575_v36 = vsel %vm1127_vm10, %v3574_v50, %v3573_v45  ;;  %v4013_v48 = vld [vmem:[%s7113_s11 + $0x38] sm:$0xff]  ;;  %v4012_v13 = vld [vmem:[%s7113_s11 + $0x30] sm:$0xff] }
 0x46a   :  { %4933 = vmatprep.subr.mxu0 %v7210_v35  ;;  %4944 = vmatprep.subr.mxu1 %v7210_v35 }
 0x46b   :  { %4934 = vmatpush3.msra.mxu0 %v4215_v38  ;;  %4945 = vmatpush3.msra.mxu1 %v4224_v37  ;;  %v3921_v38 = vld [vmem:[%s7111_s9] sm:$0xff]  ;;  %v4011_v37 = vld [vmem:[%s7113_s11 + $0x28] sm:$0xff] }
 0x46c   :  { %4935 = vmatprep.subr.mxu0 %v7210_v35  ;;  %4946 = vmatprep.subr.mxu1 %v7210_v35 }
 0x46d   :  { %4936 = vmatpush3.msra.mxu0 %v4214_v29  ;;  %4947 = vmatpush3.msra.mxu1 %v4223_v2 }
 0x46e   :  { %4937 = vmatprep.subr.mxu0 %v7210_v35  ;;  %4948 = vmatprep.subr.mxu1 %v7210_v35 }
 0x46f   :  { %4938 = vmatpush3.msra.mxu0 %v4213_v32  ;;  %4949 = vmatpush3.msra.mxu1 %v4222_v31 }
 0x470   :  { %4939 = vmatprep.subr.mxu0 %v7210_v35  ;;  %4950 = vmatprep.subr.mxu1 %v7210_v35 }
 0x471   :  { %4940 = vmatpush3.msra.mxu0 %v4212_v41  ;;  %4941 = vmatprep.mubr.msk.f32.mxu0 %vm5062_vm3, %v7210_v35 }
 0x472   :  { %4951 = vmatpush3.msra.mxu1 %v4221_v42  ;;  %4952 = vmatprep.mubr.msk.f32.mxu1 %vm5062_vm3, %v7210_v35 }
 0x473   :  { %4942 = vmatmul.mubr.msk.f32.vlgmr.msra.gmra.mxu0 %vm702_vm2, %v3403_v0  ;;  %4953 = vmatmul.mubr.msk.f32.vlgmr.msra.gmra.mxu1 %vm702_vm2, %v3489_v52 }
 0x474   :  { %4955 = vmatprep.subr.mxu0 %v7210_v35  ;;  %4966 = vmatprep.subr.mxu1 %v7210_v35 }
 0x475   :  { %4956 = vmatpush3.msra.mxu0 %v4233_v8  ;;  %4967 = vmatpush3.msra.mxu1 %v4242_v43 }
 0x476   :  { %4957 = vmatprep.subr.mxu0 %v7210_v35  ;;  %4968 = vmatprep.subr.mxu1 %v7210_v35 }
 0x477   :  { %4958 = vmatpush3.msra.mxu0 %v4232_v63  ;;  %4969 = vmatpush3.msra.mxu1 %v4241_v49 }
 0x478   :  { %4959 = vmatprep.subr.mxu0 %v7210_v35  ;;  %4970 = vmatprep.subr.mxu1 %v7210_v35 }
 0x479   :  { %4960 = vmatpush3.msra.mxu0 %v4231_v25  ;;  %4971 = vmatpush3.msra.mxu1 %v4240_v40 }
 0x47a   :  { %4961 = vmatprep.subr.mxu0 %v7210_v35  ;;  %4972 = vmatprep.subr.mxu1 %v7210_v35 }
 0x47b   :  { %4962 = vmatpush3.msra.mxu0 %v4230_v18  ;;  %4963 = vmatprep.mubr.msk.f32.mxu0 %vm5062_vm3, %v7210_v35 }
 0x47c   :  { %4973 = vmatpush3.msra.mxu1 %v4239_v47  ;;  %4974 = vmatprep.mubr.msk.f32.mxu1 %vm5062_vm3, %v7210_v35 }
 0x47d   :  { %4964 = vmatmul.mubr.msk.f32.vlgmr.msra.gmra.mxu0 %vm702_vm2, %v3575_v36  ;;  %4975 = vmatmul.mubr.msk.f32.vlgmr.msra.gmra.mxu1 %vm702_vm2, %v3661_v15 }
 0x47e   :  { %4977 = vmatprep.subr.mxu0 %v7210_v35  ;;  %4988 = vmatprep.subr.mxu1 %v7210_v35 }
 0x47f   :  { %4978 = vmatpush3.msra.mxu0 %v4251_v7  ;;  %4989 = vmatpush3.msra.mxu1 %v4260_v14  ;;  %v4274_v7 = vld [vmem:[%s7110_s8] ss:$0 sm:$0xff] }
 0x480   :  { %4979 = vmatprep.subr.mxu0 %v7210_v35  ;;  %4990 = vmatprep.subr.mxu1 %v7210_v35 }
 0x481   :  { %4980 = vmatpush3.msra.mxu0 %v4250_v12  ;;  %4991 = vmatpush3.msra.mxu1 %v4259_v9  ;;  %v4008_v9 = vld [vmem:[%s7113_s11 + $0x10] sm:$0xff] }
 0x482   :  { %4981 = vmatprep.subr.mxu0 %v7210_v35  ;;  %4992 = vmatprep.subr.mxu1 %v7210_v35 }
 0x483   :  { %4982 = vmatpush3.msra.mxu0 %v4249_v23  ;;  %4993 = vmatpush3.msra.mxu1 %v4258_v44  ;;  %v4007_v23 = vld [vmem:[%s7113_s11 + $0x8] sm:$0xff]  ;;  %v4006_v44 = vld [vmem:[%s7113_s11] sm:$0xff]  ;;  %s4101_s11 = sshll.u32 %s5064_s27, 4  ;;  %s4102_s11 = int_to_ptr.vmem [resolvable:$true] %s4101_s11 }
 0x484   :  { %4983 = vmatprep.subr.mxu0 %v7210_v35  ;;  %4994 = vmatprep.subr.mxu1 %v7210_v35  ;;  %s5039_s28 = scalar_lea.vmem %s4102_s11, 128  ;;  %p5044_p1 = scmp.lt.s32.totalorder %s4102_s11, %s4102_s11 }
 0x485   :  { %4984 = vmatpush3.msra.mxu0 %v4248_v6  ;;  %4985 = vmatprep.mubr.msk.f32.mxu0 %vm5062_vm3, %v7210_v35  ;;  %v4275_v6 = vld [vmem:[%s7112_s10] ss:$0 sm:$0xff]  ;;  %p5040_p0 = scmp.ne.s32.totalorder %s4102_s11, %s5039_s28  ;;  %p5045_p2 = scmp.lt.s32.totalorder %s5039_s28, %s5039_s28 }
 0x486   :  { %4995 = vmatpush3.msra.mxu1 %v4257_v30  ;;  %4996 = vmatprep.mubr.msk.f32.mxu1 %vm5062_vm3, %v7210_v35 }
 0x487   :  { %4986 = vmatmul.mubr.msk.f32.vlgmr.msra.gmra.mxu0 %vm702_vm2, %v6626_v53  ;;  %4997 = vmatmul.mubr.msk.f32.vlgmr.msra.gmra.mxu1 %vm702_vm2, %v6641_v55  ;;  %v3923_v53 = vld [vmem:[%s7111_s9 + $0x10] sm:$0xff]  ;;  %v3922_v55 = vld [vmem:[%s7111_s9 + $0x8] sm:$0xff]  ;;  %p5046_p3 = por %p5045_p2, %p5044_p1 }
 0x488   :  { %4999 = vmatprep.subr.mxu0 %v7210_v35  ;;  %5007 = vmatprep.mubr.msk.f32.mxu0 %vm5062_vm3, %v7210_v35 }
 0x489   :  { %5010 = vmatprep.subr.mxu1 %v7210_v35  ;;  %5026 = vmatprep.mubr.msk.f32.mxu1 %vm5062_vm3, %v7210_v35  ;;  %p5047_p4 = pnand %p5046_p3, %p5040_p0 }
 0x48a   :  { %5000 = vmatpush3.msra.mxu0 %v3924_v1  ;;  %5011 = vmatpush3.msra.mxu1 %v4013_v48  ;;  %v4277_v48 = vld [vmem:[%s7114_s12] ss:$0 sm:$0xff] }
 0x48b   :  { %5001 = vmatprep.subr.mxu0 %v7210_v35  ;;  %5012 = vmatprep.subr.mxu1 %v7210_v35 }
 0x48c   :  { %5002 = vmatpush3.msra.mxu0 %v3923_v53  ;;  %5013 = vmatpush3.msra.mxu1 %v4012_v13 }
 0x48d   :  { %5003 = vmatprep.subr.mxu0 %v7210_v35  ;;  %5014 = vmatprep.subr.mxu1 %v7210_v35 }
 0x48e   :  { %5004 = vmatpush3.msra.mxu0 %v3922_v55  ;;  %5015 = vmatpush3.msra.mxu1 %v4011_v37 }
 0x48f   :  { %5005 = vmatprep.subr.mxu0 %v7210_v35  ;;  %5016 = vmatprep.subr.mxu1 %v7210_v35 }
 0x490   :  { %5006 = vmatpush3.msra.mxu0 %v3921_v38  ;;  %5017 = vmatpush3.msra.mxu1 %v4010_v10 }
 0x491   :  { %5018 = vmatprep.subr.mxu1 %v7210_v35 }
 0x492   :  { %5019 = vmatpush3.msra.mxu1 %v4009_v28 }
 0x493   :  { %5020 = vmatprep.subr.mxu1 %v7210_v35 }
 0x494   :  { %5021 = vmatpush3.msra.mxu1 %v4008_v9 }
 0x495   :  { %5022 = vmatprep.subr.mxu1 %v7210_v35 }
 0x496   :  { %5023 = vmatpush3.msra.mxu1 %v4007_v23 }
 0x497   :  { %5024 = vmatprep.subr.mxu1 %v7210_v35 }
 0x498   :  { %5025 = vmatpush3.msra.mxu1 %v4006_v44 }
 0x502   :  { %v2534_v59 = vpop.f32.mrf.mxu0  ;;  %v2630_v29 = vpop.f32.mrf.mxu1 }
 0x504   :  { %v4833_v2 = vpop.f32.mrf.mxu0  ;;  %v4844_v11 = vpop.f32.mrf.mxu1 }
 0x50b   :  { %v2726_v24 = vpop.f32.mrf.mxu0  ;;  %v2822_v56 = vpop.f32.mrf.mxu1 }
 0x50d   :  { %v4855_v61 = vpop.f32.mrf.mxu0  ;;  %v4866_v21 = vpop.f32.mrf.mxu1 }
 0x515   :  { %v2926_v39 = vpop.f32.mrf.mxu0  ;;  %v3022_v32 = vpop.f32.mrf.mxu1 }
 0x517   :  { %v4877_v31 = vpop.f32.mrf.mxu0  ;;  %v4888_v27 = vpop.f32.mrf.mxu1 }
 0x51f   :  { %v3118_v33 = vpop.f32.mrf.mxu0  ;;  %v3214_v34 = vpop.f32.mrf.mxu1 }
 0x521   :  { %v4899_v20 = vpop.f32.mrf.mxu0  ;;  %v4910_v54 = vpop.f32.mrf.mxu1 }
 0x529   :  { %v3300_v41 = vpop.f32.mrf.mxu0  ;;  %v3386_v62 = vpop.f32.mrf.mxu1 }
 0x52a   :  { %v3301_v17 = vadd.f32 %v3300_v41, %v2534_v59  ;;  %v3387_v46 = vadd.f32 %v3386_v62, %v2630_v29 }
 0x52b   :  { %v4921_v60 = vpop.f32.mrf.mxu0  ;;  %v4932_v42 = vpop.f32.mrf.mxu1 }
 0x52c   :  { %v3906_v57 = vadd.f32 %v3387_v46, %v3301_v17 }
 0x533   :  { %v3472_v19 = vpop.f32.mrf.mxu0  ;;  %v3558_v0 = vpop.f32.mrf.mxu1 }
 0x534   :  { %v3473_v51 = vadd.f32 %v3472_v19, %v2726_v24  ;;  %v3559_v25 = vadd.f32 %v3558_v0, %v2822_v56 }
 0x535   :  { %v4943_v52 = vpop.f32.mrf.mxu0  ;;  %v4954_v8 = vpop.f32.mrf.mxu1 }
 0x536   :  { %v3907_v16 = vadd.f32 %v3559_v25, %v3473_v51 }
 0x538   :  { %v3910_v36 = vadd.f32 %v3907_v16, %v3906_v57 }
 0x53d   :  { %v3644_v43 = vpop.f32.mrf.mxu0  ;;  %v3730_v63 = vpop.f32.mrf.mxu1 }
 0x53e   :  { %v3645_v40 = vadd.f32 %v3644_v43, %v2926_v39  ;;  %v3731_v5 = vadd.f32 %v3730_v63, %v3022_v32 }
 0x53f   :  { %v4965_v49 = vpop.f32.mrf.mxu0  ;;  %v4976_v58 = vpop.f32.mrf.mxu1 }
 0x540   :  { %v3908_v45 = vadd.f32 %v3731_v5, %v3645_v40 }
 0x547   :  { %v3816_v3 = vpop.f32.mrf.mxu0  ;;  %v3902_v18 = vpop.f32.mrf.mxu1 }
 0x548   :  { %v3817_v50 = vadd.f32 %v3816_v3, %v3118_v33  ;;  %v3903_v26 = vadd.f32 %v3902_v18, %v3214_v34 }
 0x549   :  { %v4987_v4 = vpop.f32.mrf.mxu0  ;;  %v4998_v47 = vpop.f32.mrf.mxu1 }
 0x54a   :  { %v3909_v22 = vadd.f32 %v3903_v26, %v3817_v50 }
 0x54c   :  { %v3911_v15 = vadd.f32 %v3909_v22, %v3908_v45 }
 0x54e   :  { %v3912_v14 = vadd.f32 %v3911_v15, %v3910_v36 }
 0x550   :  { %v3920_v12 = vadd.f32 %v4274_v7, %v3912_v14 }
 0x552   :  { %5008 = vmatmul.mubr.msk.f32.vlgmr.msra.gmra.mxu0 %vm702_vm2, %v3920_v12 }
 0x612   :  { %v4001_v30 = vpop.f32.mrf.mxu0 }
 0x613   :  { %v4002_v1 = vadd.f32 %v4275_v6, %v4001_v30 }
 0x614   :  { %v5009_v53 = vpop.f32.mrf.mxu0 }
 0x615   :  { %v4005_v55 = vmax.f32 %v4002_v1, 0.0 }
 0x617   :  { %5027 = vmatmul.mubr.msk.f32.vlgmr.msra.gmra.mxu1 %vm1828_vm13, %v4005_v55 }
 0x6d7   :  { %v4090_v13 = vpop.f32.mrf.mxu1 }
 0x6d8   :  { %v4091_v38 = vadd.f32 %v4277_v48, %v4090_v13 }
 0x6d9   :  { %v5028_v35 = vpop.f32.mrf.mxu1 }
 0x6da   :  { %4094 = vst [vmem:[#allocation2] sm:$0xff] %v4091_v38 }
 0x6db   :  { %5050 = shalt.err (!%p5047_p4)
}
 0x6dc   :  { %4104 = dma.vmem_to_hbm [thread:$0]  %s4102_s11, 128, %s7115_s13, [#allocation3]  }
 0x6dd   :  { %5059 = dma.done.wait [#allocation3], 128  }
 0x6de   :  { %5060 = vsyncadd [#allocation3], 4294967168 }
 0x6df   :  { %4108 = vsyncpa [#allocation3], 1 }

</bundles_post_ra>
